<compile_context>
chip_gen: v5e
topology: v5e:2x2
jax: 0.10.0
libtpu: 0.0.40
codegen_flags: <defaults>
</compile_context>

<pallas_src>
import functools

import jax
import jax.numpy as jnp
from jax.experimental import pallas as pl
from jax.experimental.pallas import tpu as pltpu


def _round_up(x, m):
    return ((x + m - 1) // m) * m


# ----------------------------------------------------------------------------
# Pallas kernel: hoisted input projection + fully unrolled masked LSTM recurrence
# ----------------------------------------------------------------------------
def _lstm_encoder_kernel(x_ref,      # (BB*T, E)     bf16  embedded inputs (batch-major rows)
                         len_ref,    # (BB, 1)       i32   sequence lengths
                         wih_ref,    # (E, 4*HP)     bf16  W_ih^T, gates 128-lane aligned
                         whh_ref,    # (HP, 4*HP)    bf16  W_hh^T, gates 128-lane aligned
                         b_ref,      # (1, 4*HP)     f32   b_ih + b_hh (gate aligned)
                         h0_ref,     # (BB, HP)      f32
                         c0_ref,     # (BB, HP)      f32
                         out_ref,    # (BB, T, HP)   f32   per-step outputs (0 past length)
                         hn_ref,     # (BB, HP)      f32   h at last valid step
                         cn_ref,     # (BB, HP)      f32   c at last valid step
                         gx_ref):    # (BB, T, 4*HP) f32   scratch: hoisted input projection
    BB, T, HP = out_ref.shape
    G = 4 * HP

    # --- Hoisted input projection: ONE big MXU matmul over every timestep of
    # this batch block (bf16 operands, f32 accumulate); bias added once. ---
    gx = jnp.dot(x_ref[...], wih_ref[...], preferred_element_type=jnp.float32)
    gx_ref[...] = (gx + b_ref[...]).reshape(BB, T, G)

    whh = whh_ref[...]            # (HP, 4*HP) bf16, loaded once
    lens = len_ref[...]           # (BB, 1) int32, loaded once
    h = h0_ref[...]               # f32 carry lives in values (no extra scratch)
    c = c0_ref[...]

    # Fully unrolled short recurrence: only h @ W_hh is truly sequential; the
    # scheduler can overlap MXU pushes / EUP sigmoid-tanh / VPU selects across
    # steps.  Elementwise gate math stays f32 (v5e-safe).
    # TODO(synk): for large T, stream T-chunks via a grid axis / pltpu.emit_pipeline
    #             instead of keeping the whole (B, T, *) slab resident in VMEM.
    for t in range(T):
        gates = gx_ref[:, t, :] + jnp.dot(h.astype(jnp.bfloat16), whh,
                                          preferred_element_type=jnp.float32)
        # Gate slices are 128-lane aligned (HP % 128 == 0) -> no cross-lane extracts.
        i_g = jax.nn.sigmoid(gates[:, 0 * HP:1 * HP])
        f_g = jax.nn.sigmoid(gates[:, 1 * HP:2 * HP])
        g_g = jnp.tanh(gates[:, 2 * HP:3 * HP])
        o_g = jax.nn.sigmoid(gates[:, 3 * HP:4 * HP])
        c_new = f_g * c + i_g * g_g
        h_new = o_g * jnp.tanh(c_new)
        valid = jnp.broadcast_to(lens > t, (BB, HP))     # one compare/broadcast, reused 3x
        h = jnp.where(valid, h_new, h)                   # freeze state past length (packed)
        c = jnp.where(valid, c_new, c)
        out_ref[:, t, :] = jnp.where(valid, h_new, 0.0)  # pad_packed zeros, lane-dense store

    hn_ref[...] = h
    cn_ref[...] = c


# ----------------------------------------------------------------------------
# Wrapper: embedding gather (glue) + weight packing + pallas_call
# ----------------------------------------------------------------------------
def _pack_gate_cols(w, H, HP, dtype):
    """PyTorch (4H, X) gate-stacked weight -> (X, 4*HP) transposed, with each
    gate (order i, f, g, o) padded to its own 128-lane-aligned block."""
    X = w.shape[1]
    out = jnp.zeros((X, 4 * HP), jnp.float32)
    for k in range(4):
        out = out.at[:, k * HP:k * HP + H].set(w[k * H:(k + 1) * H, :].T)
    return out.astype(dtype)


def _pick_batch_block(B):
    # Split the batch across grid steps (axis marked "parallel" => megacore /
    # both v7x TensorCores) when it is big enough and stays 8-sublane aligned.
    if B >= 16 and B % 16 == 0:
        return B // 2
    return B


@functools.partial(jax.jit, static_argnames=("max_length",))
def encoder_forward(x_ids, x_lengths, params, max_length, initial_state=None):
    """x_ids: (B, T) int32 token ids, batch_first.  Returns (out, (h_n, c_n))."""
    emb_table = params["embedding"]         # (V, E), row 0 zeros (padding_idx=0)
    w_ih = params["w_ih"]                   # (4H, E), PyTorch gate order i,f,g,o
    w_hh = params["w_hh"]                   # (4H, H)
    bias = params["b_ih"] + params["b_hh"]  # (4H,)

    B, T = x_ids.shape
    E = emb_table.shape[1]
    H = w_hh.shape[1]
    assert T == max_length
    HP = _round_up(H, 128)                  # lane-dense gate / output width
    BB = _pick_batch_block(B)
    nb = B // BB

    if initial_state is None:               # Encoder.init_hidden_state -> zeros
        h0 = jnp.zeros((B, H), jnp.float32)
        c0 = jnp.zeros((B, H), jnp.float32)
    else:
        h0 = initial_state[0].reshape(B, H).astype(jnp.float32)
        c0 = initial_state[1].reshape(B, H).astype(jnp.float32)

    # Embedding gather straight into the flat (B*T, E) bf16 layout the kernel
    # consumes: no (B,T,E)->(T,B,E) transpose and no extra cast pass over the
    # activations.  Dropout(p=0) == identity.
    # TODO(synk): dropout with p > 0 would use pltpu.prng_* in-kernel.
    x2d = jnp.take(emb_table.astype(jnp.bfloat16), x_ids.reshape(B * T), axis=0)

    # Weights: transposed, gate blocks padded to 128 lanes, bf16 for the MXU
    # (the kernel requests f32 accumulation).  Zero padding keeps the padded
    # h/c lanes exactly zero, so valid lanes are unaffected.
    wih_p = _pack_gate_cols(w_ih, H, HP, jnp.bfloat16)                       # (E, 4HP)
    whh_p = jnp.zeros((HP, 4 * HP), jnp.float32)
    whh_p = whh_p.at[:H, :].set(_pack_gate_cols(w_hh, H, HP, jnp.float32))
    whh_p = whh_p.astype(jnp.bfloat16)                                       # (HP, 4HP)
    bias_p = jnp.zeros((4 * HP,), jnp.float32)
    for k in range(4):
        bias_p = bias_p.at[k * HP:k * HP + H].set(bias[k * H:(k + 1) * H])
    bias_p = bias_p.reshape(1, 4 * HP)

    h0_p = jnp.zeros((B, HP), jnp.float32).at[:, :H].set(h0)
    c0_p = jnp.zeros((B, HP), jnp.float32).at[:, :H].set(c0)
    lens = x_lengths.astype(jnp.int32).reshape(B, 1)

    # VMEM budget (double-buffered blocks + scratch) with headroom; stay well
    # below v7x's 64 MiB physical VMEM.
    blk = (BB * T * E * 2 + BB * 4 + E * 4 * HP * 2 + HP * 4 * HP * 2
           + 4 * HP * 4 + 2 * BB * HP * 4              # inputs
           + BB * T * HP * 4 + 2 * BB * HP * 4)        # outputs
    scratch_bytes = BB * T * 4 * HP * 4
    vmem_limit = int(min(64 * 2 ** 20, max(4 * 2 ** 20, 2 * blk + scratch_bytes)))

    out_p, hn_p, cn_p = pl.pallas_call(
        _lstm_encoder_kernel,
        out_shape=(
            jax.ShapeDtypeStruct((B, T, HP), jnp.float32),
            jax.ShapeDtypeStruct((B, HP), jnp.float32),
            jax.ShapeDtypeStruct((B, HP), jnp.float32),
        ),
        grid=(nb,),
        in_specs=[
            pl.BlockSpec((BB * T, E), lambda b: (b, 0)),       # x rows of this batch block
            pl.BlockSpec((BB, 1), lambda b: (b, 0)),           # lengths
            pl.BlockSpec((E, 4 * HP), lambda b: (0, 0)),       # W_ih^T (shared)
            pl.BlockSpec((HP, 4 * HP), lambda b: (0, 0)),      # W_hh^T (shared)
            pl.BlockSpec((1, 4 * HP), lambda b: (0, 0)),       # bias   (shared)
            pl.BlockSpec((BB, HP), lambda b: (b, 0)),          # h0
            pl.BlockSpec((BB, HP), lambda b: (b, 0)),          # c0
        ],
        out_specs=(
            pl.BlockSpec((BB, T, HP), lambda b: (b, 0, 0)),    # batch-first output
            pl.BlockSpec((BB, HP), lambda b: (b, 0)),
            pl.BlockSpec((BB, HP), lambda b: (b, 0)),
        ),
        scratch_shapes=[pltpu.VMEM((BB, T, 4 * HP), jnp.float32)],
        compiler_params=pltpu.CompilerParams(
            dimension_semantics=("parallel",),                 # batch blocks independent
            vmem_limit_bytes=vmem_limit),
    )(x2d, lens, wih_p, whh_p, bias_p, h0_p, c0_p)

    out = out_p[:, :, :H]            # drop lane padding; already batch-first, no transpose
    h_n = hn_p[:, :H][None]          # (1, B, H) == num_layers * num_directions = 1
    c_n = cn_p[:, :H][None]
    return out, (h_n, c_n)


# ----------------------------------------------------------------------------
# Pure-JAX reference (masked LSTM == packed-sequence semantics) for validation
# matmul_dtype=f32  -> exact PyTorch eval() math
# matmul_dtype=bf16 -> mirrors the kernel's MXU operand precision (f32 state)
# ----------------------------------------------------------------------------
def encoder_reference(x_ids, x_lengths, params, max_length, matmul_dtype=jnp.float32):
    emb = params["embedding"]
    w_ih, w_hh = params["w_ih"], params["w_hh"]
    b = params["b_ih"] + params["b_hh"]
    B = x_ids.shape[0]
    H = w_hh.shape[1]
    h = jnp.zeros((B, H), jnp.float32)
    c = jnp.zeros((B, H), jnp.float32)

    x_emb = jnp.take(emb, x_ids, axis=0).astype(matmul_dtype)   # (B, T, E)
    wih_t = w_ih.T.astype(matmul_dtype)
    whh_t = w_hh.T.astype(matmul_dtype)
    lens = x_lengths.astype(jnp.int32)

    outs = []
    for t in range(max_length):
        gates = (jnp.dot(x_emb[:, t, :], wih_t, preferred_element_type=jnp.float32)
                 + jnp.dot(h.astype(matmul_dtype), whh_t, preferred_element_type=jnp.float32)
                 + b)
        i_g = jax.nn.sigmoid(gates[:, 0 * H:1 * H])
        f_g = jax.nn.sigmoid(gates[:, 1 * H:2 * H])
        g_g = jnp.tanh(gates[:, 2 * H:3 * H])
        o_g = jax.nn.sigmoid(gates[:, 3 * H:4 * H])
        c_new = f_g * c + i_g * g_g
        h_new = o_g * jnp.tanh(c_new)
        valid = (lens > t)[:, None]
        h = jnp.where(valid, h_new, h)
        c = jnp.where(valid, c_new, c)
        outs.append(jnp.where(valid, h_new, 0.0))
    out = jnp.stack(outs, axis=1)
    return out, (h[None], c[None])


# ----------------------------------------------------------------------------
# Deterministic parameter init (shapes from Encoder.__init__) + demo run
# ----------------------------------------------------------------------------
def make_params(key, vocab_size, embedding_dim, hidden_dim):
    k_emb, k_wih, k_whh, k_bih, k_bhh = jax.random.split(key, 5)
    emb = jax.random.normal(k_emb, (vocab_size, embedding_dim), jnp.float32)
    emb = emb.at[0].set(0.0)                               # padding_idx=0
    bound = 1.0 / jnp.sqrt(jnp.float32(hidden_dim))        # PyTorch LSTM init range
    u = lambda k, shp: jax.random.uniform(k, shp, jnp.float32, -bound, bound)
    return {
        "embedding": emb,
        "w_ih": u(k_wih, (4 * hidden_dim, embedding_dim)),
        "w_hh": u(k_whh, (4 * hidden_dim, hidden_dim)),
        "b_ih": u(k_bih, (4 * hidden_dim,)),
        "b_hh": u(k_bhh, (4 * hidden_dim,)),
    }


if __name__ == "__main__":
    VOCAB, EMB, HID = 50, 16, 32
    BATCH, MAX_LEN = 2, 8
    DROPOUT = 0.0                  # identity (see TODO in encoder_forward)

    key = jax.random.PRNGKey(0)
    k_par, k_ids = jax.random.split(key)
    params = make_params(k_par, VOCAB, EMB, HID)

    lengths = jnp.array([8, 5], dtype=jnp.int32)            # ragged sequences
    x_ids = jax.random.randint(k_ids, (BATCH, MAX_LEN), 1, VOCAB, dtype=jnp.int32)
    # zero out the padded tail (token id 0 = padding_idx), like real padded batches
    pos = jnp.arange(MAX_LEN)[None, :]
    x_ids = jnp.where(pos < lengths[:, None], x_ids, 0)

    out, (h_n, c_n) = encoder_forward(x_ids, lengths, params, max_length=MAX_LEN)
    jax.block_until_ready((out, h_n, c_n))

    assert out.shape == (BATCH, MAX_LEN, HID)
    assert h_n.shape == (1, BATCH, HID) and c_n.shape == (1, BATCH, HID)

    # Tight check against a reference mirroring the kernel math
    # (bf16 matmul operands, f32 accumulation / f32 state).
    m_out, (m_h, m_c) = encoder_reference(x_ids, lengths, params, MAX_LEN, jnp.bfloat16)
    assert jnp.allclose(out, m_out, rtol=1e-3, atol=1e-3)
    assert jnp.allclose(h_n, m_h, rtol=1e-3, atol=1e-3)
    assert jnp.allclose(c_n, m_c, rtol=1e-3, atol=1e-3)

    # Semantic check against full-f32 math (PyTorch eval() forward); tolerance
    # covers only the bf16 rounding of the MXU operands.
    f_out, (f_h, f_c) = encoder_reference(x_ids, lengths, params, MAX_LEN, jnp.float32)
    assert jnp.allclose(out, f_out, rtol=3e-2, atol=3e-2)
    assert jnp.allclose(h_n, f_h, rtol=3e-2, atol=3e-2)
    assert jnp.allclose(c_n, f_c, rtol=3e-2, atol=3e-2)

    print("KERNEL_OK")
</pallas_src>

<mosaic_0001>
module attributes {stable_mosaic.version = 11 : i64} {
  func.func @_lstm_encoder_kernel(%arg0: i32, %arg1: memref<16x16xbf16, #tpu.memory_space<vmem>>, %arg2: memref<2x1xi32, #tpu.memory_space<vmem>>, %arg3: memref<16x512xbf16, #tpu.memory_space<vmem>>, %arg4: memref<128x512xbf16, #tpu.memory_space<vmem>>, %arg5: memref<1x512xf32, #tpu.memory_space<vmem>>, %arg6: memref<2x128xf32, #tpu.memory_space<vmem>>, %arg7: memref<2x128xf32, #tpu.memory_space<vmem>>, %arg8: memref<2x8x128xf32, #tpu.memory_space<vmem>>, %arg9: memref<2x128xf32, #tpu.memory_space<vmem>>, %arg10: memref<2x128xf32, #tpu.memory_space<vmem>>, %arg11: memref<2x8x512xf32, #tpu.memory_space<vmem>>) attributes {dimension_semantics = [#tpu.dimension_semantics<parallel>], iteration_bounds = array<i64: 1>, scalar_prefetch = 0 : i64, scratch_operands = 1 : i64, tpu.core_type = #tpu.core_type<tc>, window_params = [{transform_indices = @transform_0, window_bounds = array<i64: 16, 16>}, {transform_indices = @transform_1, window_bounds = array<i64: 2, 1>}, {pipeline_mode = #tpu.pipeline_mode<synchronous>, transform_indices = @transform_2, window_bounds = array<i64: 16, 512>}, {pipeline_mode = #tpu.pipeline_mode<synchronous>, transform_indices = @transform_3, window_bounds = array<i64: 128, 512>}, {pipeline_mode = #tpu.pipeline_mode<synchronous>, transform_indices = @transform_4, window_bounds = array<i64: 1, 512>}, {transform_indices = @transform_5, window_bounds = array<i64: 2, 128>}, {transform_indices = @transform_6, window_bounds = array<i64: 2, 128>}, {transform_indices = @transform_7, window_bounds = array<i64: 2, 8, 128>}, {transform_indices = @transform_8, window_bounds = array<i64: 2, 128>}, {transform_indices = @transform_9, window_bounds = array<i64: 2, 128>}]} {
    %c0 = arith.constant 0 : index
    %c0_0 = arith.constant 0 : index
    %0 = vector.load %arg1[%c0, %c0_0] : memref<16x16xbf16, #tpu.memory_space<vmem>>, vector<16x16xbf16>
    %c0_1 = arith.constant 0 : index
    %c0_2 = arith.constant 0 : index
    %1 = vector.load %arg3[%c0_1, %c0_2] : memref<16x512xbf16, #tpu.memory_space<vmem>>, vector<16x512xbf16>
    %cst = arith.constant dense<0.000000e+00> : vector<16x512xf32>
    %2 = tpu.matmul %0, %1, %cst {dimension_numbers = #tpu.dot_dimension_numbers<[1], [0], [0], [1], [0, 0, 1, 1], [], []>} : vector<16x16xbf16>, vector<16x512xbf16>, vector<16x512xf32> -> vector<16x512xf32>
    %c0_3 = arith.constant 0 : index
    %c0_4 = arith.constant 0 : index
    %3 = vector.load %arg5[%c0_3, %c0_4] : memref<1x512xf32, #tpu.memory_space<vmem>>, vector<1x512xf32>
    %4 = vector.broadcast %3 : vector<1x512xf32> to vector<16x512xf32>
    %5 = arith.addf %2, %4 : vector<16x512xf32>
    %6 = vector.shape_cast %5 : vector<16x512xf32> to vector<2x8x512xf32>
    %c0_5 = arith.constant 0 : index
    %c0_6 = arith.constant 0 : index
    %c0_7 = arith.constant 0 : index
    %7 = vector.load %arg11[%c0_5, %c0_6, %c0_7] : memref<2x8x512xf32, #tpu.memory_space<vmem>>, vector<2x8x512xf32>
    tpu.vector_store %arg11[%c0_5, %c0_6, %c0_7], %6 {strides = array<i32>} : memref<2x8x512xf32, #tpu.memory_space<vmem>>, vector<2x8x512xf32>,
    %c0_8 = arith.constant 0 : index
    %c0_9 = arith.constant 0 : index
    %8 = vector.load %arg4[%c0_8, %c0_9] : memref<128x512xbf16, #tpu.memory_space<vmem>>, vector<128x512xbf16>
    %c0_10 = arith.constant 0 : index
    %c0_11 = arith.constant 0 : index
    %9 = vector.load %arg2[%c0_10, %c0_11] : memref<2x1xi32, #tpu.memory_space<vmem>>, vector<2x1xi32>
    %c0_12 = arith.constant 0 : index
    %c0_13 = arith.constant 0 : index
    %10 = vector.load %arg6[%c0_12, %c0_13] : memref<2x128xf32, #tpu.memory_space<vmem>>, vector<2x128xf32>
    %c0_14 = arith.constant 0 : index
    %c0_15 = arith.constant 0 : index
    %11 = vector.load %arg7[%c0_14, %c0_15] : memref<2x128xf32, #tpu.memory_space<vmem>>, vector<2x128xf32>
    %c0_16 = arith.constant 0 : index
    %c0_17 = arith.constant 0 : index
    %c0_18 = arith.constant 0 : index
    %12 = vector.load %arg11[%c0_16, %c0_17, %c0_18] : memref<2x8x512xf32, #tpu.memory_space<vmem>>, vector<2x1x512xf32>
    %13 = vector.shape_cast %12 : vector<2x1x512xf32> to vector<2x512xf32>
    %14 = arith.truncf %10 : vector<2x128xf32> to vector<2x128xbf16>
    %cst_19 = arith.constant dense<0.000000e+00> : vector<2x512xf32>
    %15 = tpu.matmul %14, %8, %cst_19 {dimension_numbers = #tpu.dot_dimension_numbers<[1], [0], [0], [1], [0, 0, 1, 1], [], []>} : vector<2x128xbf16>, vector<128x512xbf16>, vector<2x512xf32> -> vector<2x512xf32>
    %16 = arith.addf %13, %15 : vector<2x512xf32>
    %17 = vector.extract_strided_slice %16 {offsets = [0, 0], sizes = [2, 128], strides = [1, 1]} : vector<2x512xf32> to vector<2x128xf32>
    %18 = arith.negf %17 : vector<2x128xf32>
    %19 = math.exp %18 : vector<2x128xf32>
    %cst_20 = arith.constant 1.000000e+00 : f32
    %20 = vector.broadcast %cst_20 : f32 to vector<2x128xf32>
    %21 = arith.addf %20, %19 : vector<2x128xf32>
    %22 = arith.divf %20, %21 : vector<2x128xf32>
    %23 = vector.extract_strided_slice %16 {offsets = [0, 128], sizes = [2, 128], strides = [1, 1]} : vector<2x512xf32> to vector<2x128xf32>
    %24 = arith.negf %23 : vector<2x128xf32>
    %25 = math.exp %24 : vector<2x128xf32>
    %cst_21 = arith.constant 1.000000e+00 : f32
    %26 = vector.broadcast %cst_21 : f32 to vector<2x128xf32>
    %27 = arith.addf %26, %25 : vector<2x128xf32>
    %28 = arith.divf %26, %27 : vector<2x128xf32>
    %29 = vector.extract_strided_slice %16 {offsets = [0, 256], sizes = [2, 128], strides = [1, 1]} : vector<2x512xf32> to vector<2x128xf32>
    %30 = math.tanh %29 : vector<2x128xf32>
    %31 = vector.extract_strided_slice %16 {offsets = [0, 384], sizes = [2, 128], strides = [1, 1]} : vector<2x512xf32> to vector<2x128xf32>
    %32 = arith.negf %31 : vector<2x128xf32>
    %33 = math.exp %32 : vector<2x128xf32>
    %cst_22 = arith.constant 1.000000e+00 : f32
    %34 = vector.broadcast %cst_22 : f32 to vector<2x128xf32>
    %35 = arith.addf %34, %33 : vector<2x128xf32>
    %36 = arith.divf %34, %35 : vector<2x128xf32>
    %37 = arith.mulf %28, %11 : vector<2x128xf32>
    %38 = arith.mulf %22, %30 : vector<2x128xf32>
    %39 = arith.addf %37, %38 : vector<2x128xf32>
    %40 = math.tanh %39 : vector<2x128xf32>
    %41 = arith.mulf %36, %40 : vector<2x128xf32>
    %c0_i32 = arith.constant 0 : i32
    %42 = vector.broadcast %c0_i32 : i32 to vector<2x1xi32>
    %43 = arith.cmpi sgt, %9, %42 : vector<2x1xi32>
    %44 = vector.shape_cast %43 : vector<2x1xi1> to vector<2x1xi1>
    %45 = vector.broadcast %44 : vector<2x1xi1> to vector<2x128xi1>
    %46 = arith.select %45, %41, %10 : vector<2x128xi1>, vector<2x128xf32>
    %47 = arith.select %45, %39, %11 : vector<2x128xi1>, vector<2x128xf32>
    %cst_23 = arith.constant 0.000000e+00 : f32
    %48 = vector.broadcast %cst_23 : f32 to vector<2x128xf32>
    %49 = arith.select %45, %41, %48 : vector<2x128xi1>, vector<2x128xf32>
    %c0_24 = arith.constant 0 : index
    %c0_25 = arith.constant 0 : index
    %c0_26 = arith.constant 0 : index
    %50 = vector.load %arg8[%c0_24, %c0_25, %c0_26] : memref<2x8x128xf32, #tpu.memory_space<vmem>>, vector<2x1x128xf32>
    %51 = vector.shape_cast %50 : vector<2x1x128xf32> to vector<2x128xf32>
    %52 = vector.shape_cast %49 : vector<2x128xf32> to vector<2x1x128xf32>
    tpu.vector_store %arg8[%c0_24, %c0_25, %c0_26], %52 {strides = array<i32>} : memref<2x8x128xf32, #tpu.memory_space<vmem>>, vector<2x1x128xf32>,
    %c0_27 = arith.constant 0 : index
    %c1 = arith.constant 1 : index
    %c0_28 = arith.constant 0 : index
    %53 = vector.load %arg11[%c0_27, %c1, %c0_28] : memref<2x8x512xf32, #tpu.memory_space<vmem>>, vector<2x1x512xf32>
    %54 = vector.shape_cast %53 : vector<2x1x512xf32> to vector<2x512xf32>
    %55 = arith.truncf %46 : vector<2x128xf32> to vector<2x128xbf16>
    %cst_29 = arith.constant dense<0.000000e+00> : vector<2x512xf32>
    %56 = tpu.matmul %55, %8, %cst_29 {dimension_numbers = #tpu.dot_dimension_numbers<[1], [0], [0], [1], [0, 0, 1, 1], [], []>} : vector<2x128xbf16>, vector<128x512xbf16>, vector<2x512xf32> -> vector<2x512xf32>
    %57 = arith.addf %54, %56 : vector<2x512xf32>
    %58 = vector.extract_strided_slice %57 {offsets = [0, 0], sizes = [2, 128], strides = [1, 1]} : vector<2x512xf32> to vector<2x128xf32>
    %59 = arith.negf %58 : vector<2x128xf32>
    %60 = math.exp %59 : vector<2x128xf32>
    %cst_30 = arith.constant 1.000000e+00 : f32
    %61 = vector.broadcast %cst_30 : f32 to vector<2x128xf32>
    %62 = arith.addf %61, %60 : vector<2x128xf32>
    %63 = arith.divf %61, %62 : vector<2x128xf32>
    %64 = vector.extract_strided_slice %57 {offsets = [0, 128], sizes = [2, 128], strides = [1, 1]} : vector<2x512xf32> to vector<2x128xf32>
    %65 = arith.negf %64 : vector<2x128xf32>
    %66 = math.exp %65 : vector<2x128xf32>
    %cst_31 = arith.constant 1.000000e+00 : f32
    %67 = vector.broadcast %cst_31 : f32 to vector<2x128xf32>
    %68 = arith.addf %67, %66 : vector<2x128xf32>
    %69 = arith.divf %67, %68 : vector<2x128xf32>
    %70 = vector.extract_strided_slice %57 {offsets = [0, 256], sizes = [2, 128], strides = [1, 1]} : vector<2x512xf32> to vector<2x128xf32>
    %71 = math.tanh %70 : vector<2x128xf32>
    %72 = vector.extract_strided_slice %57 {offsets = [0, 384], sizes = [2, 128], strides = [1, 1]} : vector<2x512xf32> to vector<2x128xf32>
    %73 = arith.negf %72 : vector<2x128xf32>
    %74 = math.exp %73 : vector<2x128xf32>
    %cst_32 = arith.constant 1.000000e+00 : f32
    %75 = vector.broadcast %cst_32 : f32 to vector<2x128xf32>
    %76 = arith.addf %75, %74 : vector<2x128xf32>
    %77 = arith.divf %75, %76 : vector<2x128xf32>
    %78 = arith.mulf %69, %47 : vector<2x128xf32>
    %79 = arith.mulf %63, %71 : vector<2x128xf32>
    %80 = arith.addf %78, %79 : vector<2x128xf32>
    %81 = math.tanh %80 : vector<2x128xf32>
    %82 = arith.mulf %77, %81 : vector<2x128xf32>
    %c1_i32 = arith.constant 1 : i32
    %83 = vector.broadcast %c1_i32 : i32 to vector<2x1xi32>
    %84 = arith.cmpi sgt, %9, %83 : vector<2x1xi32>
    %85 = vector.shape_cast %84 : vector<2x1xi1> to vector<2x1xi1>
    %86 = vector.broadcast %85 : vector<2x1xi1> to vector<2x128xi1>
    %87 = arith.select %86, %82, %46 : vector<2x128xi1>, vector<2x128xf32>
    %88 = arith.select %86, %80, %47 : vector<2x128xi1>, vector<2x128xf32>
    %cst_33 = arith.constant 0.000000e+00 : f32
    %89 = vector.broadcast %cst_33 : f32 to vector<2x128xf32>
    %90 = arith.select %86, %82, %89 : vector<2x128xi1>, vector<2x128xf32>
    %c0_34 = arith.constant 0 : index
    %c1_35 = arith.constant 1 : index
    %c0_36 = arith.constant 0 : index
    %91 = vector.load %arg8[%c0_34, %c1_35, %c0_36] : memref<2x8x128xf32, #tpu.memory_space<vmem>>, vector<2x1x128xf32>
    %92 = vector.shape_cast %91 : vector<2x1x128xf32> to vector<2x128xf32>
    %93 = vector.shape_cast %90 : vector<2x128xf32> to vector<2x1x128xf32>
    tpu.vector_store %arg8[%c0_34, %c1_35, %c0_36], %93 {strides = array<i32>} : memref<2x8x128xf32, #tpu.memory_space<vmem>>, vector<2x1x128xf32>,
    %c0_37 = arith.constant 0 : index
    %c2 = arith.constant 2 : index
    %c0_38 = arith.constant 0 : index
    %94 = vector.load %arg11[%c0_37, %c2, %c0_38] : memref<2x8x512xf32, #tpu.memory_space<vmem>>, vector<2x1x512xf32>
    %95 = vector.shape_cast %94 : vector<2x1x512xf32> to vector<2x512xf32>
    %96 = arith.truncf %87 : vector<2x128xf32> to vector<2x128xbf16>
    %cst_39 = arith.constant dense<0.000000e+00> : vector<2x512xf32>
    %97 = tpu.matmul %96, %8, %cst_39 {dimension_numbers = #tpu.dot_dimension_numbers<[1], [0], [0], [1], [0, 0, 1, 1], [], []>} : vector<2x128xbf16>, vector<128x512xbf16>, vector<2x512xf32> -> vector<2x512xf32>
    %98 = arith.addf %95, %97 : vector<2x512xf32>
    %99 = vector.extract_strided_slice %98 {offsets = [0, 0], sizes = [2, 128], strides = [1, 1]} : vector<2x512xf32> to vector<2x128xf32>
    %100 = arith.negf %99 : vector<2x128xf32>
    %101 = math.exp %100 : vector<2x128xf32>
    %cst_40 = arith.constant 1.000000e+00 : f32
    %102 = vector.broadcast %cst_40 : f32 to vector<2x128xf32>
    %103 = arith.addf %102, %101 : vector<2x128xf32>
    %104 = arith.divf %102, %103 : vector<2x128xf32>
    %105 = vector.extract_strided_slice %98 {offsets = [0, 128], sizes = [2, 128], strides = [1, 1]} : vector<2x512xf32> to vector<2x128xf32>
    %106 = arith.negf %105 : vector<2x128xf32>
    %107 = math.exp %106 : vector<2x128xf32>
    %cst_41 = arith.constant 1.000000e+00 : f32
    %108 = vector.broadcast %cst_41 : f32 to vector<2x128xf32>
    %109 = arith.addf %108, %107 : vector<2x128xf32>
    %110 = arith.divf %108, %109 : vector<2x128xf32>
    %111 = vector.extract_strided_slice %98 {offsets = [0, 256], sizes = [2, 128], strides = [1, 1]} : vector<2x512xf32> to vector<2x128xf32>
    %112 = math.tanh %111 : vector<2x128xf32>
    %113 = vector.extract_strided_slice %98 {offsets = [0, 384], sizes = [2, 128], strides = [1, 1]} : vector<2x512xf32> to vector<2x128xf32>
    %114 = arith.negf %113 : vector<2x128xf32>
    %115 = math.exp %114 : vector<2x128xf32>
    %cst_42 = arith.constant 1.000000e+00 : f32
    %116 = vector.broadcast %cst_42 : f32 to vector<2x128xf32>
    %117 = arith.addf %116, %115 : vector<2x128xf32>
    %118 = arith.divf %116, %117 : vector<2x128xf32>
    %119 = arith.mulf %110, %88 : vector<2x128xf32>
    %120 = arith.mulf %104, %112 : vector<2x128xf32>
    %121 = arith.addf %119, %120 : vector<2x128xf32>
    %122 = math.tanh %121 : vector<2x128xf32>
    %123 = arith.mulf %118, %122 : vector<2x128xf32>
    %c2_i32 = arith.constant 2 : i32
    %124 = vector.broadcast %c2_i32 : i32 to vector<2x1xi32>
    %125 = arith.cmpi sgt, %9, %124 : vector<2x1xi32>
    %126 = vector.shape_cast %125 : vector<2x1xi1> to vector<2x1xi1>
    %127 = vector.broadcast %126 : vector<2x1xi1> to vector<2x128xi1>
    %128 = arith.select %127, %123, %87 : vector<2x128xi1>, vector<2x128xf32>
    %129 = arith.select %127, %121, %88 : vector<2x128xi1>, vector<2x128xf32>
    %cst_43 = arith.constant 0.000000e+00 : f32
    %130 = vector.broadcast %cst_43 : f32 to vector<2x128xf32>
    %131 = arith.select %127, %123, %130 : vector<2x128xi1>, vector<2x128xf32>
    %c0_44 = arith.constant 0 : index
    %c2_45 = arith.constant 2 : index
    %c0_46 = arith.constant 0 : index
    %132 = vector.load %arg8[%c0_44, %c2_45, %c0_46] : memref<2x8x128xf32, #tpu.memory_space<vmem>>, vector<2x1x128xf32>
    %133 = vector.shape_cast %132 : vector<2x1x128xf32> to vector<2x128xf32>
    %134 = vector.shape_cast %131 : vector<2x128xf32> to vector<2x1x128xf32>
    tpu.vector_store %arg8[%c0_44, %c2_45, %c0_46], %134 {strides = array<i32>} : memref<2x8x128xf32, #tpu.memory_space<vmem>>, vector<2x1x128xf32>,
    %c0_47 = arith.constant 0 : index
    %c3 = arith.constant 3 : index
    %c0_48 = arith.constant 0 : index
    %135 = vector.load %arg11[%c0_47, %c3, %c0_48] : memref<2x8x512xf32, #tpu.memory_space<vmem>>, vector<2x1x512xf32>
    %136 = vector.shape_cast %135 : vector<2x1x512xf32> to vector<2x512xf32>
    %137 = arith.truncf %128 : vector<2x128xf32> to vector<2x128xbf16>
    %cst_49 = arith.constant dense<0.000000e+00> : vector<2x512xf32>
    %138 = tpu.matmul %137, %8, %cst_49 {dimension_numbers = #tpu.dot_dimension_numbers<[1], [0], [0], [1], [0, 0, 1, 1], [], []>} : vector<2x128xbf16>, vector<128x512xbf16>, vector<2x512xf32> -> vector<2x512xf32>
    %139 = arith.addf %136, %138 : vector<2x512xf32>
    %140 = vector.extract_strided_slice %139 {offsets = [0, 0], sizes = [2, 128], strides = [1, 1]} : vector<2x512xf32> to vector<2x128xf32>
    %141 = arith.negf %140 : vector<2x128xf32>
    %142 = math.exp %141 : vector<2x128xf32>
    %cst_50 = arith.constant 1.000000e+00 : f32
    %143 = vector.broadcast %cst_50 : f32 to vector<2x128xf32>
    %144 = arith.addf %143, %142 : vector<2x128xf32>
    %145 = arith.divf %143, %144 : vector<2x128xf32>
    %146 = vector.extract_strided_slice %139 {offsets = [0, 128], sizes = [2, 128], strides = [1, 1]} : vector<2x512xf32> to vector<2x128xf32>
    %147 = arith.negf %146 : vector<2x128xf32>
    %148 = math.exp %147 : vector<2x128xf32>
    %cst_51 = arith.constant 1.000000e+00 : f32
    %149 = vector.broadcast %cst_51 : f32 to vector<2x128xf32>
    %150 = arith.addf %149, %148 : vector<2x128xf32>
    %151 = arith.divf %149, %150 : vector<2x128xf32>
    %152 = vector.extract_strided_slice %139 {offsets = [0, 256], sizes = [2, 128], strides = [1, 1]} : vector<2x512xf32> to vector<2x128xf32>
    %153 = math.tanh %152 : vector<2x128xf32>
    %154 = vector.extract_strided_slice %139 {offsets = [0, 384], sizes = [2, 128], strides = [1, 1]} : vector<2x512xf32> to vector<2x128xf32>
    %155 = arith.negf %154 : vector<2x128xf32>
    %156 = math.exp %155 : vector<2x128xf32>
    %cst_52 = arith.constant 1.000000e+00 : f32
    %157 = vector.broadcast %cst_52 : f32 to vector<2x128xf32>
    %158 = arith.addf %157, %156 : vector<2x128xf32>
    %159 = arith.divf %157, %158 : vector<2x128xf32>
    %160 = arith.mulf %151, %129 : vector<2x128xf32>
    %161 = arith.mulf %145, %153 : vector<2x128xf32>
    %162 = arith.addf %160, %161 : vector<2x128xf32>
    %163 = math.tanh %162 : vector<2x128xf32>
    %164 = arith.mulf %159, %163 : vector<2x128xf32>
    %c3_i32 = arith.constant 3 : i32
    %165 = vector.broadcast %c3_i32 : i32 to vector<2x1xi32>
    %166 = arith.cmpi sgt, %9, %165 : vector<2x1xi32>
    %167 = vector.shape_cast %166 : vector<2x1xi1> to vector<2x1xi1>
    %168 = vector.broadcast %167 : vector<2x1xi1> to vector<2x128xi1>
    %169 = arith.select %168, %164, %128 : vector<2x128xi1>, vector<2x128xf32>
    %170 = arith.select %168, %162, %129 : vector<2x128xi1>, vector<2x128xf32>
    %cst_53 = arith.constant 0.000000e+00 : f32
    %171 = vector.broadcast %cst_53 : f32 to vector<2x128xf32>
    %172 = arith.select %168, %164, %171 : vector<2x128xi1>, vector<2x128xf32>
    %c0_54 = arith.constant 0 : index
    %c3_55 = arith.constant 3 : index
    %c0_56 = arith.constant 0 : index
    %173 = vector.load %arg8[%c0_54, %c3_55, %c0_56] : memref<2x8x128xf32, #tpu.memory_space<vmem>>, vector<2x1x128xf32>
    %174 = vector.shape_cast %173 : vector<2x1x128xf32> to vector<2x128xf32>
    %175 = vector.shape_cast %172 : vector<2x128xf32> to vector<2x1x128xf32>
    tpu.vector_store %arg8[%c0_54, %c3_55, %c0_56], %175 {strides = array<i32>} : memref<2x8x128xf32, #tpu.memory_space<vmem>>, vector<2x1x128xf32>,
    %c0_57 = arith.constant 0 : index
    %c4 = arith.constant 4 : index
    %c0_58 = arith.constant 0 : index
    %176 = vector.load %arg11[%c0_57, %c4, %c0_58] : memref<2x8x512xf32, #tpu.memory_space<vmem>>, vector<2x1x512xf32>
    %177 = vector.shape_cast %176 : vector<2x1x512xf32> to vector<2x512xf32>
    %178 = arith.truncf %169 : vector<2x128xf32> to vector<2x128xbf16>
    %cst_59 = arith.constant dense<0.000000e+00> : vector<2x512xf32>
    %179 = tpu.matmul %178, %8, %cst_59 {dimension_numbers = #tpu.dot_dimension_numbers<[1], [0], [0], [1], [0, 0, 1, 1], [], []>} : vector<2x128xbf16>, vector<128x512xbf16>, vector<2x512xf32> -> vector<2x512xf32>
    %180 = arith.addf %177, %179 : vector<2x512xf32>
    %181 = vector.extract_strided_slice %180 {offsets = [0, 0], sizes = [2, 128], strides = [1, 1]} : vector<2x512xf32> to vector<2x128xf32>
    %182 = arith.negf %181 : vector<2x128xf32>
    %183 = math.exp %182 : vector<2x128xf32>
    %cst_60 = arith.constant 1.000000e+00 : f32
    %184 = vector.broadcast %cst_60 : f32 to vector<2x128xf32>
    %185 = arith.addf %184, %183 : vector<2x128xf32>
    %186 = arith.divf %184, %185 : vector<2x128xf32>
    %187 = vector.extract_strided_slice %180 {offsets = [0, 128], sizes = [2, 128], strides = [1, 1]} : vector<2x512xf32> to vector<2x128xf32>
    %188 = arith.negf %187 : vector<2x128xf32>
    %189 = math.exp %188 : vector<2x128xf32>
    %cst_61 = arith.constant 1.000000e+00 : f32
    %190 = vector.broadcast %cst_61 : f32 to vector<2x128xf32>
    %191 = arith.addf %190, %189 : vector<2x128xf32>
    %192 = arith.divf %190, %191 : vector<2x128xf32>
    %193 = vector.extract_strided_slice %180 {offsets = [0, 256], sizes = [2, 128], strides = [1, 1]} : vector<2x512xf32> to vector<2x128xf32>
    %194 = math.tanh %193 : vector<2x128xf32>
    %195 = vector.extract_strided_slice %180 {offsets = [0, 384], sizes = [2, 128], strides = [1, 1]} : vector<2x512xf32> to vector<2x128xf32>
    %196 = arith.negf %195 : vector<2x128xf32>
    %197 = math.exp %196 : vector<2x128xf32>
    %cst_62 = arith.constant 1.000000e+00 : f32
    %198 = vector.broadcast %cst_62 : f32 to vector<2x128xf32>
    %199 = arith.addf %198, %197 : vector<2x128xf32>
    %200 = arith.divf %198, %199 : vector<2x128xf32>
    %201 = arith.mulf %192, %170 : vector<2x128xf32>
    %202 = arith.mulf %186, %194 : vector<2x128xf32>
    %203 = arith.addf %201, %202 : vector<2x128xf32>
    %204 = math.tanh %203 : vector<2x128xf32>
    %205 = arith.mulf %200, %204 : vector<2x128xf32>
    %c4_i32 = arith.constant 4 : i32
    %206 = vector.broadcast %c4_i32 : i32 to vector<2x1xi32>
    %207 = arith.cmpi sgt, %9, %206 : vector<2x1xi32>
    %208 = vector.shape_cast %207 : vector<2x1xi1> to vector<2x1xi1>
    %209 = vector.broadcast %208 : vector<2x1xi1> to vector<2x128xi1>
    %210 = arith.select %209, %205, %169 : vector<2x128xi1>, vector<2x128xf32>
    %211 = arith.select %209, %203, %170 : vector<2x128xi1>, vector<2x128xf32>
    %cst_63 = arith.constant 0.000000e+00 : f32
    %212 = vector.broadcast %cst_63 : f32 to vector<2x128xf32>
    %213 = arith.select %209, %205, %212 : vector<2x128xi1>, vector<2x128xf32>
    %c0_64 = arith.constant 0 : index
    %c4_65 = arith.constant 4 : index
    %c0_66 = arith.constant 0 : index
    %214 = vector.load %arg8[%c0_64, %c4_65, %c0_66] : memref<2x8x128xf32, #tpu.memory_space<vmem>>, vector<2x1x128xf32>
    %215 = vector.shape_cast %214 : vector<2x1x128xf32> to vector<2x128xf32>
    %216 = vector.shape_cast %213 : vector<2x128xf32> to vector<2x1x128xf32>
    tpu.vector_store %arg8[%c0_64, %c4_65, %c0_66], %216 {strides = array<i32>} : memref<2x8x128xf32, #tpu.memory_space<vmem>>, vector<2x1x128xf32>,
    %c0_67 = arith.constant 0 : index
    %c5 = arith.constant 5 : index
    %c0_68 = arith.constant 0 : index
    %217 = vector.load %arg11[%c0_67, %c5, %c0_68] : memref<2x8x512xf32, #tpu.memory_space<vmem>>, vector<2x1x512xf32>
    %218 = vector.shape_cast %217 : vector<2x1x512xf32> to vector<2x512xf32>
    %219 = arith.truncf %210 : vector<2x128xf32> to vector<2x128xbf16>
    %cst_69 = arith.constant dense<0.000000e+00> : vector<2x512xf32>
    %220 = tpu.matmul %219, %8, %cst_69 {dimension_numbers = #tpu.dot_dimension_numbers<[1], [0], [0], [1], [0, 0, 1, 1], [], []>} : vector<2x128xbf16>, vector<128x512xbf16>, vector<2x512xf32> -> vector<2x512xf32>
    %221 = arith.addf %218, %220 : vector<2x512xf32>
    %222 = vector.extract_strided_slice %221 {offsets = [0, 0], sizes = [2, 128], strides = [1, 1]} : vector<2x512xf32> to vector<2x128xf32>
    %223 = arith.negf %222 : vector<2x128xf32>
    %224 = math.exp %223 : vector<2x128xf32>
    %cst_70 = arith.constant 1.000000e+00 : f32
    %225 = vector.broadcast %cst_70 : f32 to vector<2x128xf32>
    %226 = arith.addf %225, %224 : vector<2x128xf32>
    %227 = arith.divf %225, %226 : vector<2x128xf32>
    %228 = vector.extract_strided_slice %221 {offsets = [0, 128], sizes = [2, 128], strides = [1, 1]} : vector<2x512xf32> to vector<2x128xf32>
    %229 = arith.negf %228 : vector<2x128xf32>
    %230 = math.exp %229 : vector<2x128xf32>
    %cst_71 = arith.constant 1.000000e+00 : f32
    %231 = vector.broadcast %cst_71 : f32 to vector<2x128xf32>
    %232 = arith.addf %231, %230 : vector<2x128xf32>
    %233 = arith.divf %231, %232 : vector<2x128xf32>
    %234 = vector.extract_strided_slice %221 {offsets = [0, 256], sizes = [2, 128], strides = [1, 1]} : vector<2x512xf32> to vector<2x128xf32>
    %235 = math.tanh %234 : vector<2x128xf32>
    %236 = vector.extract_strided_slice %221 {offsets = [0, 384], sizes = [2, 128], strides = [1, 1]} : vector<2x512xf32> to vector<2x128xf32>
    %237 = arith.negf %236 : vector<2x128xf32>
    %238 = math.exp %237 : vector<2x128xf32>
    %cst_72 = arith.constant 1.000000e+00 : f32
    %239 = vector.broadcast %cst_72 : f32 to vector<2x128xf32>
    %240 = arith.addf %239, %238 : vector<2x128xf32>
    %241 = arith.divf %239, %240 : vector<2x128xf32>
    %242 = arith.mulf %233, %211 : vector<2x128xf32>
    %243 = arith.mulf %227, %235 : vector<2x128xf32>
    %244 = arith.addf %242, %243 : vector<2x128xf32>
    %245 = math.tanh %244 : vector<2x128xf32>
    %246 = arith.mulf %241, %245 : vector<2x128xf32>
    %c5_i32 = arith.constant 5 : i32
    %247 = vector.broadcast %c5_i32 : i32 to vector<2x1xi32>
    %248 = arith.cmpi sgt, %9, %247 : vector<2x1xi32>
    %249 = vector.shape_cast %248 : vector<2x1xi1> to vector<2x1xi1>
    %250 = vector.broadcast %249 : vector<2x1xi1> to vector<2x128xi1>
    %251 = arith.select %250, %246, %210 : vector<2x128xi1>, vector<2x128xf32>
    %252 = arith.select %250, %244, %211 : vector<2x128xi1>, vector<2x128xf32>
    %cst_73 = arith.constant 0.000000e+00 : f32
    %253 = vector.broadcast %cst_73 : f32 to vector<2x128xf32>
    %254 = arith.select %250, %246, %253 : vector<2x128xi1>, vector<2x128xf32>
    %c0_74 = arith.constant 0 : index
    %c5_75 = arith.constant 5 : index
    %c0_76 = arith.constant 0 : index
    %255 = vector.load %arg8[%c0_74, %c5_75, %c0_76] : memref<2x8x128xf32, #tpu.memory_space<vmem>>, vector<2x1x128xf32>
    %256 = vector.shape_cast %255 : vector<2x1x128xf32> to vector<2x128xf32>
    %257 = vector.shape_cast %254 : vector<2x128xf32> to vector<2x1x128xf32>
    tpu.vector_store %arg8[%c0_74, %c5_75, %c0_76], %257 {strides = array<i32>} : memref<2x8x128xf32, #tpu.memory_space<vmem>>, vector<2x1x128xf32>,
    %c0_77 = arith.constant 0 : index
    %c6 = arith.constant 6 : index
    %c0_78 = arith.constant 0 : index
    %258 = vector.load %arg11[%c0_77, %c6, %c0_78] : memref<2x8x512xf32, #tpu.memory_space<vmem>>, vector<2x1x512xf32>
    %259 = vector.shape_cast %258 : vector<2x1x512xf32> to vector<2x512xf32>
    %260 = arith.truncf %251 : vector<2x128xf32> to vector<2x128xbf16>
    %cst_79 = arith.constant dense<0.000000e+00> : vector<2x512xf32>
    %261 = tpu.matmul %260, %8, %cst_79 {dimension_numbers = #tpu.dot_dimension_numbers<[1], [0], [0], [1], [0, 0, 1, 1], [], []>} : vector<2x128xbf16>, vector<128x512xbf16>, vector<2x512xf32> -> vector<2x512xf32>
    %262 = arith.addf %259, %261 : vector<2x512xf32>
    %263 = vector.extract_strided_slice %262 {offsets = [0, 0], sizes = [2, 128], strides = [1, 1]} : vector<2x512xf32> to vector<2x128xf32>
    %264 = arith.negf %263 : vector<2x128xf32>
    %265 = math.exp %264 : vector<2x128xf32>
    %cst_80 = arith.constant 1.000000e+00 : f32
    %266 = vector.broadcast %cst_80 : f32 to vector<2x128xf32>
    %267 = arith.addf %266, %265 : vector<2x128xf32>
    %268 = arith.divf %266, %267 : vector<2x128xf32>
    %269 = vector.extract_strided_slice %262 {offsets = [0, 128], sizes = [2, 128], strides = [1, 1]} : vector<2x512xf32> to vector<2x128xf32>
    %270 = arith.negf %269 : vector<2x128xf32>
    %271 = math.exp %270 : vector<2x128xf32>
    %cst_81 = arith.constant 1.000000e+00 : f32
    %272 = vector.broadcast %cst_81 : f32 to vector<2x128xf32>
    %273 = arith.addf %272, %271 : vector<2x128xf32>
    %274 = arith.divf %272, %273 : vector<2x128xf32>
    %275 = vector.extract_strided_slice %262 {offsets = [0, 256], sizes = [2, 128], strides = [1, 1]} : vector<2x512xf32> to vector<2x128xf32>
    %276 = math.tanh %275 : vector<2x128xf32>
    %277 = vector.extract_strided_slice %262 {offsets = [0, 384], sizes = [2, 128], strides = [1, 1]} : vector<2x512xf32> to vector<2x128xf32>
    %278 = arith.negf %277 : vector<2x128xf32>
    %279 = math.exp %278 : vector<2x128xf32>
    %cst_82 = arith.constant 1.000000e+00 : f32
    %280 = vector.broadcast %cst_82 : f32 to vector<2x128xf32>
    %281 = arith.addf %280, %279 : vector<2x128xf32>
    %282 = arith.divf %280, %281 : vector<2x128xf32>
    %283 = arith.mulf %274, %252 : vector<2x128xf32>
    %284 = arith.mulf %268, %276 : vector<2x128xf32>
    %285 = arith.addf %283, %284 : vector<2x128xf32>
    %286 = math.tanh %285 : vector<2x128xf32>
    %287 = arith.mulf %282, %286 : vector<2x128xf32>
    %c6_i32 = arith.constant 6 : i32
    %288 = vector.broadcast %c6_i32 : i32 to vector<2x1xi32>
    %289 = arith.cmpi sgt, %9, %288 : vector<2x1xi32>
    %290 = vector.shape_cast %289 : vector<2x1xi1> to vector<2x1xi1>
    %291 = vector.broadcast %290 : vector<2x1xi1> to vector<2x128xi1>
    %292 = arith.select %291, %287, %251 : vector<2x128xi1>, vector<2x128xf32>
    %293 = arith.select %291, %285, %252 : vector<2x128xi1>, vector<2x128xf32>
    %cst_83 = arith.constant 0.000000e+00 : f32
    %294 = vector.broadcast %cst_83 : f32 to vector<2x128xf32>
    %295 = arith.select %291, %287, %294 : vector<2x128xi1>, vector<2x128xf32>
    %c0_84 = arith.constant 0 : index
    %c6_85 = arith.constant 6 : index
    %c0_86 = arith.constant 0 : index
    %296 = vector.load %arg8[%c0_84, %c6_85, %c0_86] : memref<2x8x128xf32, #tpu.memory_space<vmem>>, vector<2x1x128xf32>
    %297 = vector.shape_cast %296 : vector<2x1x128xf32> to vector<2x128xf32>
    %298 = vector.shape_cast %295 : vector<2x128xf32> to vector<2x1x128xf32>
    tpu.vector_store %arg8[%c0_84, %c6_85, %c0_86], %298 {strides = array<i32>} : memref<2x8x128xf32, #tpu.memory_space<vmem>>, vector<2x1x128xf32>,
    %c0_87 = arith.constant 0 : index
    %c7 = arith.constant 7 : index
    %c0_88 = arith.constant 0 : index
    %299 = vector.load %arg11[%c0_87, %c7, %c0_88] : memref<2x8x512xf32, #tpu.memory_space<vmem>>, vector<2x1x512xf32>
    %300 = vector.shape_cast %299 : vector<2x1x512xf32> to vector<2x512xf32>
    %301 = arith.truncf %292 : vector<2x128xf32> to vector<2x128xbf16>
    %cst_89 = arith.constant dense<0.000000e+00> : vector<2x512xf32>
    %302 = tpu.matmul %301, %8, %cst_89 {dimension_numbers = #tpu.dot_dimension_numbers<[1], [0], [0], [1], [0, 0, 1, 1], [], []>} : vector<2x128xbf16>, vector<128x512xbf16>, vector<2x512xf32> -> vector<2x512xf32>
    %303 = arith.addf %300, %302 : vector<2x512xf32>
    %304 = vector.extract_strided_slice %303 {offsets = [0, 0], sizes = [2, 128], strides = [1, 1]} : vector<2x512xf32> to vector<2x128xf32>
    %305 = arith.negf %304 : vector<2x128xf32>
    %306 = math.exp %305 : vector<2x128xf32>
    %cst_90 = arith.constant 1.000000e+00 : f32
    %307 = vector.broadcast %cst_90 : f32 to vector<2x128xf32>
    %308 = arith.addf %307, %306 : vector<2x128xf32>
    %309 = arith.divf %307, %308 : vector<2x128xf32>
    %310 = vector.extract_strided_slice %303 {offsets = [0, 128], sizes = [2, 128], strides = [1, 1]} : vector<2x512xf32> to vector<2x128xf32>
    %311 = arith.negf %310 : vector<2x128xf32>
    %312 = math.exp %311 : vector<2x128xf32>
    %cst_91 = arith.constant 1.000000e+00 : f32
    %313 = vector.broadcast %cst_91 : f32 to vector<2x128xf32>
    %314 = arith.addf %313, %312 : vector<2x128xf32>
    %315 = arith.divf %313, %314 : vector<2x128xf32>
    %316 = vector.extract_strided_slice %303 {offsets = [0, 256], sizes = [2, 128], strides = [1, 1]} : vector<2x512xf32> to vector<2x128xf32>
    %317 = math.tanh %316 : vector<2x128xf32>
    %318 = vector.extract_strided_slice %303 {offsets = [0, 384], sizes = [2, 128], strides = [1, 1]} : vector<2x512xf32> to vector<2x128xf32>
    %319 = arith.negf %318 : vector<2x128xf32>
    %320 = math.exp %319 : vector<2x128xf32>
    %cst_92 = arith.constant 1.000000e+00 : f32
    %321 = vector.broadcast %cst_92 : f32 to vector<2x128xf32>
    %322 = arith.addf %321, %320 : vector<2x128xf32>
    %323 = arith.divf %321, %322 : vector<2x128xf32>
    %324 = arith.mulf %315, %293 : vector<2x128xf32>
    %325 = arith.mulf %309, %317 : vector<2x128xf32>
    %326 = arith.addf %324, %325 : vector<2x128xf32>
    %327 = math.tanh %326 : vector<2x128xf32>
    %328 = arith.mulf %323, %327 : vector<2x128xf32>
    %c7_i32 = arith.constant 7 : i32
    %329 = vector.broadcast %c7_i32 : i32 to vector<2x1xi32>
    %330 = arith.cmpi sgt, %9, %329 : vector<2x1xi32>
    %331 = vector.shape_cast %330 : vector<2x1xi1> to vector<2x1xi1>
    %332 = vector.broadcast %331 : vector<2x1xi1> to vector<2x128xi1>
    %333 = arith.select %332, %328, %292 : vector<2x128xi1>, vector<2x128xf32>
    %334 = arith.select %332, %326, %293 : vector<2x128xi1>, vector<2x128xf32>
    %cst_93 = arith.constant 0.000000e+00 : f32
    %335 = vector.broadcast %cst_93 : f32 to vector<2x128xf32>
    %336 = arith.select %332, %328, %335 : vector<2x128xi1>, vector<2x128xf32>
    %c0_94 = arith.constant 0 : index
    %c7_95 = arith.constant 7 : index
    %c0_96 = arith.constant 0 : index
    %337 = vector.load %arg8[%c0_94, %c7_95, %c0_96] : memref<2x8x128xf32, #tpu.memory_space<vmem>>, vector<2x1x128xf32>
    %338 = vector.shape_cast %337 : vector<2x1x128xf32> to vector<2x128xf32>
    %339 = vector.shape_cast %336 : vector<2x128xf32> to vector<2x1x128xf32>
    tpu.vector_store %arg8[%c0_94, %c7_95, %c0_96], %339 {strides = array<i32>} : memref<2x8x128xf32, #tpu.memory_space<vmem>>, vector<2x1x128xf32>,
    %c0_97 = arith.constant 0 : index
    %c0_98 = arith.constant 0 : index
    %340 = vector.load %arg9[%c0_97, %c0_98] : memref<2x128xf32, #tpu.memory_space<vmem>>, vector<2x128xf32>
    tpu.vector_store %arg9[%c0_97, %c0_98], %333 {strides = array<i32>} : memref<2x128xf32, #tpu.memory_space<vmem>>, vector<2x128xf32>,
    %c0_99 = arith.constant 0 : index
    %c0_100 = arith.constant 0 : index
    %341 = vector.load %arg10[%c0_99, %c0_100] : memref<2x128xf32, #tpu.memory_space<vmem>>, vector<2x128xf32>
    tpu.vector_store %arg10[%c0_99, %c0_100], %334 {strides = array<i32>} : memref<2x128xf32, #tpu.memory_space<vmem>>, vector<2x128xf32>,
    return
  }
  func.func @transform_0(%arg0: i32) -> (i32, i32) {
    %c0_i32 = arith.constant 0 : i32
    %c0_i32_0 = arith.constant 0 : i32
    return %arg0, %c0_i32 : i32, i32
  }
  func.func @transform_1(%arg0: i32) -> (i32, i32) {
    %c0_i32 = arith.constant 0 : i32
    %c0_i32_0 = arith.constant 0 : i32
    return %arg0, %c0_i32 : i32, i32
  }
  func.func @transform_2(%arg0: i32) -> (i32, i32) {
    %c0_i32 = arith.constant 0 : i32
    %c0_i32_0 = arith.constant 0 : i32
    %c0_i32_1 = arith.constant 0 : i32
    return %c0_i32, %c0_i32_0 : i32, i32
  }
  func.func @transform_3(%arg0: i32) -> (i32, i32) {
    %c0_i32 = arith.constant 0 : i32
    %c0_i32_0 = arith.constant 0 : i32
    %c0_i32_1 = arith.constant 0 : i32
    return %c0_i32, %c0_i32_0 : i32, i32
  }
  func.func @transform_4(%arg0: i32) -> (i32, i32) {
    %c0_i32 = arith.constant 0 : i32
    %c0_i32_0 = arith.constant 0 : i32
    %c0_i32_1 = arith.constant 0 : i32
    return %c0_i32, %c0_i32_0 : i32, i32
  }
  func.func @transform_5(%arg0: i32) -> (i32, i32) {
    %c0_i32 = arith.constant 0 : i32
    %c0_i32_0 = arith.constant 0 : i32
    return %arg0, %c0_i32 : i32, i32
  }
  func.func @transform_6(%arg0: i32) -> (i32, i32) {
    %c0_i32 = arith.constant 0 : i32
    %c0_i32_0 = arith.constant 0 : i32
    return %arg0, %c0_i32 : i32, i32
  }
  func.func @transform_7(%arg0: i32) -> (i32, i32, i32) {
    %c0_i32 = arith.constant 0 : i32
    %c0_i32_0 = arith.constant 0 : i32
    %c0_i32_1 = arith.constant 0 : i32
    return %arg0, %c0_i32, %c0_i32_0 : i32, i32, i32
  }
  func.func @transform_8(%arg0: i32) -> (i32, i32) {
    %c0_i32 = arith.constant 0 : i32
    %c0_i32_0 = arith.constant 0 : i32
    return %arg0, %c0_i32 : i32, i32
  }
  func.func @transform_9(%arg0: i32) -> (i32, i32) {
    %c0_i32 = arith.constant 0 : i32
    %c0_i32_0 = arith.constant 0 : i32
    return %arg0, %c0_i32 : i32, i32
  }
}

</mosaic_0001>

<bundles_post_ra>
// kernel: encoder_forward.1
= control target key start
LH: loop header
LB: loop body
LE: loop exit
PB: predicated region body
PF: predicated region fallthrough
CT: control target
= control target key end

     0   :  { %vm72_vm0 = vcmask 130048   ;;  %s4279_s0 = inlined_call_operand.vmem [shape: bf16[16,16], index: 0, kind: input, shape index: {}]   ;;  %s4280_s1 = inlined_call_operand.vmem [shape: s32[2,1], index: 1, kind: input, shape index: {}]   ;;  %s4281_s2 = inlined_call_operand.vmem [shape: bf16[16,512], index: 2, kind: input, shape index: {}]   ;;  %s4282_s3 = inlined_call_operand.vmem [shape: bf16[128,512], index: 3, kind: input, shape index: {}]   ;;  %s4283_s4 = inlined_call_operand.vmem [shape: f32[1,512], index: 4, kind: input, shape index: {}]   ;;  %s4284_s5 = inlined_call_operand.vmem [shape: f32[2,128], index: 5, kind: input, shape index: {}, may-alias: {5,6}]   ;;  %s4285_s6 = inlined_call_operand.vmem [shape: f32[2,128], index: 6, kind: input, shape index: {}, may-alias: {5,6}]   ;;  %s4286_s7 = inlined_call_operand.hbm [shape: f32[2,8,128], index: 7, kind: output, shape index: {0}]   ;;  %s4287_s8 = inlined_call_operand.vmem [shape: f32[2,128], index: 8, kind: output, shape index: {1}]   ;;  %s4288_s9 = inlined_call_operand.vmem [shape: f32[2,128], index: 9, kind: output, shape index: {2}]  }
   0x1   :  { %v2382_v0 = vld [vmem:[%s4281_s2] sm:$0xf]  ;;  %v2579_v1 = vld [vmem:[%s4281_s2 + $0xc] sm:$0xf0]  ;;  %v2577_v2 = vld [vmem:[%s4281_s2 + $0x4] sm:$0xf] }
   0x2   :  { %v2383_v3 = vor.u32 %v2579_v1, %v2382_v0  ;;  %v2384_v4 = vld [vmem:[%s4281_s2 + $0x10] sm:$0xf0]  ;;  %v2390_v5 = vld [vmem:[%s4281_s2 + $0x8] sm:$0xf]  ;;  %v2580_v6 = vld [vmem:[%s4281_s2 + $0x14] sm:$0xf0] }
   0x3   :  { %v2387_v7 = vor.u32 %v2577_v2, %v2384_v4  ;;  %v2391_v8 = vor.u32 %v2580_v6, %v2390_v5  ;;  %v2578_v9 = vld [vmem:[%s4281_s2 + $0xc] sm:$0xf]  ;;  %v2392_v10 = vld [vmem:[%s4281_s2 + $0x18] sm:$0xf0]  ;;  %v2514_v11 = vld [vmem:[%s4282_s3 + $0xe0] sm:$0xf] }
   0x4   :  { %83 = vmatpush.bf16.msra.mxu0 %v2383_v3  ;;  %v2395_v12 = vor.u32 %v2578_v9, %v2392_v10  ;;  %v2611_v13 = vld [vmem:[%s4282_s3 + $0xec] sm:$0xf0]  ;;  %v2609_v14 = vld [vmem:[%s4282_s3 + $0xe4] sm:$0xf]  ;;  %v2516_v15 = vld [vmem:[%s4282_s3 + $0xf0] sm:$0xf0] }
   0x5   :  { %97 = vmatpush.bf16.msra.mxu1 %v2387_v7  ;;  %111 = vmatpush.bf16.msra.mxu2 %v2391_v8  ;;  %v2993_v16 = vor.u32 %v2611_v13, %v2514_v11  ;;  %v2995_v17 = vor.u32 %v2609_v14, %v2516_v15  ;;  %v2522_v18 = vld [vmem:[%s4282_s3 + $0xe8] sm:$0xf]  ;;  %v2612_v19 = vld [vmem:[%s4282_s3 + $0xf4] sm:$0xf0]  ;;  %v2610_v20 = vld [vmem:[%s4282_s3 + $0xec] sm:$0xf] }
   0x6   :  { %125 = vmatpush.bf16.msra.mxu3 %v2395_v12  ;;  %v3006_v21 = vor.u32 %v2612_v19, %v2522_v18  ;;  %v2524_v22 = vld [vmem:[%s4282_s3 + $0xf8] sm:$0xf0]  ;;  %v2498_v23 = vld [vmem:[%s4282_s3 + $0xc0] sm:$0xf]  ;;  %v2607_v24 = vld [vmem:[%s4282_s3 + $0xcc] sm:$0xf0] }
   0x7   :  { %v3019_v25 = vor.u32 %v2610_v20, %v2524_v22  ;;  %v3021_v26 = vor.u32 %v2607_v24, %v2498_v23  ;;  %v2605_v27 = vld [vmem:[%s4282_s3 + $0xc4] sm:$0xf]  ;;  %v2500_v28 = vld [vmem:[%s4282_s3 + $0xd0] sm:$0xf0]  ;;  %v2506_v29 = vld [vmem:[%s4282_s3 + $0xc8] sm:$0xf] }
   0x8   :  { %339 = vmatpush.bf16.msrb.mxu0 %v2993_v16  ;;  %v3033_v30 = vor.u32 %v2605_v27, %v2500_v28  ;;  %v2608_v31 = vld [vmem:[%s4282_s3 + $0xd4] sm:$0xf0]  ;;  %v2606_v32 = vld [vmem:[%s4282_s3 + $0xcc] sm:$0xf]  ;;  %v2508_v33 = vld [vmem:[%s4282_s3 + $0xd8] sm:$0xf0] }
   0x9   :  { %352 = vmatpush.bf16.msrb.mxu1 %v2995_v17  ;;  %365 = vmatpush.bf16.msrb.mxu2 %v3006_v21  ;;  %v3045_v34 = vor.u32 %v2608_v31, %v2506_v29  ;;  %v3047_v35 = vor.u32 %v2606_v32, %v2508_v33  ;;  %v2576_v36 = vld [vmem:[%s4279_s0] sm:$0xff]  ;;  %v2603_v38 = vld [vmem:[%s4282_s3 + $0xac] sm:$0xf0]  ;;  %v2484_v40 = vld [vmem:[%s4282_s3 + $0xb0] sm:$0xf0] }
   0xa   :  { %378 = vmatpush.bf16.msrb.mxu3 %v3019_v25  ;;  %v2482_v37 = vld [vmem:[%s4282_s3 + $0xa0] sm:$0xf]  ;;  %v2601_v39 = vld [vmem:[%s4282_s3 + $0xa4] sm:$0xf]  ;;  %v2490_v41 = vld [vmem:[%s4282_s3 + $0xa8] sm:$0xf]  ;;  %2398 = vmatmul.msk.bf16.vlgmr.msra.gmra.mxu2 %vm72_vm0, %v2576_v36 }
   0xb   :  { %v3069_v42 = vor.u32 %v2603_v38, %v2482_v37  ;;  %v3071_v43 = vor.u32 %v2601_v39, %v2484_v40  ;;  %v2604_v44 = vld [vmem:[%s4282_s3 + $0xb4] sm:$0xf0]  ;;  %v2602_v45 = vld [vmem:[%s4282_s3 + $0xac] sm:$0xf]  ;;  %v2492_v46 = vld [vmem:[%s4282_s3 + $0xb8] sm:$0xf0]  ;;  %2399 = vmatmul.msk.bf16.vlgmr.msra.gmra.mxu3 %vm72_vm0, %v2576_v36  ;;  %2396 = vmatmul.msk.bf16.vlgmr.msra.gmra.mxu0 %vm72_vm0, %v2576_v36 }
   0xc   :  { %340 = vmatpush.bf16.msrb.mxu0 %v3021_v26  ;;  %v3084_v47 = vor.u32 %v2604_v44, %v2490_v41  ;;  %v2466_v48 = vld [vmem:[%s4282_s3 + $0x80] sm:$0xf]  ;;  %v2599_v49 = vld [vmem:[%s4282_s3 + $0x8c] sm:$0xf0]  ;;  %v2597_v50 = vld [vmem:[%s4282_s3 + $0x84] sm:$0xf]  ;;  %v3097_v51 = vor.u32 %v2602_v45, %v2492_v46  ;;  %2397 = vmatmul.msk.bf16.vlgmr.msra.gmra.mxu1 %vm72_vm0, %v2576_v36 }
   0xd   :  { %353 = vmatpush.bf16.msrb.mxu1 %v3033_v30  ;;  %366 = vmatpush.bf16.msrb.mxu2 %v3045_v34  ;;  %v2468_v52 = vld [vmem:[%s4282_s3 + $0x90] sm:$0xf0]  ;;  %v2474_v53 = vld [vmem:[%s4282_s3 + $0x88] sm:$0xf]  ;;  %v2600_v54 = vld [vmem:[%s4282_s3 + $0x94] sm:$0xf0]  ;;  %v3118_v57 = vor.u32 %v2599_v49, %v2466_v48 }
   0xe   :  { %379 = vmatpush.bf16.msrb.mxu3 %v3047_v35  ;;  %v2598_v55 = vld [vmem:[%s4282_s3 + $0x8c] sm:$0xf]  ;;  %v2476_v56 = vld [vmem:[%s4282_s3 + $0x98] sm:$0xf0]  ;;  %v3120_v58 = vor.u32 %v2597_v50, %v2468_v52  ;;  %v2450_v59 = vld [vmem:[%s4282_s3 + $0x60] sm:$0xf]  ;;  %v3126_v60 = vor.u32 %v2600_v54, %v2474_v53 }
   0xf   :  { %v2595_v61 = vld [vmem:[%s4282_s3 + $0x6c] sm:$0xf0]  ;;  %v2593_v62 = vld [vmem:[%s4282_s3 + $0x64] sm:$0xf]  ;;  %v2452_v63 = vld [vmem:[%s4282_s3 + $0x70] sm:$0xf0]  ;;  %v3138_v0 = vor.u32 %v2598_v55, %v2476_v56 }
  0x10   :  { %341 = vmatpush.bf16.msrb.mxu0 %v3069_v42  ;;  %v2458_v1 = vld [vmem:[%s4282_s3 + $0x68] sm:$0xf]  ;;  %v2596_v2 = vld [vmem:[%s4282_s3 + $0x74] sm:$0xf0]  ;;  %v2594_v3 = vld [vmem:[%s4282_s3 + $0x6c] sm:$0xf]  ;;  %v3154_v5 = vor.u32 %v2595_v61, %v2450_v59  ;;  %v3156_v6 = vor.u32 %v2593_v62, %v2452_v63 }
  0x11   :  { %354 = vmatpush.bf16.msrb.mxu1 %v3071_v43  ;;  %367 = vmatpush.bf16.msrb.mxu2 %v3084_v47  ;;  %v2460_v4 = vld [vmem:[%s4282_s3 + $0x78] sm:$0xf0]  ;;  %v2434_v7 = vld [vmem:[%s4282_s3 + $0x40] sm:$0xf]  ;;  %v3162_v8 = vor.u32 %v2596_v2, %v2458_v1  ;;  %v2591_v9 = vld [vmem:[%s4282_s3 + $0x4c] sm:$0xf0] }
  0x12   :  { %380 = vmatpush.bf16.msrb.mxu3 %v3097_v51  ;;  %v2589_v10 = vld [vmem:[%s4282_s3 + $0x44] sm:$0xf]  ;;  %v2436_v11 = vld [vmem:[%s4282_s3 + $0x50] sm:$0xf0]  ;;  %v3174_v12 = vor.u32 %v2594_v3, %v2460_v4  ;;  %v2442_v13 = vld [vmem:[%s4282_s3 + $0x48] sm:$0xf]  ;;  %v3190_v19 = vor.u32 %v2591_v9, %v2434_v7 }
  0x13   :  { %v2592_v14 = vld [vmem:[%s4282_s3 + $0x54] sm:$0xf0]  ;;  %v2590_v15 = vld [vmem:[%s4282_s3 + $0x4c] sm:$0xf]  ;;  %v2444_v18 = vld [vmem:[%s4282_s3 + $0x58] sm:$0xf0]  ;;  %v3192_v20 = vor.u32 %v2589_v10, %v2436_v11 }
  0x14   :  { %342 = vmatpush.bf16.msrb.mxu0 %v3118_v57  ;;  %v2418_v22 = vld [vmem:[%s4282_s3 + $0x20] sm:$0xf]  ;;  %v2587_v23 = vld [vmem:[%s4282_s3 + $0x2c] sm:$0xf0]  ;;  %v3201_v24 = vor.u32 %v2592_v14, %v2442_v13  ;;  %v2585_v27 = vld [vmem:[%s4282_s3 + $0x24] sm:$0xf]  ;;  %v3213_v31 = vor.u32 %v2590_v15, %v2444_v18 }
  0x15   :  { %355 = vmatpush.bf16.msrb.mxu1 %v3120_v58  ;;  %368 = vmatpush.bf16.msrb.mxu2 %v3126_v60  ;;  %v2420_v28 = vld [vmem:[%s4282_s3 + $0x30] sm:$0xf0]  ;;  %v2426_v29 = vld [vmem:[%s4282_s3 + $0x28] sm:$0xf]  ;;  %v2588_v32 = vld [vmem:[%s4282_s3 + $0x34] sm:$0xf0] }
  0x16   :  { %381 = vmatpush.bf16.msrb.mxu3 %v3138_v0  ;;  %v2586_v33 = vld [vmem:[%s4282_s3 + $0x2c] sm:$0xf]  ;;  %v2428_v36 = vld [vmem:[%s4282_s3 + $0x38] sm:$0xf0]  ;;  %v4289_v37 = vmov 0  }
  0x17   :  { %2617 = vset.pattern.permute.xlu0 %v4289_v37  ;;  %v172_v38 = vld [vmem:[%s4280_s1] sm:$0x3]  ;;  %2618 = vset.pattern.permute.xlu1 %v4289_v37 }
  0x18   :  { %343 = vmatpush.bf16.msrb.mxu0 %v3154_v5 }
  0x19   :  { %356 = vmatpush.bf16.msrb.mxu1 %v3156_v6  ;;  %369 = vmatpush.bf16.msrb.mxu2 %v3162_v8 }
  0x1a   :  { %382 = vmatpush.bf16.msrb.mxu3 %v3174_v12 }
  0x1b   :  { %15 = vsyncpa [#allocation4], 0  ;;  %v3231_v39 = vor.u32 %v2587_v23, %v2418_v22  ;;  %v3233_v40 = vor.u32 %v2585_v27, %v2420_v28  ;;  %v2402_v41 = vld [vmem:[%s4282_s3] sm:$0xf]  ;;  %v2583_v44 = vld [vmem:[%s4282_s3 + $0xc] sm:$0xf0]  ;;  %v3242_v45 = vor.u32 %v2588_v32, %v2426_v29  ;;  %2619 = vset.pattern.permute.xlu2 %v4289_v37  ;;  %v3253_v50 = vor.u32 %v2586_v33, %v2428_v36 }
  0x1c   :  { %344 = vmatpush.bf16.msrb.mxu0 %v3190_v19  ;;  %vm558_vm1 = vcmp.gt.s32.totalorder %v172_v38, 0  ;;  %v2581_v46 = vld [vmem:[%s4282_s3 + $0x4] sm:$0xf]  ;;  %v2404_v48 = vld [vmem:[%s4282_s3 + $0x10] sm:$0xf0]  ;;  %v3269_v56 = vor.u32 %v2583_v44, %v2402_v41  ;;  %vm809_vm2 = vcmp.gt.s32.totalorder %v172_v38, 1 }
  0x1d   :  { %357 = vmatpush.bf16.msrb.mxu1 %v3192_v20  ;;  %370 = vmatpush.bf16.msrb.mxu2 %v3201_v24  ;;  %4310 = vst [vmem:[#allocation6_spill] sm:$0xff] %v3242_v45  ;;  %v559_v49 = vsel %vm558_vm1, 1, %v4289_v37  ;;  %v2410_v52 = vld [vmem:[%s4282_s3 + $0x8] sm:$0xf]  ;;  %v2584_v53 = vld [vmem:[%s4282_s3 + $0x14] sm:$0xf0]  ;;  %v3271_v59 = vor.u32 %v2581_v46, %v2404_v48 }
  0x1e   :  { %383 = vmatpush.bf16.msrb.mxu3 %v3213_v31  ;;  %4311 = vst [vmem:[#allocation7_spill] sm:$0xff] %v3253_v50  ;;  %561 = vperm.xlu0 %2617, %v559_v49   ;;  %v2582_v54 = vld [vmem:[%s4282_s3 + $0xc] sm:$0xf]  ;;  %v2412_v55 = vld [vmem:[%s4282_s3 + $0x18] sm:$0xf0]  ;;  %v3279_v62 = vor.u32 %v2584_v53, %v2410_v52  ;;  %v810_v2 = vsel %vm809_vm2, 1, %v4289_v37 }
  0x1f   :  { %4312 = vst [vmem:[#allocation8_spill] sm:$0xff] %v3269_v56  ;;  %v3276_v61 = vld [vmem:[%s4284_s5] sm:$0x3]  ;;  %v3282_v63 = vor.u32 %v2582_v54, %v2412_v55  ;;  %vm2064_vm3 = vcmp.gt.s32.totalorder %v172_v38, 6  ;;  %vm398_vm4 = vcmask 1040384   ;;  %vm404_vm5 = vcmask 1041409  }
  0x20   :  { %345 = vmatpush.bf16.msrb.mxu0 %v3231_v39  ;;  %4313 = vst [vmem:[#allocation9_spill] sm:$0xff] %v3271_v59  ;;  %v178_v1 = vpack.c.bf16 %v3276_v61, %v3276_v61  ;;  %v2065_v3 = vsel %vm2064_vm3, 1, %v4289_v37  ;;  %v37_v4 = vld [vmem:[%s4283_s4] sm:$0xf]  ;;  %vm400_vm6 = vcmask 1042434   ;;  %vm4304_vm7 = vcmask 1041408  }
  0x21   :  { %358 = vmatpush.bf16.msrb.mxu1 %v3233_v40  ;;  %371 = vmatpush.bf16.msrb.mxu2 %v3242_v45  ;;  %4314 = vst [vmem:[#allocation10_spill] sm:$0xff] %v3279_v62  ;;  %v39_v7 = vperm.slane %v37_v4, 0  ;;  %v40_v9 = vperm.slane %v37_v4, 1  ;;  %v42_v15 = vperm.slane %v37_v4, 3  ;;  %v41_v18 = vperm.slane %v37_v4, 2  ;;  %s2904_s27 = smov [#allocation3]  }
  0x22   :  { %384 = vmatpush.bf16.msrb.mxu3 %v3253_v50  ;;  %4315 = vst [vmem:[#allocation11_spill] sm:$0xff] %v3282_v63  ;;  %vm406_vm8 = vcmask 1043459   ;;  %vm4303_vm9 = vcmask 1042433   ;;  %s2354_s28 = sshll.u32 %s2904_s27, 4  ;;  %s2356_s10 = sshll.u32 %s4286_s7, 4  ;;  %s2355_s28 = int_to_ptr.vmem [resolvable:$true] %s2354_s28  ;;  %s2357_s10 = int_to_ptr.hbm [resolvable:$true] %s2356_s10 }
  0x23   :  { %s2906_s11 = smov 8  }
  0x24   :  { %346 = vmatpush.bf16.msrb.mxu0 %v3269_v56 }
  0x25   :  { %359 = vmatpush.bf16.msrb.mxu1 %v3271_v59  ;;  %372 = vmatpush.bf16.msrb.mxu2 %v3279_v62 }
  0x26   :  { %385 = vmatpush.bf16.msrb.mxu3 %v3282_v63  ;;  %812 = vperm.xlu0 %2617, %v810_v2  }
  0x27   :  { %347 = vmatmul.bf16.vlgmr.msrb.gmra.mxu0 %v178_v1 }
  0x28   :  { %596 = vmatpush.bf16.msra.mxu0 %v2993_v16  ;;  %360 = vmatmul.bf16.vlgmr.msrb.gmra.mxu1 %v178_v1 }
  0x29   :  { %373 = vmatmul.bf16.vlgmr.msrb.gmra.mxu2 %v178_v1  ;;  %609 = vmatpush.bf16.msra.mxu1 %v2995_v17 }
  0x2a   :  { %386 = vmatmul.bf16.vlgmr.msrb.gmra.mxu3 %v178_v1  ;;  %622 = vmatpush.bf16.msra.mxu2 %v3006_v21 }
  0x2b   :  { %635 = vmatpush.bf16.msra.mxu3 %v3019_v25 }
  0x2c   :  { %597 = vmatpush.bf16.msra.mxu0 %v3021_v26 }
  0x2d   :  { %610 = vmatpush.bf16.msra.mxu1 %v3033_v30 }
  0x2e   :  { %623 = vmatpush.bf16.msra.mxu2 %v3045_v34  ;;  %2067 = vperm.xlu0 %2617, %v2065_v3  }
  0x2f   :  { %636 = vmatpush.bf16.msra.mxu3 %v3047_v35 }
  0x30   :  { %598 = vmatpush.bf16.msra.mxu0 %v3069_v42 }
  0x31   :  { %611 = vmatpush.bf16.msra.mxu1 %v3071_v43 }
  0x32   :  { %624 = vmatpush.bf16.msra.mxu2 %v3084_v47 }
  0x33   :  { %637 = vmatpush.bf16.msra.mxu3 %v3097_v51 }
  0x34   :  { %599 = vmatpush.bf16.msra.mxu0 %v3118_v57 }
  0x35   :  { %612 = vmatpush.bf16.msra.mxu1 %v3120_v58 }
  0x36   :  { %625 = vmatpush.bf16.msra.mxu2 %v3126_v60 }
  0x37   :  { %638 = vmatpush.bf16.msra.mxu3 %v3138_v0 }
  0x38   :  { %600 = vmatpush.bf16.msra.mxu0 %v3154_v5 }
  0x39   :  { %613 = vmatpush.bf16.msra.mxu1 %v3156_v6 }
  0x3a   :  { %626 = vmatpush.bf16.msra.mxu2 %v3162_v8 }
  0x3b   :  { %639 = vmatpush.bf16.msra.mxu3 %v3174_v12 }
  0x3c   :  { %601 = vmatpush.bf16.msra.mxu0 %v3190_v19 }
  0x3d   :  { %614 = vmatpush.bf16.msra.mxu1 %v3192_v20 }
  0x3e   :  { %627 = vmatpush.bf16.msra.mxu2 %v3201_v24 }
  0x3f   :  { %640 = vmatpush.bf16.msra.mxu3 %v3213_v31 }
  0x40   :  { %602 = vmatpush.bf16.msra.mxu0 %v3231_v39 }
  0x41   :  { %615 = vmatpush.bf16.msra.mxu1 %v3233_v40 }
  0x42   :  { %628 = vmatpush.bf16.msra.mxu2 %v3242_v45 }
  0x43   :  { %641 = vmatpush.bf16.msra.mxu3 %v3253_v50 }
  0x44   :  { %603 = vmatpush.bf16.msra.mxu0 %v3269_v56 }
  0x45   :  { %616 = vmatpush.bf16.msra.mxu1 %v3271_v59 }
  0x46   :  { %629 = vmatpush.bf16.msra.mxu2 %v3279_v62 }
  0x47   :  { %642 = vmatpush.bf16.msra.mxu3 %v3282_v63 }
  0x48   :  { %847 = vmatpush.bf16.msrb.mxu0 %v2993_v16 }
  0x49   :  { %860 = vmatpush.bf16.msrb.mxu1 %v2995_v17 }
  0x4a   :  { %873 = vmatpush.bf16.msrb.mxu2 %v3006_v21 }
  0x4b   :  { %886 = vmatpush.bf16.msrb.mxu3 %v3019_v25 }
  0x4c   :  { %848 = vmatpush.bf16.msrb.mxu0 %v3021_v26 }
  0x4d   :  { %861 = vmatpush.bf16.msrb.mxu1 %v3033_v30 }
  0x4e   :  { %874 = vmatpush.bf16.msrb.mxu2 %v3045_v34 }
  0x4f   :  { %887 = vmatpush.bf16.msrb.mxu3 %v3047_v35 }
  0x50   :  { %849 = vmatpush.bf16.msrb.mxu0 %v3069_v42 }
  0x51   :  { %862 = vmatpush.bf16.msrb.mxu1 %v3071_v43 }
  0x52   :  { %875 = vmatpush.bf16.msrb.mxu2 %v3084_v47 }
  0x53   :  { %888 = vmatpush.bf16.msrb.mxu3 %v3097_v51 }
  0x54   :  { %850 = vmatpush.bf16.msrb.mxu0 %v3118_v57 }
  0x55   :  { %863 = vmatpush.bf16.msrb.mxu1 %v3120_v58 }
  0x56   :  { %876 = vmatpush.bf16.msrb.mxu2 %v3126_v60 }
  0x57   :  { %889 = vmatpush.bf16.msrb.mxu3 %v3138_v0 }
  0x58   :  { %851 = vmatpush.bf16.msrb.mxu0 %v3154_v5 }
  0x59   :  { %864 = vmatpush.bf16.msrb.mxu1 %v3156_v6 }
  0x5a   :  { %877 = vmatpush.bf16.msrb.mxu2 %v3162_v8 }
  0x5b   :  { %890 = vmatpush.bf16.msrb.mxu3 %v3174_v12 }
  0x5c   :  { %852 = vmatpush.bf16.msrb.mxu0 %v3190_v19 }
  0x5d   :  { %865 = vmatpush.bf16.msrb.mxu1 %v3192_v20 }
  0x5e   :  { %878 = vmatpush.bf16.msrb.mxu2 %v3201_v24 }
  0x5f   :  { %891 = vmatpush.bf16.msrb.mxu3 %v3213_v31 }
  0x60   :  { %853 = vmatpush.bf16.msrb.mxu0 %v3231_v39 }
  0x61   :  { %866 = vmatpush.bf16.msrb.mxu1 %v3233_v40 }
  0x62   :  { %879 = vmatpush.bf16.msrb.mxu2 %v3242_v45 }
  0x63   :  { %892 = vmatpush.bf16.msrb.mxu3 %v3253_v50 }
  0x64   :  { %854 = vmatpush.bf16.msrb.mxu0 %v3269_v56 }
  0x65   :  { %867 = vmatpush.bf16.msrb.mxu1 %v3271_v59 }
  0x66   :  { %880 = vmatpush.bf16.msrb.mxu2 %v3279_v62 }
  0x67   :  { %893 = vmatpush.bf16.msrb.mxu3 %v3282_v63 }
  0x88   :  { %v85_v10 = vpop.f32.mrf.mxu0 }
  0x89   :  { %v99_v11 = vpop.f32.mrf.mxu1  ;;  %v86_v13 = vadd.f32 %v85_v10, %v39_v7 }
  0x8a   :  { %v100_v14 = vadd.f32 %v99_v11, %v40_v9 }
  0x8b   :  { %132 = vst [vmem:[#allocation2] sm:$0xff] %v86_v13 }
  0x8c   :  { %133 = vst [vmem:[#allocation2 + $0x8] sm:$0xff] %v100_v14 }
  0x8d   :  { %v113_v23 = vpop.f32.mrf.mxu2 }
  0x8e   :  { %v127_v22 = vpop.f32.mrf.mxu3  ;;  %v114_v28 = vadd.f32 %v113_v23, %v41_v18 }
  0x8f   :  { %v128_v27 = vadd.f32 %v127_v22, %v42_v15 }
  0x90   :  { %134 = vst [vmem:[#allocation2 + $0x10] sm:$0xff] %v114_v28  ;;  %v87_v29 = vpop.f32.mrf.mxu0 }
  0x91   :  { %135 = vst [vmem:[#allocation2 + $0x18] sm:$0xff] %v128_v27  ;;  %v101_v32 = vpop.f32.mrf.mxu1  ;;  %v88_v33 = vadd.f32 %v87_v29, %v39_v7 }
  0x92   :  { %v102_v36 = vadd.f32 %v101_v32, %v40_v9 }
  0x93   :  { %136 = vst [vmem:[#allocation2 + $0x20] sm:$0xff] %v88_v33 }
  0x94   :  { %137 = vst [vmem:[#allocation2 + $0x28] sm:$0xff] %v102_v36 }
  0x95   :  { %v115_v41 = vpop.f32.mrf.mxu2 }
  0x96   :  { %v129_v38 = vpop.f32.mrf.mxu3  ;;  %v116_v46 = vadd.f32 %v115_v41, %v41_v18 }
  0x97   :  { %v130_v44 = vadd.f32 %v129_v38, %v42_v15 }
  0x98   :  { %138 = vst [vmem:[#allocation2 + $0x30] sm:$0xff] %v116_v46  ;;  %v175_v11 = vld [vmem:[#allocation2] ss:$8 sm:$0xf] }
  0x99   :  { %139 = vst [vmem:[#allocation2 + $0x38] sm:$0xff] %v130_v44 }
  0xa0   :  { %v177_v22 = vld [vmem:[#allocation2 + $0x20] ss:$8 sm:$0xf] }
  0xa4   :  { %v348_v48 = vpop.f32.mrf.mxu0 }
  0xa5   :  { %v361_v49 = vpop.f32.mrf.mxu1 }
  0xa6   :  { %v395_v52 = vrot.slane %v361_v49, 7 }
  0xa8   :  { %v399_v2 = vsel %vm398_vm4, %v348_v48, %v395_v52  ;;  %v405_v3 = vsel %vm404_vm5, %v348_v48, %v395_v52 }
  0xac   :  { %v374_v53 = vpop.f32.mrf.mxu2  ;;  %v350_v1 = vpop.f32.mrf.mxu0 }
  0xad   :  { %v396_v54 = vrot.slane %v374_v53, 6  ;;  %v387_v55 = vpop.f32.mrf.mxu3  ;;  %v363_v7 = vpop.f32.mrf.mxu1 }
  0xae   :  { %v397_v4 = vrot.slane %v387_v55, 5 }
  0xb0   :  { %v401_v9 = vsel %vm400_vm6, %v396_v54, %v397_v4  ;;  %v407_v10 = vsel %vm406_vm8, %v396_v54, %v397_v4 }
  0xb1   :  { %v403_v13 = vsel %vm4304_vm7, %v399_v2, %v401_v9  ;;  %v409_v14 = vsel %vm4303_vm9, %v405_v3, %v407_v10 }
  0xb2   :  { %v410_v15 = vrot.slane %v409_v14, 1  ;;  %v413_v18 = vadd.f32 %v403_v13, %v175_v11  ;;  %v3379_v14 = vld [vmem:[%s4285_s6] sm:$0x3] }
  0xb4   :  { %v414_v23 = vadd.f32 %v410_v15, %v177_v22  ;;  %v2528_v27 = vmul.f32 -1.442695, %v413_v18  ;;  %v455_v28 = vrot.slane %v413_v18, 1  ;;  %v376_v29 = vpop.f32.mrf.mxu2  ;;  %v503_v32 = vrot.slane %v413_v18, 3 }
  0xb5   :  { %v389_v33 = vpop.f32.mrf.mxu3  ;;  %v497_v53 = vrot.slane %v413_v18, 2 }
  0xb6   :  { %2620 = vpow2.f32 %v2528_v27  ;;  %v2529_v36 = vmul.f32 -1.442695, %v414_v23  ;;  %v456_v38 = vrot.slane %v414_v23, 1  ;;  %v2530_v41 = vmul.f32 -1.442695, %v455_v28 }
  0xb7   :  { %v504_v44 = vrot.slane %v414_v23, 3  ;;  %v2532_v48 = vmul.f32 -1.442695, %v503_v32  ;;  %v498_v7 = vrot.slane %v414_v23, 2 }
  0xb8   :  { %2622 = vpow2.f32 %v2529_v36  ;;  %v2531_v46 = vmul.f32 -1.442695, %v456_v38 }
  0xb9   :  { %2624 = vpow2.f32 %v2530_v41  ;;  %v2533_v49 = vmul.f32 -1.442695, %v504_v44 }
  0xba   :  { %2626 = vpow2.f32 %v2531_v46 }
  0xbb   :  { %2628 = vpow2.f32 %v2532_v48 }
  0xbc   :  { %v2621_v52 = vpop.eup %2620  ;;  %2630 = vpow2.f32 %v2533_v49 }
  0xbd   :  { %v421_v54 = vadd.f32 1.0, %v2621_v52 }
  0xbe   :  { %v2623_v55 = vpop.eup %2622 }
  0xbf   :  { %v2625_v1 = vpop.eup %2624  ;;  %v3365_v2 = vadd.f32 1.0, %v2623_v55  ;;  %2632 = vrcp.f32 %v421_v54  ;;  %v432_v15 = vand.u32 2147483647, %v421_v54  ;;  %v434_v18 = vand.u32 2147483648, %v421_v54 }
  0xc0   :  { %v2627_v3 = vpop.eup %2626  ;;  %v3367_v4 = vadd.f32 1.0, %v2625_v1  ;;  %2634 = vtanh.f32 %v497_v53  ;;  %vm428_vm10 = vweird.f32 %v421_v54 }
  0xc1   :  { %2636 = vrcp.f32 %v3365_v2  ;;  %v3370_v9 = vadd.f32 1.0, %v2627_v3  ;;  %v2629_v10 = vpop.eup %2628  ;;  %v447_v27 = vand.u32 2147483647, %v3365_v2  ;;  %vm3389_vm11 = vcmp.eq.f32.partialorder %v432_v15, 8.507059e+37 }
  0xc2   :  { %2638 = vrcp.f32 %v3367_v4  ;;  %v2631_v11 = vpop.eup %2630  ;;  %v3374_v13 = vadd.f32 1.0, %v2629_v10  ;;  %v435_v38 = vor.u32 1.1754944e-38, %v434_v18  ;;  %vm443_vm12 = vweird.f32 %v3365_v2 }
  0xc3   :  { %2640 = vrcp.f32 %v3370_v9  ;;  %v3381_v22 = vadd.f32 1.0, %v2631_v11  ;;  %v449_v48 = vand.u32 2147483648, %v3365_v2  ;;  %vm472_vm13 = vweird.f32 %v3367_v4 }
  0xc4   :  { %2642 = vtanh.f32 %v498_v7  ;;  %vm3397_vm14 = vcmp.eq.f32.partialorder %v447_v27, 8.507059e+37  ;;  %v476_v55 = vand.u32 2147483647, %v3367_v4  ;;  %v478_v1 = vand.u32 2147483648, %v3367_v4 }
  0xc5   :  { %v2633_v23 = vpop.eup %2632  ;;  %2644 = vrcp.f32 %v3374_v13  ;;  %v491_v27 = vand.u32 2147483647, %v3370_v9  ;;  %vm487_vm7 = vweird.f32 %v3370_v9 }
  0xc6   :  { %v3385_v28 = vpop.eup %2634  ;;  %2646 = vrcp.f32 %v3381_v22  ;;  %v424_v32 = vmul.f32 %v2633_v23, %v421_v54  ;;  %vm429_vm15 = vweird.f32 %v2633_v23 }
  0xc7   :  { %v2637_v33 = vpop.eup %2636  ;;  %vm430_vm1 = vmor %vm428_vm10, %vm429_vm15  ;;  %vm477_vm15 = vcmp.eq.f32.partialorder %v476_v55, 8.507059e+37 }
  0xc8   :  { %v2639_v41 = vpop.eup %2638  ;;  %v425_v44 = vsub.f32 1.0, %v424_v32  ;;  %v439_v46 = vmul.f32 %v2637_v33, %v3365_v2  ;;  %vm444_vm0 = vweird.f32 %v2637_v33  ;;  %v493_v32 = vand.u32 2147483648, %v3370_v9 }
  0xc9   :  { %v2641_v49 = vpop.eup %2640  ;;  %v468_v53 = vmul.f32 %v2639_v41, %v3367_v4  ;;  %vm473_vm2 = vweird.f32 %v2639_v41  ;;  %vm445_vm9 = vmor %vm443_vm12, %vm444_vm0  ;;  %vm492_vm0 = vcmp.eq.f32.partialorder %v491_v27, 8.507059e+37  ;;  %v541_v27 = vand.u32 2147483648, %v3381_v22 }
  0xca   :  { %v2643_v3 = vpop.eup %2642  ;;  %v426_v7 = vmul.f32 %v2633_v23, %v425_v44  ;;  %v440_v10 = vsub.f32 1.0, %v439_v46  ;;  %v483_v11 = vmul.f32 %v2641_v49, %v3370_v9  ;;  %vm488_vm3 = vweird.f32 %v2641_v49  ;;  %vm474_vm10 = vmor %vm472_vm13, %vm473_vm2 }
  0xcb   :  { %v3405_v15 = vpop.eup %2644  ;;  %v469_v18 = vsub.f32 1.0, %v468_v53  ;;  %vm489_vm12 = vmor %vm487_vm7, %vm488_vm3  ;;  %v494_v2 = vor.u32 1.1754944e-38, %v493_v32 }
  0xcc   :  { %v3409_v37 = vpop.eup %2646  ;;  %v427_v29 = vadd.f32 %v2633_v23, %v426_v7  ;;  %v441_v63 = vmul.f32 %v2637_v33, %v440_v10  ;;  %v484_v62 = vsub.f32 1.0, %v483_v11  ;;  %v516_v44 = vmul.f32 %v3405_v15, %v3374_v13 }
  0xcd   :  { %v470_v46 = vmul.f32 %v2639_v41, %v469_v18  ;;  %v531_v53 = vmul.f32 %v3409_v37, %v3381_v22  ;;  %v450_v7 = vor.u32 1.1754944e-38, %v449_v48  ;;  %vm521_vm7 = vweird.f32 %v3405_v15 }
  0xce   :  { %v431_v59 = vsel %vm430_vm1, %v2633_v23, %v427_v29  ;;  %v442_v56 = vadd.f32 %v2637_v33, %v441_v63  ;;  %v485_v50 = vmul.f32 %v2641_v49, %v484_v62  ;;  %v517_v45 = vsub.f32 1.0, %v516_v44 }
  0xcf   :  { %v471_v10 = vadd.f32 %v2639_v41, %v470_v46  ;;  %v532_v54 = vsub.f32 1.0, %v531_v53  ;;  %v436_v11 = vsel %vm3389_vm11, %v435_v38, %v431_v59  ;;  %v479_v23 = vor.u32 1.1754944e-38, %v478_v1 }
  0xd0   :  { %v446_v18 = vsel %vm445_vm9, %v2637_v33, %v442_v56  ;;  %v486_v63 = vadd.f32 %v2641_v49, %v485_v50  ;;  %v518_v36 = vmul.f32 %v3405_v15, %v517_v45  ;;  %v550_v50 = vmul.f32 %v3385_v28, %v436_v11 }
  0xd1   :  { %v451_v62 = vsel %vm3397_vm14, %v450_v7, %v446_v18  ;;  %v475_v29 = vsel %vm474_vm10, %v2639_v41, %v471_v10  ;;  %v533_v56 = vmul.f32 %v3409_v37, %v532_v54  ;;  %v4320_v33 = vrot.slane %v3379_v14, 1 }
  0xd2   :  { %v480_v48 = vsel %vm477_vm15, %v479_v23, %v475_v29  ;;  %v490_v9 = vsel %vm489_vm12, %v2641_v49, %v486_v63  ;;  %v551_v41 = vmul.f32 %v2643_v3, %v451_v62  ;;  %v519_v55 = vadd.f32 %v3405_v15, %v518_v36  ;;  %v3445_v23 = vpop.permute.xlu0 %561  ;;  %v4324_v36 = vld [vmem:[#allocation9_spill] sm:$0xff] }
  0xd3   :  { %v495_v59 = vsel %vm492_vm0, %v494_v2, %v490_v9  ;;  %v548_v4 = vmul.f32 %v480_v48, %v3379_v14  ;;  %v526_v1 = vand.u32 2147483648, %v3374_v13  ;;  %v534_v45 = vadd.f32 %v3409_v37, %v533_v56  ;;  %v4321_v2 = vld [vmem:[#allocation6_spill] sm:$0xff]  ;;  %v4322_v48 = vld [vmem:[#allocation7_spill] sm:$0xff]  ;;  %v4323_v9 = vld [vmem:[#allocation8_spill] sm:$0xff] }
  0xd4   :  { %v549_v38 = vmul.f32 %v4320_v33, %v495_v59  ;;  %vm536_vm9 = vweird.f32 %v3409_v37  ;;  %vm520_vm11 = vweird.f32 %v3374_v13  ;;  %v524_v28 = vand.u32 2147483647, %v3374_v13  ;;  %v4325_v59 = vld [vmem:[#allocation10_spill] sm:$0xff]  ;;  %v4326_v56 = vld [vmem:[#allocation11_spill] sm:$0xff] }
  0xd5   :  { %v552_v52 = vadd.f32 %v550_v50, %v548_v4  ;;  %vm522_vm13 = vmor %vm520_vm11, %vm521_vm7  ;;  %vm535_vm14 = vweird.f32 %v3381_v22  ;;  %v539_v3 = vand.u32 2147483647, %v3381_v22  ;;  %v527_v44 = vor.u32 1.1754944e-38, %v526_v1 }
  0xd6   :  { %v553_v49 = vadd.f32 %v551_v41, %v549_v38  ;;  %v523_v32 = vsel %vm522_vm13, %v3405_v15, %v519_v55  ;;  %vm537_vm1 = vmor %vm535_vm14, %vm536_vm9  ;;  %vm525_vm2 = vcmp.eq.f32.partialorder %v524_v28, 8.507059e+37  ;;  %v542_v53 = vor.u32 1.1754944e-38, %v541_v27 }
  0xd7   :  { %2648 = vtanh.f32 %v552_v52  ;;  %v538_v46 = vsel %vm537_vm1, %v3409_v37, %v534_v45  ;;  %v528_v10 = vsel %vm525_vm2, %v527_v44, %v523_v32  ;;  %vm540_vm3 = vcmp.eq.f32.partialorder %v539_v3, 8.507059e+37  ;;  %v592_v32 = vld [vmem:[#allocation2 + $0x1] ss:$8 sm:$0xf] }
  0xd8   :  { %2650 = vtanh.f32 %v553_v49  ;;  %v543_v54 = vsel %vm540_vm3, %v542_v53, %v538_v46  ;;  %vm563_vm10 = vcmp.eq.s32.totalorder %v3445_v23, 1  ;;  %vm4327_vm15 = vcmask 1041408  }
  0xd9   :  { %vm4328_vm12 = vcmask 1042433  }
  0xdd   :  { %v2649_v7 = vpop.eup %2648 }
  0xde   :  { %v2651_v13 = vpop.eup %2650  ;;  %v556_v11 = vmul.f32 %v2649_v7, %v528_v10  ;;  %v594_v10 = vld [vmem:[#allocation2 + $0x21] ss:$8 sm:$0xf] }
  0xdf   :  { %v557_v18 = vmul.f32 %v2651_v13, %v543_v54 }
  0xe0   :  { %566 = vst [vmem:[#allocation1] ss:$9 sm:$0xff] %v556_v11 }
  0xe1   :  { %568 = vst [vmem:[#allocation1 + $0x1] ss:$9 sm:$0xff] %v557_v18 }
  0xe8   :  { %v569_v22 = vld [vmem:[#allocation1] sm:$0xff] }
  0xe9   :  { %v3451_v37 = vsel %vm563_vm10, %v569_v22, %v3276_v61  ;;  %574 = vst [vmem:[#allocation1] ss:$9 sm:$0xff] %v552_v52 }
  0xea   :  { %576 = vst [vmem:[#allocation1 + $0x1] ss:$9 sm:$0xff] %v553_v49  ;;  %v595_v15 = vpack.c.bf16 %v3451_v37, %v3451_v37 }
  0xec   :  { %604 = vmatmul.bf16.vlgmr.msra.gmra.mxu0 %v595_v15  ;;  %617 = vmatmul.bf16.vlgmr.msra.gmra.mxu1 %v595_v15 }
  0xed   :  { %630 = vmatmul.bf16.vlgmr.msra.gmra.mxu2 %v595_v15  ;;  %643 = vmatmul.bf16.vlgmr.msra.gmra.mxu3 %v595_v15 }
  0xee   :  { %1098 = vmatpush.bf16.msra.mxu0 %v2993_v16  ;;  %1111 = vmatpush.bf16.msra.mxu1 %v2995_v17 }
  0xef   :  { %1124 = vmatpush.bf16.msra.mxu2 %v3006_v21  ;;  %1137 = vmatpush.bf16.msra.mxu3 %v3019_v25 }
  0xf1   :  { %v3459_v63 = vld [vmem:[#allocation1] sm:$0xff] }
  0xf2   :  { %580 = vst [vmem:[#allocation1] ss:$9 sm:$0xff] %v556_v11  ;;  %1099 = vmatpush.bf16.msra.mxu0 %v3021_v26  ;;  %1112 = vmatpush.bf16.msra.mxu1 %v3033_v30 }
  0xf3   :  { %582 = vst [vmem:[#allocation1 + $0x1] ss:$9 sm:$0xff] %v557_v18  ;;  %1125 = vmatpush.bf16.msra.mxu2 %v3045_v34  ;;  %1138 = vmatpush.bf16.msra.mxu3 %v3047_v35 }
  0xf6   :  { %1100 = vmatpush.bf16.msra.mxu0 %v3069_v42  ;;  %1113 = vmatpush.bf16.msra.mxu1 %v3071_v43 }
  0xf7   :  { %1126 = vmatpush.bf16.msra.mxu2 %v3084_v47  ;;  %1139 = vmatpush.bf16.msra.mxu3 %v3097_v51 }
  0xfa   :  { %v583_v61 = vld [vmem:[#allocation1] sm:$0xff]  ;;  %1101 = vmatpush.bf16.msra.mxu0 %v3118_v57  ;;  %1114 = vmatpush.bf16.msra.mxu1 %v3120_v58 }
  0xfb   :  { %v585_v62 = vsel %vm563_vm10, %v583_v61, 0.0  ;;  %1127 = vmatpush.bf16.msra.mxu2 %v3126_v60  ;;  %1140 = vmatpush.bf16.msra.mxu3 %v3138_v0 }
  0xfc   :  { %v587_v29 = vrot.slane %v585_v62, 1  ;;  %589 = vst [vmem:[#allocation3] sm:$0x1] %v585_v62 }
  0xfe   :  { %590 = vst [vmem:[#allocation3 + $0x8] sm:$0x1] %v587_v29  ;;  %1102 = vmatpush.bf16.msra.mxu0 %v3154_v5  ;;  %1115 = vmatpush.bf16.msra.mxu1 %v3156_v6 }
  0xff   :  { %1128 = vmatpush.bf16.msra.mxu2 %v3162_v8  ;;  %1141 = vmatpush.bf16.msra.mxu3 %v3174_v12 }
 0x102   :  { %1103 = vmatpush.bf16.msra.mxu0 %v3190_v19  ;;  %1116 = vmatpush.bf16.msra.mxu1 %v3192_v20 }
 0x103   :  { %1129 = vmatpush.bf16.msra.mxu2 %v3201_v24  ;;  %1142 = vmatpush.bf16.msra.mxu3 %v3213_v31 }
 0x106   :  { %1104 = vmatpush.bf16.msra.mxu0 %v3231_v39  ;;  %1117 = vmatpush.bf16.msra.mxu1 %v3233_v40 }
 0x107   :  { %1130 = vmatpush.bf16.msra.mxu2 %v4321_v2  ;;  %1143 = vmatpush.bf16.msra.mxu3 %v4322_v48 }
 0x10a   :  { %1105 = vmatpush.bf16.msra.mxu0 %v4323_v9  ;;  %1118 = vmatpush.bf16.msra.mxu1 %v4324_v36 }
 0x10b   :  { %1131 = vmatpush.bf16.msra.mxu2 %v4325_v59  ;;  %1144 = vmatpush.bf16.msra.mxu3 %v4326_v56 }
 0x169   :  { %v605_v4 = vpop.f32.mrf.mxu0  ;;  %v618_v50 = vpop.f32.mrf.mxu1 }
 0x16a   :  { %v652_v33 = vrot.slane %v618_v50, 7 }
 0x16c   :  { %v655_v45 = vsel %vm398_vm4, %v605_v4, %v652_v33  ;;  %v658_v28 = vsel %vm404_vm5, %v605_v4, %v652_v33 }
 0x170   :  { %v631_v38 = vpop.f32.mrf.mxu2  ;;  %v644_v41 = vpop.f32.mrf.mxu3 }
 0x171   :  { %v653_v52 = vrot.slane %v631_v38, 6  ;;  %v654_v55 = vrot.slane %v644_v41, 5  ;;  %v607_v49 = vpop.f32.mrf.mxu0  ;;  %v620_v1 = vpop.f32.mrf.mxu1 }
 0x173   :  { %v656_v27 = vsel %vm400_vm6, %v653_v52, %v654_v55  ;;  %v659_v3 = vsel %vm406_vm8, %v653_v52, %v654_v55 }
 0x174   :  { %v657_v44 = vsel %vm4327_vm15, %v655_v45, %v656_v27  ;;  %v660_v46 = vsel %vm4328_vm12, %v658_v28, %v659_v3 }
 0x175   :  { %v661_v53 = vrot.slane %v660_v46, 1  ;;  %v664_v7 = vadd.f32 %v657_v44, %v592_v32 }
 0x177   :  { %v665_v13 = vadd.f32 %v661_v53, %v594_v10  ;;  %v2534_v54 = vmul.f32 -1.442695, %v664_v7  ;;  %v706_v11 = vrot.slane %v664_v7, 1  ;;  %v754_v18 = vrot.slane %v664_v7, 3 }
 0x178   :  { %v633_v22 = vpop.f32.mrf.mxu2  ;;  %v646_v15 = vpop.f32.mrf.mxu3  ;;  %v748_v27 = vrot.slane %v664_v7, 2  ;;  %v3509_v53 = vsel %vm563_vm10, %v3459_v63, %v3379_v14 }
 0x179   :  { %2652 = vpow2.f32 %v2534_v54  ;;  %v2535_v61 = vmul.f32 -1.442695, %v665_v13  ;;  %v707_v62 = vrot.slane %v665_v13, 1  ;;  %v2536_v29 = vmul.f32 -1.442695, %v706_v11 }
 0x17a   :  { %v755_v4 = vrot.slane %v665_v13, 3  ;;  %v2538_v33 = vmul.f32 -1.442695, %v754_v18  ;;  %v749_v44 = vrot.slane %v665_v13, 2 }
 0x17b   :  { %2654 = vpow2.f32 %v2535_v61  ;;  %v2537_v50 = vmul.f32 -1.442695, %v707_v62 }
 0x17c   :  { %2656 = vpow2.f32 %v2536_v29  ;;  %v2539_v38 = vmul.f32 -1.442695, %v755_v4 }
 0x17d   :  { %2658 = vpow2.f32 %v2537_v50 }
 0x17e   :  { %2660 = vpow2.f32 %v2538_v33 }
 0x17f   :  { %v2653_v41 = vpop.eup %2652  ;;  %2662 = vpow2.f32 %v2539_v38 }
 0x180   :  { %v672_v52 = vadd.f32 1.0, %v2653_v41 }
 0x181   :  { %v2655_v55 = vpop.eup %2654 }
 0x182   :  { %v2657_v49 = vpop.eup %2656  ;;  %v3497_v1 = vadd.f32 1.0, %v2655_v55  ;;  %2664 = vrcp.f32 %v672_v52  ;;  %v683_v10 = vand.u32 2147483647, %v672_v52  ;;  %v685_v54 = vand.u32 2147483648, %v672_v52 }
 0x183   :  { %v2659_v45 = vpop.eup %2658  ;;  %v3499_v28 = vadd.f32 1.0, %v2657_v49  ;;  %vm679_vm0 = vweird.f32 %v672_v52 }
 0x184   :  { %2666 = vrcp.f32 %v3497_v1  ;;  %v2661_v3 = vpop.eup %2660  ;;  %v3502_v32 = vadd.f32 1.0, %v2659_v45  ;;  %v698_v7 = vand.u32 2147483647, %v3497_v1  ;;  %vm3518_vm7 = vcmp.eq.f32.partialorder %v683_v10, 8.507059e+37 }
 0x185   :  { %2668 = vrcp.f32 %v3499_v28  ;;  %v2663_v46 = vpop.eup %2662  ;;  %v3513_v18 = vadd.f32 1.0, %v2661_v3  ;;  %v700_v23 = vand.u32 2147483648, %v3497_v1  ;;  %v686_v29 = vor.u32 1.1754944e-38, %v685_v54 }
 0x186   :  { %2670 = vrcp.f32 %v3502_v32  ;;  %v3516_v15 = vadd.f32 1.0, %v2663_v46  ;;  %vm694_vm9 = vweird.f32 %v3497_v1  ;;  %vm3526_vm11 = vcmp.eq.f32.partialorder %v698_v7, 8.507059e+37 }
 0x187   :  { %2672 = vtanh.f32 %v748_v27  ;;  %vm723_vm13 = vweird.f32 %v3499_v28  ;;  %v727_v49 = vand.u32 2147483647, %v3499_v28  ;;  %v701_v27 = vor.u32 1.1754944e-38, %v700_v23 }
 0x188   :  { %v2665_v11 = vpop.eup %2664  ;;  %2674 = vtanh.f32 %v749_v44  ;;  %v729_v44 = vand.u32 2147483648, %v3499_v28  ;;  %vm738_vm2 = vweird.f32 %v3502_v32 }
 0x189   :  { %v675_v13 = vmul.f32 %v2665_v11, %v672_v52  ;;  %2676 = vrcp.f32 %v3513_v18  ;;  %vm680_vm14 = vweird.f32 %v2665_v11 }
 0x18a   :  { %v2667_v61 = vpop.eup %2666  ;;  %2678 = vrcp.f32 %v3516_v15  ;;  %vm3538_vm3 = vmor %vm679_vm0, %vm680_vm14  ;;  %v730_v36 = vor.u32 1.1754944e-38, %v729_v44  ;;  %vm728_vm14 = vcmp.eq.f32.partialorder %v727_v49, 8.507059e+37 }
 0x18b   :  { %v2669_v63 = vpop.eup %2668  ;;  %v676_v62 = vsub.f32 1.0, %v675_v13  ;;  %v690_v4 = vmul.f32 %v2667_v61, %v3497_v1  ;;  %vm695_vm1 = vweird.f32 %v2667_v61 }
 0x18c   :  { %v719_v33 = vmul.f32 %v2669_v63, %v3499_v28  ;;  %v2671_v38 = vpop.eup %2670  ;;  %vm724_vm10 = vweird.f32 %v2669_v63  ;;  %vm696_vm15 = vmor %vm694_vm9, %vm695_vm1 }
 0x18d   :  { %v677_v41 = vmul.f32 %v2665_v11, %v676_v62  ;;  %v691_v55 = vsub.f32 1.0, %v690_v4  ;;  %v2673_v45 = vpop.eup %2672  ;;  %v734_v46 = vmul.f32 %v2671_v38, %v3502_v32  ;;  %vm739_vm12 = vweird.f32 %v2671_v38  ;;  %vm725_vm0 = vmor %vm723_vm13, %vm724_vm10 }
 0x18e   :  { %v720_v3 = vsub.f32 1.0, %v719_v33  ;;  %v2675_v10 = vpop.eup %2674  ;;  %v744_v33 = vand.u32 2147483648, %v3502_v32  ;;  %vm740_vm9 = vmor %vm738_vm2, %vm739_vm12  ;;  %vm771_vm13 = vweird.f32 %v3513_v18 }
 0x18f   :  { %v678_v54 = vadd.f32 %v2665_v11, %v677_v41  ;;  %v692_v7 = vmul.f32 %v2667_v61, %v691_v55  ;;  %v2677_v13 = vpop.eup %2676  ;;  %v735_v23 = vsub.f32 1.0, %v734_v46  ;;  %v742_v41 = vand.u32 2147483647, %v3502_v32 }
 0x190   :  { %v721_v4 = vmul.f32 %v2669_v63, %v720_v3  ;;  %v767_v55 = vmul.f32 %v2677_v13, %v3513_v18  ;;  %v2679_v59 = vpop.eup %2678  ;;  %v745_v1 = vor.u32 1.1754944e-38, %v744_v33 }
 0x191   :  { %v682_v22 = vsel %vm3538_vm3, %v2665_v11, %v678_v54  ;;  %v693_v56 = vadd.f32 %v2667_v61, %v692_v7  ;;  %v736_v9 = vmul.f32 %v2671_v38, %v735_v23  ;;  %v782_v54 = vmul.f32 %v2679_v59, %v3516_v15 }
 0x192   :  { %v722_v52 = vadd.f32 %v2669_v63, %v721_v4  ;;  %v687_v3 = vsel %vm3518_vm7, %v686_v29, %v682_v22  ;;  %v768_v11 = vsub.f32 1.0, %v767_v55  ;;  %vm743_vm7 = vcmp.eq.f32.partialorder %v742_v41, 8.507059e+37 }
 0x193   :  { %v697_v46 = vsel %vm696_vm15, %v2667_v61, %v693_v56  ;;  %v737_v62 = vadd.f32 %v2671_v38, %v736_v9  ;;  %v783_v56 = vsub.f32 1.0, %v782_v54  ;;  %v801_v14 = vmul.f32 %v2673_v45, %v687_v3 }
 0x194   :  { %v726_v7 = vsel %vm725_vm0, %v2669_v63, %v722_v52  ;;  %v702_v44 = vsel %vm3526_vm11, %v701_v27, %v697_v46  ;;  %v769_v22 = vmul.f32 %v2677_v13, %v768_v11  ;;  %v4335_v63 = vrot.slane %v3509_v53, 1 }
 0x195   :  { %v731_v4 = vsel %vm728_vm14, %v730_v36, %v726_v7  ;;  %v741_v61 = vsel %vm740_vm9, %v2671_v38, %v737_v62  ;;  %v784_v23 = vmul.f32 %v2679_v59, %v783_v56  ;;  %v802_v49 = vmul.f32 %v2675_v10, %v702_v44  ;;  %v3571_v62 = vld [vmem:[%s4280_s1] sm:$0x3]  ;;  %v3577_v44 = vpop.permute.xlu0 %812 }
 0x196   :  { %v799_v28 = vmul.f32 %v731_v4, %v3509_v53  ;;  %v746_v29 = vsel %vm743_vm7, %v745_v1, %v741_v61  ;;  %v770_v50 = vadd.f32 %v2677_v13, %v769_v22  ;;  %vm772_vm11 = vweird.f32 %v2677_v13  ;;  %4336 = vst [vmem:[#allocation12_spill] sm:$0xff] %v3571_v62 }
 0x197   :  { %v800_v9 = vmul.f32 %v4335_v63, %v746_v29  ;;  %v777_v36 = vand.u32 2147483648, %v3513_v18  ;;  %v775_v38 = vand.u32 2147483647, %v3513_v18  ;;  %v785_v27 = vadd.f32 %v2679_v59, %v784_v23  ;;  %vm773_vm2 = vmor %vm771_vm13, %vm772_vm11  ;;  %v4338_v23 = vld [vmem:[#allocation8_spill] sm:$0xff]  ;;  %v4339_v63 = vld [vmem:[#allocation9_spill] sm:$0xff] }
 0x198   :  { %v803_v33 = vadd.f32 %v801_v14, %v799_v28  ;;  %vm787_vm1 = vweird.f32 %v2679_v59  ;;  %v792_v45 = vand.u32 2147483648, %v3516_v15  ;;  %v774_v41 = vsel %vm773_vm2, %v2677_v13, %v770_v50 }
 0x199   :  { %v804_v32 = vadd.f32 %v802_v49, %v800_v9  ;;  %vm786_vm3 = vweird.f32 %v3516_v15  ;;  %v790_v10 = vand.u32 2147483647, %v3516_v15  ;;  %v778_v55 = vor.u32 1.1754944e-38, %v777_v36  ;;  %v4340_v9 = vld [vmem:[#allocation10_spill] sm:$0xff]  ;;  %v4341_v49 = vld [vmem:[#allocation11_spill] sm:$0xff] }
 0x19a   :  { %2680 = vtanh.f32 %v803_v33  ;;  %vm788_vm10 = vmor %vm786_vm3, %vm787_vm1  ;;  %vm776_vm15 = vcmp.eq.f32.partialorder %v775_v38, 8.507059e+37  ;;  %v793_v11 = vor.u32 1.1754944e-38, %v792_v45  ;;  %vm1060_vm0 = vcmp.gt.s32.totalorder %v3571_v62, 2 }
 0x19b   :  { %2682 = vtanh.f32 %v804_v32  ;;  %v789_v52 = vsel %vm788_vm10, %v2679_v59, %v785_v27  ;;  %v779_v46 = vsel %vm776_vm15, %v778_v55, %v774_v41  ;;  %vm791_vm12 = vcmp.eq.f32.partialorder %v790_v10, 8.507059e+37 }
 0x19c   :  { %v794_v7 = vsel %vm791_vm12, %v793_v11, %v789_v52  ;;  %v4337_v15 = vmov 0   ;;  %vm1311_vm14 = vcmp.gt.s32.totalorder %v3571_v62, 3  ;;  %vm814_vm9 = vcmp.eq.s32.totalorder %v3577_v44, 1  ;;  %v843_v11 = vld [vmem:[#allocation2 + $0x2] ss:$8 sm:$0xf] }
 0x19d   :  { %v1061_v1 = vsel %vm1060_vm0, 1, %v4337_v15  ;;  %v1312_v59 = vsel %vm1311_vm14, 1, %v4337_v15  ;;  %vm2315_vm7 = vcmp.gt.s32.totalorder %v3571_v62, 7  ;;  %vm4342_vm11 = vcmask 1041408  }
 0x19e   :  { %1063 = vperm.xlu1 %2618, %v1061_v1   ;;  %v2316_v61 = vsel %vm2315_vm7, 1, %v4337_v15  ;;  %vm4343_vm13 = vcmask 1042433   ;;  %v845_v1 = vld [vmem:[#allocation2 + $0x22] ss:$8 sm:$0xf] }
 0x1a0   :  { %v2681_v3 = vpop.eup %2680 }
 0x1a1   :  { %v807_v18 = vmul.f32 %v2681_v3, %v779_v46  ;;  %v2683_v54 = vpop.eup %2682 }
 0x1a2   :  { %v808_v13 = vmul.f32 %v2683_v54, %v794_v7 }
 0x1a3   :  { %817 = vst [vmem:[#allocation1] ss:$9 sm:$0xff] %v807_v18 }
 0x1a4   :  { %819 = vst [vmem:[#allocation1 + $0x1] ss:$9 sm:$0xff] %v808_v13 }
 0x1a6   :  { %1314 = vperm.xlu1 %2618, %v1312_v59  }
 0x1ab   :  { %v820_v4 = vld [vmem:[#allocation1] sm:$0xff] }
 0x1ac   :  { %825 = vst [vmem:[#allocation1] ss:$9 sm:$0xff] %v803_v33  ;;  %v3583_v22 = vsel %vm814_vm9, %v820_v4, %v3451_v37 }
 0x1ad   :  { %827 = vst [vmem:[#allocation1 + $0x1] ss:$9 sm:$0xff] %v804_v32  ;;  %v846_v56 = vpack.c.bf16 %v3583_v22, %v3583_v22 }
 0x1ae   :  { %2318 = vperm.xlu1 %2618, %v2316_v61  }
 0x1af   :  { %855 = vmatmul.bf16.vlgmr.msrb.gmra.mxu0 %v846_v56  ;;  %868 = vmatmul.bf16.vlgmr.msrb.gmra.mxu1 %v846_v56 }
 0x1b0   :  { %881 = vmatmul.bf16.vlgmr.msrb.gmra.mxu2 %v846_v56  ;;  %894 = vmatmul.bf16.vlgmr.msrb.gmra.mxu3 %v846_v56 }
 0x1b1   :  { %1349 = vmatpush.bf16.msrb.mxu0 %v2993_v16  ;;  %1362 = vmatpush.bf16.msrb.mxu1 %v2995_v17 }
 0x1b2   :  { %1375 = vmatpush.bf16.msrb.mxu2 %v3006_v21  ;;  %1388 = vmatpush.bf16.msrb.mxu3 %v3019_v25 }
 0x1b4   :  { %v3593_v37 = vld [vmem:[#allocation1] sm:$0xff] }
 0x1b5   :  { %831 = vst [vmem:[#allocation1] ss:$9 sm:$0xff] %v807_v18  ;;  %1350 = vmatpush.bf16.msrb.mxu0 %v3021_v26  ;;  %1363 = vmatpush.bf16.msrb.mxu1 %v3033_v30 }
 0x1b6   :  { %833 = vst [vmem:[#allocation1 + $0x1] ss:$9 sm:$0xff] %v808_v13  ;;  %1376 = vmatpush.bf16.msrb.mxu2 %v3045_v34  ;;  %1389 = vmatpush.bf16.msrb.mxu3 %v3047_v35 }
 0x1b9   :  { %1351 = vmatpush.bf16.msrb.mxu0 %v3069_v42  ;;  %1364 = vmatpush.bf16.msrb.mxu1 %v3071_v43 }
 0x1ba   :  { %1377 = vmatpush.bf16.msrb.mxu2 %v3084_v47  ;;  %1390 = vmatpush.bf16.msrb.mxu3 %v3097_v51 }
 0x1bd   :  { %v834_v28 = vld [vmem:[#allocation1] sm:$0xff]  ;;  %1352 = vmatpush.bf16.msrb.mxu0 %v3118_v57  ;;  %1365 = vmatpush.bf16.msrb.mxu1 %v3120_v58 }
 0x1be   :  { %v836_v14 = vsel %vm814_vm9, %v834_v28, 0.0  ;;  %1378 = vmatpush.bf16.msrb.mxu2 %v3126_v60  ;;  %1391 = vmatpush.bf16.msrb.mxu3 %v3138_v0 }
 0x1bf   :  { %v838_v29 = vrot.slane %v836_v14, 1  ;;  %840 = vst [vmem:[#allocation3 + $0x1] sm:$0x1] %v836_v14 }
 0x1c1   :  { %841 = vst [vmem:[#allocation3 + $0x9] sm:$0x1] %v838_v29  ;;  %1353 = vmatpush.bf16.msrb.mxu0 %v3154_v5  ;;  %1366 = vmatpush.bf16.msrb.mxu1 %v3156_v6 }
 0x1c2   :  { %1379 = vmatpush.bf16.msrb.mxu2 %v3162_v8  ;;  %1392 = vmatpush.bf16.msrb.mxu3 %v3174_v12 }
 0x1c5   :  { %1354 = vmatpush.bf16.msrb.mxu0 %v3190_v19  ;;  %1367 = vmatpush.bf16.msrb.mxu1 %v3192_v20 }
 0x1c6   :  { %1380 = vmatpush.bf16.msrb.mxu2 %v3201_v24  ;;  %1393 = vmatpush.bf16.msrb.mxu3 %v3213_v31 }
 0x1c9   :  { %1355 = vmatpush.bf16.msrb.mxu0 %v3231_v39  ;;  %1368 = vmatpush.bf16.msrb.mxu1 %v3233_v40 }
 0x1ca   :  { %1381 = vmatpush.bf16.msrb.mxu2 %v4321_v2  ;;  %1394 = vmatpush.bf16.msrb.mxu3 %v4322_v48 }
 0x1cd   :  { %1356 = vmatpush.bf16.msrb.mxu0 %v4338_v23  ;;  %1369 = vmatpush.bf16.msrb.mxu1 %v4339_v63 }
 0x1ce   :  { %1382 = vmatpush.bf16.msrb.mxu2 %v4340_v9  ;;  %1395 = vmatpush.bf16.msrb.mxu3 %v4341_v49 }
 0x22c   :  { %v856_v33 = vpop.f32.mrf.mxu0  ;;  %v869_v50 = vpop.f32.mrf.mxu1 }
 0x22d   :  { %v903_v36 = vrot.slane %v869_v50, 7 }
 0x22f   :  { %v906_v55 = vsel %vm398_vm4, %v856_v33, %v903_v36  ;;  %v909_v52 = vsel %vm404_vm5, %v856_v33, %v903_v36 }
 0x233   :  { %v882_v32 = vpop.f32.mrf.mxu2  ;;  %v895_v38 = vpop.f32.mrf.mxu3 }
 0x234   :  { %v904_v27 = vrot.slane %v882_v32, 6  ;;  %v905_v45 = vrot.slane %v895_v38, 5  ;;  %v858_v41 = vpop.f32.mrf.mxu0  ;;  %v871_v10 = vpop.f32.mrf.mxu1 }
 0x236   :  { %v907_v3 = vsel %vm400_vm6, %v904_v27, %v905_v45  ;;  %v910_v46 = vsel %vm406_vm8, %v904_v27, %v905_v45 }
 0x237   :  { %v908_v18 = vsel %vm4342_vm11, %v906_v55, %v907_v3  ;;  %v911_v54 = vsel %vm4343_vm13, %v909_v52, %v910_v46 }
 0x238   :  { %v912_v7 = vrot.slane %v911_v54, 1  ;;  %v915_v13 = vadd.f32 %v908_v18, %v843_v11 }
 0x23a   :  { %v916_v59 = vadd.f32 %v912_v7, %v845_v1  ;;  %v2540_v4 = vmul.f32 -1.442695, %v915_v13  ;;  %v957_v56 = vrot.slane %v915_v13, 1  ;;  %v1005_v61 = vrot.slane %v915_v13, 3 }
 0x23b   :  { %v884_v28 = vpop.f32.mrf.mxu2  ;;  %v897_v14 = vpop.f32.mrf.mxu3  ;;  %v999_v11 = vrot.slane %v915_v13, 2 }
 0x23c   :  { %2684 = vpow2.f32 %v2540_v4  ;;  %v2541_v29 = vmul.f32 -1.442695, %v916_v59  ;;  %v958_v33 = vrot.slane %v916_v59, 1  ;;  %v2542_v50 = vmul.f32 -1.442695, %v957_v56 }
 0x23d   :  { %v1006_v36 = vrot.slane %v916_v59, 3  ;;  %v2544_v38 = vmul.f32 -1.442695, %v1005_v61  ;;  %v1000_v7 = vrot.slane %v916_v59, 2  ;;  %v3643_v4 = vsel %vm814_vm9, %v3593_v37, %v3509_v53 }
 0x23e   :  { %2686 = vpow2.f32 %v2541_v29  ;;  %v2543_v32 = vmul.f32 -1.442695, %v958_v33 }
 0x23f   :  { %2688 = vpow2.f32 %v2542_v50  ;;  %v2545_v27 = vmul.f32 -1.442695, %v1006_v36 }
 0x240   :  { %2690 = vpow2.f32 %v2543_v32 }
 0x241   :  { %2692 = vpow2.f32 %v2544_v38 }
 0x242   :  { %v2685_v45 = vpop.eup %2684  ;;  %2694 = vpow2.f32 %v2545_v27 }
 0x243   :  { %v923_v41 = vadd.f32 1.0, %v2685_v45 }
 0x244   :  { %v2687_v10 = vpop.eup %2686 }
 0x245   :  { %v2689_v55 = vpop.eup %2688  ;;  %v3631_v52 = vadd.f32 1.0, %v2687_v10  ;;  %2696 = vrcp.f32 %v923_v41  ;;  %v934_v56 = vand.u32 2147483647, %v923_v41  ;;  %v936_v61 = vand.u32 2147483648, %v923_v41 }
 0x246   :  { %v2691_v3 = vpop.eup %2690  ;;  %v3633_v46 = vadd.f32 1.0, %v2689_v55  ;;  %vm930_vm1 = vweird.f32 %v923_v41 }
 0x247   :  { %2698 = vrcp.f32 %v3631_v52  ;;  %v2693_v18 = vpop.eup %2692  ;;  %v3636_v54 = vadd.f32 1.0, %v2691_v3  ;;  %v949_v13 = vand.u32 2147483647, %v3631_v52  ;;  %vm3652_vm2 = vcmp.eq.f32.partialorder %v934_v56, 8.507059e+37 }
 0x248   :  { %2700 = vrcp.f32 %v3633_v46  ;;  %v2695_v1 = vpop.eup %2694  ;;  %v3647_v14 = vadd.f32 1.0, %v2693_v18  ;;  %v951_v44 = vand.u32 2147483648, %v3631_v52  ;;  %v937_v32 = vor.u32 1.1754944e-38, %v936_v61 }
 0x249   :  { %2702 = vrcp.f32 %v3636_v54  ;;  %v3650_v33 = vadd.f32 1.0, %v2695_v1  ;;  %vm945_vm3 = vweird.f32 %v3631_v52  ;;  %vm3660_vm10 = vcmp.eq.f32.partialorder %v949_v13, 8.507059e+37 }
 0x24a   :  { %2704 = vtanh.f32 %v999_v11  ;;  %vm974_vm15 = vweird.f32 %v3633_v46  ;;  %v978_v11 = vand.u32 2147483647, %v3633_v46  ;;  %v980_v56 = vand.u32 2147483648, %v3633_v46 }
 0x24b   :  { %v2697_v28 = vpop.eup %2696  ;;  %2706 = vtanh.f32 %v1000_v7  ;;  %v952_v7 = vor.u32 1.1754944e-38, %v951_v44  ;;  %vm989_vm14 = vweird.f32 %v3636_v54 }
 0x24c   :  { %v926_v59 = vmul.f32 %v2697_v28, %v923_v41  ;;  %2708 = vrcp.f32 %v3647_v14  ;;  %vm931_vm12 = vweird.f32 %v2697_v28  ;;  %v981_v63 = vor.u32 1.1754944e-38, %v980_v56 }
 0x24d   :  { %v2699_v50 = vpop.eup %2698  ;;  %2710 = vrcp.f32 %v3650_v33  ;;  %vm3672_vm9 = vmor %vm930_vm1, %vm931_vm12  ;;  %vm979_vm12 = vcmp.eq.f32.partialorder %v978_v11, 8.507059e+37 }
 0x24e   :  { %v2701_v37 = vpop.eup %2700  ;;  %v927_v36 = vsub.f32 1.0, %v926_v59  ;;  %v941_v38 = vmul.f32 %v2699_v50, %v3631_v52  ;;  %vm946_vm0 = vweird.f32 %v2699_v50 }
 0x24f   :  { %v970_v45 = vmul.f32 %v2701_v37, %v3633_v46  ;;  %v2703_v10 = vpop.eup %2702  ;;  %vm975_vm7 = vweird.f32 %v2701_v37  ;;  %vm947_vm11 = vmor %vm945_vm3, %vm946_vm0 }
 0x250   :  { %v928_v55 = vmul.f32 %v2697_v28, %v927_v36  ;;  %v942_v3 = vsub.f32 1.0, %v941_v38  ;;  %v2705_v18 = vpop.eup %2704  ;;  %v985_v61 = vmul.f32 %v2703_v10, %v3636_v54  ;;  %vm990_vm13 = vweird.f32 %v2703_v10  ;;  %vm976_vm1 = vmor %vm974_vm15, %vm975_vm7 }
 0x251   :  { %v971_v1 = vsub.f32 1.0, %v970_v45  ;;  %v2707_v13 = vpop.eup %2706  ;;  %v995_v45 = vand.u32 2147483648, %v3636_v54  ;;  %vm991_vm3 = vmor %vm989_vm14, %vm990_vm13  ;;  %vm1022_vm15 = vweird.f32 %v3647_v14 }
 0x252   :  { %v929_v59 = vadd.f32 %v2697_v28, %v928_v55  ;;  %v943_v29 = vmul.f32 %v2699_v50, %v942_v3  ;;  %v2709_v15 = vpop.eup %2708  ;;  %v986_v44 = vsub.f32 1.0, %v985_v61  ;;  %v993_v55 = vand.u32 2147483647, %v3636_v54 }
 0x253   :  { %v972_v38 = vmul.f32 %v2701_v37, %v971_v1  ;;  %v1018_v3 = vmul.f32 %v2709_v15, %v3647_v14  ;;  %v2711_v9 = vpop.eup %2710  ;;  %v996_v52 = vor.u32 1.1754944e-38, %v995_v45 }
 0x254   :  { %v933_v62 = vsel %vm3672_vm9, %v2697_v28, %v929_v59  ;;  %v944_v49 = vadd.f32 %v2699_v50, %v943_v29  ;;  %v987_v23 = vmul.f32 %v2703_v10, %v986_v44  ;;  %v1033_v29 = vmul.f32 %v2711_v9, %v3650_v33 }
 0x255   :  { %v973_v41 = vadd.f32 %v2701_v37, %v972_v38  ;;  %v938_v1 = vsel %vm3652_vm2, %v937_v32, %v933_v62  ;;  %v1019_v28 = vsub.f32 1.0, %v1018_v3  ;;  %vm994_vm2 = vcmp.eq.f32.partialorder %v993_v55, 8.507059e+37 }
 0x256   :  { %v948_v61 = vsel %vm947_vm11, %v2699_v50, %v944_v49  ;;  %v988_v36 = vadd.f32 %v2703_v10, %v987_v23  ;;  %v1034_v49 = vsub.f32 1.0, %v1033_v29  ;;  %v1052_v53 = vmul.f32 %v2705_v18, %v938_v1 }
 0x257   :  { %v977_v59 = vsel %vm976_vm1, %v2701_v37, %v973_v41  ;;  %v953_v56 = vsel %vm3660_vm10, %v952_v7, %v948_v61  ;;  %v1020_v62 = vmul.f32 %v2709_v15, %v1019_v28  ;;  %v4350_v37 = vrot.slane %v3643_v4, 1 }
 0x258   :  { %v982_v38 = vsel %vm979_vm12, %v981_v63, %v977_v59  ;;  %v992_v50 = vsel %vm991_vm3, %v2703_v10, %v988_v36  ;;  %v1035_v44 = vmul.f32 %v2711_v9, %v1034_v49  ;;  %v1053_v11 = vmul.f32 %v2707_v13, %v953_v56  ;;  %v4351_v49 = vld [vmem:[#allocation8_spill] sm:$0xff] }
 0x259   :  { %v1050_v46 = vmul.f32 %v982_v38, %v3643_v4  ;;  %v997_v32 = vsel %vm994_vm2, %v996_v52, %v992_v50  ;;  %v1021_v27 = vadd.f32 %v2709_v15, %v1020_v62  ;;  %vm1023_vm10 = vweird.f32 %v2709_v15  ;;  %v3702_v52 = vpop.permute.xlu1 %1063  ;;  %v4352_v50 = vld [vmem:[#allocation9_spill] sm:$0xff] }
 0x25a   :  { %v1051_v23 = vmul.f32 %v4350_v37, %v997_v32  ;;  %v1028_v63 = vand.u32 2147483648, %v3647_v14  ;;  %v1026_v10 = vand.u32 2147483647, %v3647_v14  ;;  %v1036_v7 = vadd.f32 %v2711_v9, %v1035_v44  ;;  %vm1024_vm14 = vmor %vm1022_vm15, %vm1023_vm10 }
 0x25b   :  { %v1054_v45 = vadd.f32 %v1052_v53, %v1050_v46  ;;  %vm1038_vm0 = vweird.f32 %v2711_v9  ;;  %v1043_v18 = vand.u32 2147483648, %v3650_v33  ;;  %v1025_v55 = vsel %vm1024_vm14, %v2709_v15, %v1021_v27  ;;  %v4353_v46 = vld [vmem:[#allocation10_spill] sm:$0xff]  ;;  %v4354_v53 = vld [vmem:[#allocation11_spill] sm:$0xff] }
 0x25c   :  { %v1055_v54 = vadd.f32 %v1053_v11, %v1051_v23  ;;  %vm1037_vm9 = vweird.f32 %v3650_v33  ;;  %v1041_v13 = vand.u32 2147483647, %v3650_v33  ;;  %v1029_v3 = vor.u32 1.1754944e-38, %v1028_v63 }
 0x25d   :  { %2712 = vtanh.f32 %v1054_v45  ;;  %vm1039_vm7 = vmor %vm1037_vm9, %vm1038_vm0  ;;  %vm1027_vm11 = vcmp.eq.f32.partialorder %v1026_v10, 8.507059e+37  ;;  %v1044_v28 = vor.u32 1.1754944e-38, %v1043_v18  ;;  %vm1065_vm1 = vcmp.eq.s32.totalorder %v3702_v52, 1 }
 0x25e   :  { %2714 = vtanh.f32 %v1055_v54  ;;  %v1040_v41 = vsel %vm1039_vm7, %v2711_v9, %v1036_v7  ;;  %v1030_v61 = vsel %vm1027_vm11, %v1029_v3, %v1025_v55  ;;  %vm1042_vm13 = vcmp.eq.f32.partialorder %v1041_v13, 8.507059e+37  ;;  %v1094_v13 = vld [vmem:[#allocation2 + $0x3] ss:$8 sm:$0xf] }
 0x25f   :  { %v1045_v59 = vsel %vm1042_vm13, %v1044_v28, %v1040_v41  ;;  %vm4355_vm12 = vcmask 1041408   ;;  %vm4356_vm3 = vcmask 1042433   ;;  %v1096_v28 = vld [vmem:[#allocation2 + $0x23] ss:$8 sm:$0xf] }
 0x263   :  { %v2713_v1 = vpop.eup %2712 }
 0x264   :  { %v1058_v14 = vmul.f32 %v2713_v1, %v1030_v61  ;;  %v2715_v29 = vpop.eup %2714 }
 0x265   :  { %v1059_v36 = vmul.f32 %v2715_v29, %v1045_v59 }
 0x266   :  { %1068 = vst [vmem:[#allocation1] ss:$9 sm:$0xff] %v1058_v14 }
 0x267   :  { %1070 = vst [vmem:[#allocation1 + $0x1] ss:$9 sm:$0xff] %v1059_v36 }
 0x26e   :  { %v1071_v15 = vld [vmem:[#allocation1] sm:$0xff] }
 0x26f   :  { %1076 = vst [vmem:[#allocation1] ss:$9 sm:$0xff] %v1054_v45  ;;  %v3708_v9 = vsel %vm1065_vm1, %v1071_v15, %v3583_v22 }
 0x270   :  { %1078 = vst [vmem:[#allocation1 + $0x1] ss:$9 sm:$0xff] %v1055_v54  ;;  %v1097_v33 = vpack.c.bf16 %v3708_v9, %v3708_v9 }
 0x272   :  { %1106 = vmatmul.bf16.vlgmr.msra.gmra.mxu0 %v1097_v33  ;;  %1119 = vmatmul.bf16.vlgmr.msra.gmra.mxu1 %v1097_v33 }
 0x273   :  { %1132 = vmatmul.bf16.vlgmr.msra.gmra.mxu2 %v1097_v33  ;;  %1145 = vmatmul.bf16.vlgmr.msra.gmra.mxu3 %v1097_v33 }
 0x274   :  { %1600 = vmatpush.bf16.msra.mxu0 %v2993_v16  ;;  %1613 = vmatpush.bf16.msra.mxu1 %v2995_v17 }
 0x275   :  { %1626 = vmatpush.bf16.msra.mxu2 %v3006_v21  ;;  %1639 = vmatpush.bf16.msra.mxu3 %v3019_v25 }
 0x277   :  { %v3716_v56 = vld [vmem:[#allocation1] sm:$0xff] }
 0x278   :  { %1082 = vst [vmem:[#allocation1] ss:$9 sm:$0xff] %v1058_v14  ;;  %1601 = vmatpush.bf16.msra.mxu0 %v3021_v26  ;;  %1614 = vmatpush.bf16.msra.mxu1 %v3033_v30 }
 0x279   :  { %1084 = vst [vmem:[#allocation1 + $0x1] ss:$9 sm:$0xff] %v1059_v36  ;;  %1627 = vmatpush.bf16.msra.mxu2 %v3045_v34  ;;  %1640 = vmatpush.bf16.msra.mxu3 %v3047_v35 }
 0x27c   :  { %1602 = vmatpush.bf16.msra.mxu0 %v3069_v42  ;;  %1615 = vmatpush.bf16.msra.mxu1 %v3071_v43 }
 0x27d   :  { %1628 = vmatpush.bf16.msra.mxu2 %v3084_v47  ;;  %1641 = vmatpush.bf16.msra.mxu3 %v3097_v51 }
 0x280   :  { %v1085_v22 = vld [vmem:[#allocation1] sm:$0xff]  ;;  %1603 = vmatpush.bf16.msra.mxu0 %v3118_v57  ;;  %1616 = vmatpush.bf16.msra.mxu1 %v3120_v58 }
 0x281   :  { %v1087_v38 = vsel %vm1065_vm1, %v1085_v22, 0.0  ;;  %1629 = vmatpush.bf16.msra.mxu2 %v3126_v60  ;;  %1642 = vmatpush.bf16.msra.mxu3 %v3138_v0 }
 0x282   :  { %v1089_v62 = vrot.slane %v1087_v38, 1  ;;  %1091 = vst [vmem:[#allocation3 + $0x2] sm:$0x1] %v1087_v38 }
 0x284   :  { %1092 = vst [vmem:[#allocation3 + $0xa] sm:$0x1] %v1089_v62  ;;  %1604 = vmatpush.bf16.msra.mxu0 %v3154_v5  ;;  %1617 = vmatpush.bf16.msra.mxu1 %v3156_v6 }
 0x285   :  { %1630 = vmatpush.bf16.msra.mxu2 %v3162_v8  ;;  %1643 = vmatpush.bf16.msra.mxu3 %v3174_v12 }
 0x288   :  { %1605 = vmatpush.bf16.msra.mxu0 %v3190_v19  ;;  %1618 = vmatpush.bf16.msra.mxu1 %v3192_v20 }
 0x289   :  { %1631 = vmatpush.bf16.msra.mxu2 %v3201_v24  ;;  %1644 = vmatpush.bf16.msra.mxu3 %v3213_v31 }
 0x28c   :  { %1606 = vmatpush.bf16.msra.mxu0 %v3231_v39  ;;  %1619 = vmatpush.bf16.msra.mxu1 %v3233_v40 }
 0x28d   :  { %1632 = vmatpush.bf16.msra.mxu2 %v4321_v2  ;;  %1645 = vmatpush.bf16.msra.mxu3 %v4322_v48 }
 0x290   :  { %1607 = vmatpush.bf16.msra.mxu0 %v4351_v49  ;;  %1620 = vmatpush.bf16.msra.mxu1 %v4352_v50 }
 0x291   :  { %1633 = vmatpush.bf16.msra.mxu2 %v4353_v46  ;;  %1646 = vmatpush.bf16.msra.mxu3 %v4354_v53 }
 0x2ef   :  { %v1107_v32 = vpop.f32.mrf.mxu0  ;;  %v1120_v44 = vpop.f32.mrf.mxu1 }
 0x2f0   :  { %v1154_v37 = vrot.slane %v1120_v44, 7 }
 0x2f2   :  { %v1157_v10 = vsel %vm398_vm4, %v1107_v32, %v1154_v37  ;;  %v1160_v7 = vsel %vm404_vm5, %v1107_v32, %v1154_v37 }
 0x2f6   :  { %v1133_v23 = vpop.f32.mrf.mxu2  ;;  %v1146_v11 = vpop.f32.mrf.mxu3 }
 0x2f7   :  { %v1155_v45 = vrot.slane %v1133_v23, 6  ;;  %v1156_v27 = vrot.slane %v1146_v11, 5  ;;  %v1109_v63 = vpop.f32.mrf.mxu0  ;;  %v1122_v54 = vpop.f32.mrf.mxu1 }
 0x2f9   :  { %v1158_v18 = vsel %vm400_vm6, %v1155_v45, %v1156_v27  ;;  %v1161_v55 = vsel %vm406_vm8, %v1155_v45, %v1156_v27 }
 0x2fa   :  { %v1159_v3 = vsel %vm4355_vm12, %v1157_v10, %v1158_v18  ;;  %v1162_v41 = vsel %vm4356_vm3, %v1160_v7, %v1161_v55 }
 0x2fb   :  { %v1163_v1 = vrot.slane %v1162_v41, 1  ;;  %v1166_v61 = vadd.f32 %v1159_v3, %v1094_v13 }
 0x2fd   :  { %v1167_v14 = vadd.f32 %v1163_v1, %v1096_v28  ;;  %v2546_v29 = vmul.f32 -1.442695, %v1166_v61  ;;  %v1208_v59 = vrot.slane %v1166_v61, 1  ;;  %v1256_v36 = vrot.slane %v1166_v61, 3 }
 0x2fe   :  { %v1135_v15 = vpop.f32.mrf.mxu2  ;;  %v1148_v33 = vpop.f32.mrf.mxu3  ;;  %v1250_v18 = vrot.slane %v1166_v61, 2  ;;  %v3766_v1 = vsel %vm1065_vm1, %v3716_v56, %v3643_v4 }
 0x2ff   :  { %2716 = vpow2.f32 %v2546_v29  ;;  %v2547_v22 = vmul.f32 -1.442695, %v1167_v14  ;;  %v1209_v38 = vrot.slane %v1167_v14, 1  ;;  %v2548_v62 = vmul.f32 -1.442695, %v1208_v59 }
 0x300   :  { %v1257_v32 = vrot.slane %v1167_v14, 3  ;;  %v2550_v37 = vmul.f32 -1.442695, %v1256_v36  ;;  %v1251_v3 = vrot.slane %v1167_v14, 2 }
 0x301   :  { %2718 = vpow2.f32 %v2547_v22  ;;  %v2549_v44 = vmul.f32 -1.442695, %v1209_v38 }
 0x302   :  { %2720 = vpow2.f32 %v2548_v62  ;;  %v2551_v23 = vmul.f32 -1.442695, %v1257_v32 }
 0x303   :  { %2722 = vpow2.f32 %v2549_v44 }
 0x304   :  { %2724 = vpow2.f32 %v2550_v37 }
 0x305   :  { %v2717_v11 = vpop.eup %2716  ;;  %2726 = vpow2.f32 %v2551_v23 }
 0x306   :  { %v1174_v45 = vadd.f32 1.0, %v2717_v11 }
 0x307   :  { %v2719_v27 = vpop.eup %2718 }
 0x308   :  { %v2721_v63 = vpop.eup %2720  ;;  %v3754_v54 = vadd.f32 1.0, %v2719_v27  ;;  %2728 = vrcp.f32 %v1174_v45  ;;  %v1185_v28 = vand.u32 2147483647, %v1174_v45  ;;  %v1187_v29 = vand.u32 2147483648, %v1174_v45 }
 0x309   :  { %v2723_v10 = vpop.eup %2722  ;;  %v3756_v7 = vadd.f32 1.0, %v2721_v63  ;;  %vm1181_vm2 = vweird.f32 %v1174_v45 }
 0x30a   :  { %2730 = vrcp.f32 %v3754_v54  ;;  %v2725_v55 = vpop.eup %2724  ;;  %v3759_v13 = vadd.f32 1.0, %v2723_v10  ;;  %v1200_v61 = vand.u32 2147483647, %v3754_v54  ;;  %vm3775_vm10 = vcmp.eq.f32.partialorder %v1185_v28, 8.507059e+37 }
 0x30b   :  { %2732 = vrcp.f32 %v3756_v7  ;;  %v2727_v41 = vpop.eup %2726  ;;  %v3770_v36 = vadd.f32 1.0, %v2725_v55  ;;  %v1202_v52 = vand.u32 2147483648, %v3754_v54  ;;  %v1188_v62 = vor.u32 1.1754944e-38, %v1187_v29 }
 0x30c   :  { %2734 = vrcp.f32 %v3759_v13  ;;  %v3773_v33 = vadd.f32 1.0, %v2727_v41  ;;  %vm1196_vm15 = vweird.f32 %v3754_v54  ;;  %vm3783_vm0 = vcmp.eq.f32.partialorder %v1200_v61, 8.507059e+37 }
 0x30d   :  { %2736 = vtanh.f32 %v1250_v18  ;;  %vm1225_vm14 = vweird.f32 %v3756_v7  ;;  %v1229_v63 = vand.u32 2147483647, %v3756_v7  ;;  %v1203_v18 = vor.u32 1.1754944e-38, %v1202_v52 }
 0x30e   :  { %v2729_v59 = vpop.eup %2728  ;;  %2738 = vtanh.f32 %v1251_v3  ;;  %v1231_v3 = vand.u32 2147483648, %v3756_v7  ;;  %vm1240_vm11 = vweird.f32 %v3759_v13 }
 0x30f   :  { %v1177_v14 = vmul.f32 %v2729_v59, %v1174_v45  ;;  %2740 = vrcp.f32 %v3770_v36  ;;  %vm1182_vm9 = vweird.f32 %v2729_v59 }
 0x310   :  { %v2731_v22 = vpop.eup %2730  ;;  %2742 = vrcp.f32 %v3773_v33  ;;  %vm3797_vm13 = vmor %vm1181_vm2, %vm1182_vm9  ;;  %v1232_v50 = vor.u32 1.1754944e-38, %v1231_v3  ;;  %vm1230_vm9 = vcmp.eq.f32.partialorder %v1229_v63, 8.507059e+37  ;;  %v4363_v63 = vrot.slane %v3766_v1, 1 }
 0x311   :  { %v2733_v56 = vpop.eup %2732  ;;  %v1178_v38 = vsub.f32 1.0, %v1177_v14  ;;  %v1192_v32 = vmul.f32 %v2731_v22, %v3754_v54  ;;  %vm1197_vm7 = vweird.f32 %v2731_v22 }
 0x312   :  { %v1221_v37 = vmul.f32 %v2733_v56, %v3756_v7  ;;  %v2735_v23 = vpop.eup %2734  ;;  %vm1226_vm1 = vweird.f32 %v2733_v56  ;;  %vm1198_vm12 = vmor %vm1196_vm15, %vm1197_vm7 }
 0x313   :  { %v1179_v11 = vmul.f32 %v2729_v59, %v1178_v38  ;;  %v1193_v27 = vsub.f32 1.0, %v1192_v32  ;;  %v2737_v10 = vpop.eup %2736  ;;  %v1236_v41 = vmul.f32 %v2735_v23, %v3759_v13  ;;  %vm1241_vm3 = vweird.f32 %v2735_v23  ;;  %vm1227_vm2 = vmor %vm1225_vm14, %vm1226_vm1 }
 0x314   :  { %v1222_v55 = vsub.f32 1.0, %v1221_v37  ;;  %v2739_v28 = vpop.eup %2738  ;;  %v1246_v37 = vand.u32 2147483648, %v3759_v13  ;;  %vm1242_vm15 = vmor %vm1240_vm11, %vm1241_vm3  ;;  %vm1273_vm14 = vweird.f32 %v3770_v36 }
 0x315   :  { %v1180_v29 = vadd.f32 %v2729_v59, %v1179_v11  ;;  %v1194_v61 = vmul.f32 %v2731_v22, %v1193_v27  ;;  %v3794_v14 = vpop.eup %2740  ;;  %v1237_v52 = vsub.f32 1.0, %v1236_v41  ;;  %v1244_v27 = vand.u32 2147483647, %v3759_v13 }
 0x316   :  { %v1223_v32 = vmul.f32 %v2733_v56, %v1222_v55  ;;  %v1269_v53 = vmul.f32 %v3794_v14, %v3770_v36  ;;  %v2743_v46 = vpop.eup %2742  ;;  %v1247_v54 = vor.u32 1.1754944e-38, %v1246_v37 }
 0x317   :  { %v1184_v15 = vsel %vm3797_vm13, %v2729_v59, %v1180_v29  ;;  %v1195_v11 = vadd.f32 %v2731_v22, %v1194_v61  ;;  %v1238_v55 = vmul.f32 %v2735_v23, %v1237_v52  ;;  %v1284_v29 = vmul.f32 %v2743_v46, %v3773_v33 }
 0x318   :  { %v1224_v45 = vadd.f32 %v2733_v56, %v1223_v32  ;;  %v1189_v41 = vsel %vm3775_vm10, %v1188_v62, %v1184_v15  ;;  %v1270_v59 = vsub.f32 1.0, %v1269_v53  ;;  %vm1245_vm10 = vcmp.eq.f32.partialorder %v1244_v27, 8.507059e+37 }
 0x319   :  { %v1199_v49 = vsel %vm1198_vm12, %v2731_v22, %v1195_v11  ;;  %v1239_v38 = vadd.f32 %v2735_v23, %v1238_v55  ;;  %v1285_v22 = vsub.f32 1.0, %v1284_v29  ;;  %v1303_v7 = vmul.f32 %v2737_v10, %v1189_v41 }
 0x31a   :  { %v1228_v61 = vsel %vm1227_vm2, %v2733_v56, %v1224_v45  ;;  %v1204_v3 = vsel %vm3783_vm0, %v1203_v18, %v1199_v49  ;;  %v1271_v15 = vmul.f32 %v3794_v14, %v1270_v59  ;;  %vm1274_vm0 = vweird.f32 %v3794_v14  ;;  %v4364_v45 = vld [vmem:[#allocation12_spill] sm:$0xff] }
 0x31b   :  { %v1233_v32 = vsel %vm1230_vm9, %v1232_v50, %v1228_v61  ;;  %v1243_v4 = vsel %vm1242_vm15, %v2735_v23, %v1239_v38  ;;  %v1286_v56 = vmul.f32 %v2743_v46, %v1285_v22  ;;  %v1304_v37 = vmul.f32 %v2739_v28, %v1204_v3  ;;  %vm1275_vm11 = vmor %vm1273_vm14, %vm1274_vm0 }
 0x31c   :  { %v1301_v53 = vmul.f32 %v1233_v32, %v3766_v1  ;;  %v1248_v62 = vsel %vm1245_vm10, %v1247_v54, %v1243_v4  ;;  %v1272_v49 = vadd.f32 %v3794_v14, %v1271_v15  ;;  %v1279_v50 = vand.u32 2147483648, %v3770_v36  ;;  %v3836_v32 = vpop.permute.xlu1 %1314 }
 0x31d   :  { %v1302_v52 = vmul.f32 %v4363_v63, %v1248_v62  ;;  %v1277_v23 = vand.u32 2147483647, %v3770_v36  ;;  %v1287_v10 = vadd.f32 %v2743_v46, %v1286_v56  ;;  %vm1289_vm7 = vweird.f32 %v2743_v46  ;;  %v4366_v62 = vld [vmem:[#allocation8_spill] sm:$0xff]  ;;  %v4367_v56 = vld [vmem:[#allocation9_spill] sm:$0xff]  ;;  %v4368_v63 = vld [vmem:[#allocation10_spill] sm:$0xff] }
 0x31e   :  { %v1305_v44 = vadd.f32 %v1303_v7, %v1301_v53  ;;  %v1294_v18 = vand.u32 2147483648, %v3773_v33  ;;  %v1276_v28 = vsel %vm1275_vm11, %v3794_v14, %v1272_v49  ;;  %vm1288_vm13 = vweird.f32 %v3773_v33 }
 0x31f   :  { %v1306_v13 = vadd.f32 %v1304_v37, %v1302_v52  ;;  %v1292_v11 = vand.u32 2147483647, %v3773_v33  ;;  %v1280_v27 = vor.u32 1.1754944e-38, %v1279_v50  ;;  %vm1290_vm1 = vmor %vm1288_vm13, %vm1289_vm7  ;;  %vm1562_vm12 = vcmp.gt.s32.totalorder %v4364_v45, 4  ;;  %v4369_v52 = vld [vmem:[#allocation11_spill] sm:$0xff] }
 0x320   :  { %2744 = vtanh.f32 %v1305_v44  ;;  %vm1278_vm3 = vcmp.eq.f32.partialorder %v1277_v23, 8.507059e+37  ;;  %v1291_v55 = vsel %vm1290_vm1, %v2743_v46, %v1287_v10  ;;  %v4365_v41 = vmov 0  }
 0x321   :  { %2746 = vtanh.f32 %v1306_v13  ;;  %v1563_v36 = vsel %vm1562_vm12, 1, %v4365_v41  ;;  %v1281_v29 = vsel %vm1278_vm3, %v1280_v27, %v1276_v28  ;;  %v1295_v61 = vor.u32 1.1754944e-38, %v1294_v18 }
 0x322   :  { %1565 = vperm.xlu2 %2619, %v1563_v36   ;;  %vm1293_vm2 = vcmp.eq.f32.partialorder %v1292_v11, 8.507059e+37  ;;  %vm1813_vm9 = vcmp.gt.s32.totalorder %v4364_v45, 5  ;;  %vm1316_vm15 = vcmp.eq.s32.totalorder %v3836_v32, 1  ;;  %vm4370_vm10 = vcmask 1041408  }
 0x323   :  { %v1296_v14 = vsel %vm1293_vm2, %v1295_v61, %v1291_v55  ;;  %v1814_v33 = vsel %vm1813_vm9, 1, %v4365_v41  ;;  %v1345_v41 = vld [vmem:[#allocation2 + $0x4] ss:$8 sm:$0xf]  ;;  %vm4371_vm0 = vcmask 1042433  }
 0x326   :  { %v2745_v59 = vpop.eup %2744 }
 0x327   :  { %v1309_v38 = vmul.f32 %v2745_v59, %v1281_v29  ;;  %v2747_v54 = vpop.eup %2746 }
 0x328   :  { %v1310_v3 = vmul.f32 %v2747_v54, %v1296_v14 }
 0x329   :  { %1319 = vst [vmem:[#allocation1] ss:$9 sm:$0xff] %v1309_v38 }
 0x32a   :  { %1321 = vst [vmem:[#allocation1 + $0x1] ss:$9 sm:$0xff] %v1310_v3  ;;  %1816 = vperm.xlu2 %2619, %v1814_v33  }
 0x331   :  { %v1322_v46 = vld [vmem:[#allocation1] sm:$0xff] }
 0x332   :  { %1327 = vst [vmem:[#allocation1] ss:$9 sm:$0xff] %v1305_v44  ;;  %v3842_v15 = vsel %vm1316_vm15, %v1322_v46, %v3708_v9 }
 0x333   :  { %1329 = vst [vmem:[#allocation1 + $0x1] ss:$9 sm:$0xff] %v1306_v13  ;;  %v1348_v22 = vpack.c.bf16 %v3842_v15, %v3842_v15 }
 0x335   :  { %1357 = vmatmul.bf16.vlgmr.msrb.gmra.mxu0 %v1348_v22  ;;  %1370 = vmatmul.bf16.vlgmr.msrb.gmra.mxu1 %v1348_v22 }
 0x336   :  { %1383 = vmatmul.bf16.vlgmr.msrb.gmra.mxu2 %v1348_v22  ;;  %1396 = vmatmul.bf16.vlgmr.msrb.gmra.mxu3 %v1348_v22 }
 0x337   :  { %1851 = vmatpush.bf16.msrb.mxu0 %v2993_v16  ;;  %1864 = vmatpush.bf16.msrb.mxu1 %v2995_v17 }
 0x338   :  { %1877 = vmatpush.bf16.msrb.mxu2 %v3006_v21  ;;  %1890 = vmatpush.bf16.msrb.mxu3 %v3019_v25 }
 0x33a   :  { %v3850_v4 = vld [vmem:[#allocation1] sm:$0xff] }
 0x33b   :  { %1333 = vst [vmem:[#allocation1] ss:$9 sm:$0xff] %v1309_v38  ;;  %1852 = vmatpush.bf16.msrb.mxu0 %v3021_v26  ;;  %1865 = vmatpush.bf16.msrb.mxu1 %v3033_v30  ;;  %v1347_v38 = vld [vmem:[#allocation2 + $0x24] ss:$8 sm:$0xf] }
 0x33c   :  { %1335 = vst [vmem:[#allocation1 + $0x1] ss:$9 sm:$0xff] %v1310_v3  ;;  %1878 = vmatpush.bf16.msrb.mxu2 %v3045_v34  ;;  %1891 = vmatpush.bf16.msrb.mxu3 %v3047_v35 }
 0x33f   :  { %1853 = vmatpush.bf16.msrb.mxu0 %v3069_v42  ;;  %1866 = vmatpush.bf16.msrb.mxu1 %v3071_v43 }
 0x340   :  { %1879 = vmatpush.bf16.msrb.mxu2 %v3084_v47  ;;  %1892 = vmatpush.bf16.msrb.mxu3 %v3097_v51 }
 0x343   :  { %v1336_v9 = vld [vmem:[#allocation1] sm:$0xff]  ;;  %1854 = vmatpush.bf16.msrb.mxu0 %v3118_v57  ;;  %1867 = vmatpush.bf16.msrb.mxu1 %v3120_v58 }
 0x344   :  { %1880 = vmatpush.bf16.msrb.mxu2 %v3126_v60  ;;  %1893 = vmatpush.bf16.msrb.mxu3 %v3138_v0  ;;  %v1338_v53 = vsel %vm1316_vm15, %v1336_v9, 0.0 }
 0x345   :  { %v1340_v7 = vrot.slane %v1338_v53, 1  ;;  %1342 = vst [vmem:[#allocation3 + $0x3] sm:$0x1] %v1338_v53 }
 0x347   :  { %1855 = vmatpush.bf16.msrb.mxu0 %v3154_v5  ;;  %1868 = vmatpush.bf16.msrb.mxu1 %v3156_v6  ;;  %1343 = vst [vmem:[#allocation3 + $0xb] sm:$0x1] %v1340_v7 }
 0x348   :  { %1881 = vmatpush.bf16.msrb.mxu2 %v3162_v8  ;;  %1894 = vmatpush.bf16.msrb.mxu3 %v3174_v12 }
 0x34b   :  { %1856 = vmatpush.bf16.msrb.mxu0 %v3190_v19  ;;  %1869 = vmatpush.bf16.msrb.mxu1 %v3192_v20 }
 0x34c   :  { %1882 = vmatpush.bf16.msrb.mxu2 %v3201_v24  ;;  %1895 = vmatpush.bf16.msrb.mxu3 %v3213_v31 }
 0x34f   :  { %1857 = vmatpush.bf16.msrb.mxu0 %v3231_v39  ;;  %1870 = vmatpush.bf16.msrb.mxu1 %v3233_v40 }
 0x350   :  { %1883 = vmatpush.bf16.msrb.mxu2 %v4321_v2  ;;  %1896 = vmatpush.bf16.msrb.mxu3 %v4322_v48 }
 0x353   :  { %1858 = vmatpush.bf16.msrb.mxu0 %v4366_v62  ;;  %1871 = vmatpush.bf16.msrb.mxu1 %v4367_v56 }
 0x354   :  { %1884 = vmatpush.bf16.msrb.mxu2 %v4368_v63  ;;  %1897 = vmatpush.bf16.msrb.mxu3 %v4369_v52 }
 0x3b2   :  { %v1358_v37 = vpop.f32.mrf.mxu0  ;;  %v1371_v44 = vpop.f32.mrf.mxu1 }
 0x3b3   :  { %v1405_v49 = vrot.slane %v1371_v44, 7 }
 0x3b5   :  { %v1408_v11 = vsel %vm398_vm4, %v1358_v37, %v1405_v49  ;;  %v1411_v27 = vsel %vm404_vm5, %v1358_v37, %v1405_v49 }
 0x3b9   :  { %v1384_v50 = vpop.f32.mrf.mxu2  ;;  %v1397_v13 = vpop.f32.mrf.mxu3 }
 0x3ba   :  { %v1406_v23 = vrot.slane %v1384_v50, 6  ;;  %v1407_v10 = vrot.slane %v1397_v13, 5  ;;  %v1360_v18 = vpop.f32.mrf.mxu0  ;;  %v1373_v28 = vpop.f32.mrf.mxu1 }
 0x3bc   :  { %v1409_v45 = vsel %vm400_vm6, %v1406_v23, %v1407_v10  ;;  %v1412_v55 = vsel %vm406_vm8, %v1406_v23, %v1407_v10 }
 0x3bd   :  { %v1410_v36 = vsel %vm4370_vm10, %v1408_v11, %v1409_v45  ;;  %v1413_v59 = vsel %vm4371_vm0, %v1411_v27, %v1412_v55 }
 0x3be   :  { %v1414_v29 = vrot.slane %v1413_v59, 1  ;;  %v1417_v61 = vadd.f32 %v1410_v36, %v1345_v41  ;;  %v3900_v59 = vsel %vm1316_vm15, %v3850_v4, %v3766_v1 }
 0x3c0   :  { %v1418_v54 = vadd.f32 %v1414_v29, %v1347_v38  ;;  %v2552_v14 = vmul.f32 -1.442695, %v1417_v61  ;;  %v1459_v3 = vrot.slane %v1417_v61, 1  ;;  %v1507_v33 = vrot.slane %v1417_v61, 3 }
 0x3c1   :  { %v1386_v46 = vpop.f32.mrf.mxu2  ;;  %v1399_v22 = vpop.f32.mrf.mxu3  ;;  %v1501_v23 = vrot.slane %v1417_v61, 2 }
 0x3c2   :  { %2748 = vpow2.f32 %v2552_v14  ;;  %v2553_v9 = vmul.f32 -1.442695, %v1418_v54  ;;  %v1460_v53 = vrot.slane %v1418_v54, 1  ;;  %v2554_v7 = vmul.f32 -1.442695, %v1459_v3 }
 0x3c3   :  { %v1508_v37 = vrot.slane %v1418_v54, 3  ;;  %v2556_v49 = vmul.f32 -1.442695, %v1507_v33  ;;  %v1502_v55 = vrot.slane %v1418_v54, 2 }
 0x3c4   :  { %2750 = vpow2.f32 %v2553_v9  ;;  %v2555_v44 = vmul.f32 -1.442695, %v1460_v53 }
 0x3c5   :  { %2752 = vpow2.f32 %v2554_v7  ;;  %v2557_v50 = vmul.f32 -1.442695, %v1508_v37 }
 0x3c6   :  { %2754 = vpow2.f32 %v2555_v44 }
 0x3c7   :  { %2756 = vpow2.f32 %v2556_v49 }
 0x3c8   :  { %v2749_v13 = vpop.eup %2748  ;;  %2758 = vpow2.f32 %v2557_v50 }
 0x3c9   :  { %v1425_v10 = vadd.f32 1.0, %v2749_v13 }
 0x3ca   :  { %v2751_v18 = vpop.eup %2750 }
 0x3cb   :  { %v2753_v28 = vpop.eup %2752  ;;  %v3888_v11 = vadd.f32 1.0, %v2751_v18  ;;  %2760 = vrcp.f32 %v1425_v10  ;;  %v1436_v38 = vand.u32 2147483647, %v1425_v10  ;;  %v1438_v54 = vand.u32 2147483648, %v1425_v10 }
 0x3cc   :  { %v2755_v27 = vpop.eup %2754  ;;  %v3890_v45 = vadd.f32 1.0, %v2753_v28  ;;  %2762 = vtanh.f32 %v1501_v23  ;;  %vm1432_vm14 = vweird.f32 %v1425_v10 }
 0x3cd   :  { %2764 = vrcp.f32 %v3888_v11  ;;  %v3893_v41 = vadd.f32 1.0, %v2755_v27  ;;  %v2757_v36 = vpop.eup %2756  ;;  %v1451_v33 = vand.u32 2147483647, %v3888_v11  ;;  %vm3913_vm7 = vcmp.eq.f32.partialorder %v1436_v38, 8.507059e+37 }
 0x3ce   :  { %2766 = vrcp.f32 %v3890_v45  ;;  %v2759_v29 = vpop.eup %2758  ;;  %v3903_v61 = vadd.f32 1.0, %v2757_v36  ;;  %v1439_v9 = vor.u32 1.1754944e-38, %v1438_v54  ;;  %vm1447_vm11 = vweird.f32 %v3888_v11 }
 0x3cf   :  { %2768 = vrcp.f32 %v3893_v41  ;;  %v3905_v14 = vadd.f32 1.0, %v2759_v29  ;;  %v1453_v44 = vand.u32 2147483648, %v3888_v11  ;;  %vm1476_vm13 = vweird.f32 %v3890_v45 }
 0x3d0   :  { %2770 = vtanh.f32 %v1502_v55  ;;  %vm3921_vm1 = vcmp.eq.f32.partialorder %v1451_v33, 8.507059e+37  ;;  %v1480_v23 = vand.u32 2147483647, %v3890_v45  ;;  %v1482_v18 = vand.u32 2147483648, %v3890_v45 }
 0x3d1   :  { %v2761_v3 = vpop.eup %2760  ;;  %2772 = vrcp.f32 %v3903_v61  ;;  %v1495_v54 = vand.u32 2147483647, %v3893_v41  ;;  %v1497_v33 = vand.u32 2147483648, %v3893_v41  ;;  %vm1491_vm0 = vweird.f32 %v3893_v41 }
 0x3d2   :  { %v3909_v46 = vpop.eup %2762  ;;  %2774 = vrcp.f32 %v3905_v14  ;;  %v1428_v1 = vmul.f32 %v2761_v3, %v1425_v10  ;;  %vm1433_vm12 = vweird.f32 %v2761_v3 }
 0x3d3   :  { %v2765_v4 = vpop.eup %2764  ;;  %vm1434_vm2 = vmor %vm1432_vm14, %vm1433_vm12  ;;  %vm1481_vm12 = vcmp.eq.f32.partialorder %v1480_v23, 8.507059e+37 }
 0x3d4   :  { %v2767_v53 = vpop.eup %2766  ;;  %v1429_v7 = vsub.f32 1.0, %v1428_v1  ;;  %v1443_v37 = vmul.f32 %v2765_v4, %v3888_v11  ;;  %vm1448_vm3 = vweird.f32 %v2765_v4  ;;  %v1498_v11 = vor.u32 1.1754944e-38, %v1497_v33 }
 0x3d5   :  { %v2769_v49 = vpop.eup %2768  ;;  %v1472_v13 = vmul.f32 %v2767_v53, %v3890_v45  ;;  %vm1477_vm9 = vweird.f32 %v2767_v53  ;;  %vm1449_vm10 = vmor %vm1447_vm11, %vm1448_vm3  ;;  %vm1496_vm3 = vcmp.eq.f32.partialorder %v1495_v54, 8.507059e+37  ;;  %v1545_v54 = vand.u32 2147483648, %v3905_v14 }
 0x3d6   :  { %v2771_v28 = vpop.eup %2770  ;;  %v1430_v27 = vmul.f32 %v2761_v3, %v1429_v7  ;;  %v1444_v55 = vsub.f32 1.0, %v1443_v37  ;;  %v1487_v36 = vmul.f32 %v2769_v49, %v3893_v41  ;;  %vm1492_vm15 = vweird.f32 %v2769_v49  ;;  %vm1478_vm14 = vmor %vm1476_vm13, %vm1477_vm9 }
 0x3d7   :  { %v3929_v29 = vpop.eup %2772  ;;  %v1473_v38 = vsub.f32 1.0, %v1472_v13  ;;  %vm1493_vm11 = vmor %vm1491_vm0, %vm1492_vm15  ;;  %vm1539_vm9 = vweird.f32 %v3905_v14 }
 0x3d8   :  { %v3933_v1 = vpop.eup %2774  ;;  %v1431_v32 = vadd.f32 %v2761_v3, %v1430_v27  ;;  %v1445_v52 = vmul.f32 %v2765_v4, %v1444_v55  ;;  %v1488_v63 = vsub.f32 1.0, %v1487_v36  ;;  %v1520_v7 = vmul.f32 %v3929_v29, %v3903_v61 }
 0x3d9   :  { %v1474_v37 = vmul.f32 %v2767_v53, %v1473_v38  ;;  %v1535_v13 = vmul.f32 %v3933_v1, %v3905_v14  ;;  %v1454_v27 = vor.u32 1.1754944e-38, %v1453_v44  ;;  %vm1540_vm13 = vweird.f32 %v3933_v1 }
 0x3da   :  { %v1435_v56 = vsel %vm1434_vm2, %v2761_v3, %v1431_v32  ;;  %v1446_v62 = vadd.f32 %v2765_v4, %v1445_v52  ;;  %v1489_v48 = vmul.f32 %v2769_v49, %v1488_v63  ;;  %v1521_v2 = vsub.f32 1.0, %v1520_v7  ;;  %vm1541_vm15 = vmor %vm1539_vm9, %vm1540_vm13 }
 0x3db   :  { %v1475_v55 = vadd.f32 %v2767_v53, %v1474_v37  ;;  %v1536_v10 = vsub.f32 1.0, %v1535_v13  ;;  %v1440_v36 = vsel %vm3913_vm7, %v1439_v9, %v1435_v56  ;;  %v1483_v3 = vor.u32 1.1754944e-38, %v1482_v18 }
 0x3dc   :  { %v1450_v38 = vsel %vm1449_vm10, %v2765_v4, %v1446_v62  ;;  %v1490_v52 = vadd.f32 %v2769_v49, %v1489_v48  ;;  %v1522_v22 = vmul.f32 %v3929_v29, %v1521_v2  ;;  %v1554_v48 = vmul.f32 %v3909_v46, %v1440_v36 }
 0x3dd   :  { %v1455_v63 = vsel %vm3921_vm1, %v1454_v27, %v1450_v38  ;;  %v1479_v32 = vsel %vm1478_vm14, %v2767_v53, %v1475_v55  ;;  %v1537_v62 = vmul.f32 %v3933_v1, %v1536_v10  ;;  %v4376_v4 = vrot.slane %v3900_v59, 1 }
 0x3de   :  { %v1484_v44 = vsel %vm1481_vm12, %v1483_v3, %v1479_v32  ;;  %v1494_v41 = vsel %vm1493_vm11, %v2769_v49, %v1490_v52  ;;  %v1555_v53 = vmul.f32 %v2771_v28, %v1455_v63  ;;  %v1523_v23 = vadd.f32 %v3929_v29, %v1522_v22  ;;  %v3969_v3 = vpop.permute.xlu2 %1565  ;;  %v1598_v63 = vld [vmem:[#allocation2 + $0x25] ss:$8 sm:$0xf] }
 0x3df   :  { %v1499_v56 = vsel %vm1496_vm3, %v1498_v11, %v1494_v41  ;;  %v1552_v45 = vmul.f32 %v1484_v44, %v3900_v59  ;;  %vm1525_vm7 = vweird.f32 %v3929_v29  ;;  %v1530_v18 = vand.u32 2147483648, %v3903_v61 }
 0x3e0   :  { %v1553_v9 = vmul.f32 %v4376_v4, %v1499_v56  ;;  %v1538_v2 = vadd.f32 %v3933_v1, %v1537_v62  ;;  %vm1524_vm1 = vweird.f32 %v3903_v61  ;;  %v1528_v46 = vand.u32 2147483647, %v3903_v61 }
 0x3e1   :  { %v1556_v50 = vadd.f32 %v1554_v48, %v1552_v45  ;;  %vm1526_vm2 = vmor %vm1524_vm1, %vm1525_vm7  ;;  %v1543_v28 = vand.u32 2147483647, %v3905_v14  ;;  %v1531_v7 = vor.u32 1.1754944e-38, %v1530_v18  ;;  %v1546_v13 = vor.u32 1.1754944e-38, %v1545_v54 }
 0x3e2   :  { %v1557_v49 = vadd.f32 %v1555_v53, %v1553_v9  ;;  %v1527_v33 = vsel %vm1526_vm2, %v3929_v29, %v1523_v23  ;;  %v1542_v37 = vsel %vm1541_vm15, %v3933_v1, %v1538_v2  ;;  %vm1529_vm10 = vcmp.eq.f32.partialorder %v1528_v46, 8.507059e+37 }
 0x3e3   :  { %2776 = vtanh.f32 %v1556_v50  ;;  %v1532_v55 = vsel %vm1529_vm10, %v1531_v7, %v1527_v33  ;;  %vm1544_vm0 = vcmp.eq.f32.partialorder %v1543_v28, 8.507059e+37  ;;  %vm1567_vm14 = vcmp.eq.s32.totalorder %v3969_v3, 1 }
 0x3e4   :  { %2778 = vtanh.f32 %v1557_v49  ;;  %v1547_v10 = vsel %vm1544_vm0, %v1546_v13, %v1542_v37  ;;  %vm4383_vm12 = vcmask 1041408   ;;  %vm4384_vm11 = vcmask 1042433  }
 0x3e9   :  { %v2777_v27 = vpop.eup %2776 }
 0x3ea   :  { %v2779_v61 = vpop.eup %2778  ;;  %v1560_v36 = vmul.f32 %v2777_v27, %v1532_v55 }
 0x3eb   :  { %v1561_v38 = vmul.f32 %v2779_v61, %v1547_v10 }
 0x3ec   :  { %1570 = vst [vmem:[#allocation1] ss:$9 sm:$0xff] %v1560_v36 }
 0x3ed   :  { %1572 = vst [vmem:[#allocation1 + $0x1] ss:$9 sm:$0xff] %v1561_v38 }
 0x3f4   :  { %v1573_v14 = vld [vmem:[#allocation1] sm:$0xff] }
 0x3f5   :  { %v3975_v29 = vsel %vm1567_vm14, %v1573_v14, %v3842_v15  ;;  %1578 = vst [vmem:[#allocation1] ss:$9 sm:$0xff] %v1556_v50 }
 0x3f6   :  { %1580 = vst [vmem:[#allocation1 + $0x1] ss:$9 sm:$0xff] %v1557_v49  ;;  %v1599_v1 = vpack.c.bf16 %v3975_v29, %v3975_v29 }
 0x3f8   :  { %1608 = vmatmul.bf16.vlgmr.msra.gmra.mxu0 %v1599_v1  ;;  %1621 = vmatmul.bf16.vlgmr.msra.gmra.mxu1 %v1599_v1 }
 0x3f9   :  { %1634 = vmatmul.bf16.vlgmr.msra.gmra.mxu2 %v1599_v1  ;;  %1647 = vmatmul.bf16.vlgmr.msra.gmra.mxu3 %v1599_v1 }
 0x3fa   :  { %2102 = vmatpush.bf16.msra.mxu0 %v2993_v16  ;;  %2115 = vmatpush.bf16.msra.mxu1 %v2995_v17 }
 0x3fb   :  { %2128 = vmatpush.bf16.msra.mxu2 %v3006_v21  ;;  %2141 = vmatpush.bf16.msra.mxu3 %v3019_v25  ;;  %v4377_v25 = vld [vmem:[#allocation6_spill] sm:$0xff] }
 0x3fd   :  { %v3983_v52 = vld [vmem:[#allocation1] sm:$0xff] }
 0x3fe   :  { %1584 = vst [vmem:[#allocation1] ss:$9 sm:$0xff] %v1560_v36  ;;  %2103 = vmatpush.bf16.msra.mxu0 %v3021_v26  ;;  %2116 = vmatpush.bf16.msra.mxu1 %v3033_v30  ;;  %v4378_v26 = vld [vmem:[#allocation7_spill] sm:$0xff]  ;;  %v4379_v30 = vld [vmem:[#allocation8_spill] sm:$0xff]  ;;  %v4033_v55 = vsel %vm1567_vm14, %v3983_v52, %v3900_v59 }
 0x3ff   :  { %1586 = vst [vmem:[#allocation1 + $0x1] ss:$9 sm:$0xff] %v1561_v38  ;;  %2129 = vmatpush.bf16.msra.mxu2 %v3045_v34  ;;  %2142 = vmatpush.bf16.msra.mxu3 %v3047_v35  ;;  %v4380_v34 = vld [vmem:[#allocation9_spill] sm:$0xff]  ;;  %v4381_v35 = vld [vmem:[#allocation10_spill] sm:$0xff]  ;;  %v1801_v1 = vrot.slane %v4033_v55, 1 }
 0x402   :  { %2104 = vmatpush.bf16.msra.mxu0 %v3069_v42  ;;  %2117 = vmatpush.bf16.msra.mxu1 %v3071_v43  ;;  %v4382_v42 = vld [vmem:[#allocation11_spill] sm:$0xff] }
 0x403   :  { %2130 = vmatpush.bf16.msra.mxu2 %v3084_v47  ;;  %2143 = vmatpush.bf16.msra.mxu3 %v3097_v51 }
 0x406   :  { %v1587_v16 = vld [vmem:[#allocation1] sm:$0xff]  ;;  %2105 = vmatpush.bf16.msra.mxu0 %v3118_v57  ;;  %2118 = vmatpush.bf16.msra.mxu1 %v3120_v58 }
 0x407   :  { %v1589_v17 = vsel %vm1567_vm14, %v1587_v16, 0.0  ;;  %2131 = vmatpush.bf16.msra.mxu2 %v3126_v60  ;;  %2144 = vmatpush.bf16.msra.mxu3 %v3138_v0 }
 0x408   :  { %v1591_v21 = vrot.slane %v1589_v17, 1  ;;  %1593 = vst [vmem:[#allocation3 + $0x4] sm:$0x1] %v1589_v17 }
 0x40a   :  { %1594 = vst [vmem:[#allocation3 + $0xc] sm:$0x1] %v1591_v21  ;;  %2106 = vmatpush.bf16.msra.mxu0 %v3154_v5  ;;  %2119 = vmatpush.bf16.msra.mxu1 %v3156_v6 }
 0x40b   :  { %2132 = vmatpush.bf16.msra.mxu2 %v3162_v8  ;;  %2145 = vmatpush.bf16.msra.mxu3 %v3174_v12 }
 0x40e   :  { %2107 = vmatpush.bf16.msra.mxu0 %v3190_v19  ;;  %2120 = vmatpush.bf16.msra.mxu1 %v3192_v20 }
 0x40f   :  { %2133 = vmatpush.bf16.msra.mxu2 %v3201_v24  ;;  %2146 = vmatpush.bf16.msra.mxu3 %v3213_v31  ;;  %v1596_v24 = vld [vmem:[#allocation2 + $0x5] ss:$8 sm:$0xf] }
 0x412   :  { %2108 = vmatpush.bf16.msra.mxu0 %v3231_v39  ;;  %2121 = vmatpush.bf16.msra.mxu1 %v3233_v40 }
 0x413   :  { %2134 = vmatpush.bf16.msra.mxu2 %v4377_v25  ;;  %2147 = vmatpush.bf16.msra.mxu3 %v4378_v26 }
 0x416   :  { %2109 = vmatpush.bf16.msra.mxu0 %v4379_v30  ;;  %2122 = vmatpush.bf16.msra.mxu1 %v4380_v34 }
 0x417   :  { %2135 = vmatpush.bf16.msra.mxu2 %v4381_v35  ;;  %2148 = vmatpush.bf16.msra.mxu3 %v4382_v42 }
 0x475   :  { %v1609_v43 = vpop.f32.mrf.mxu0  ;;  %v1622_v47 = vpop.f32.mrf.mxu1 }
 0x476   :  { %v1656_v51 = vrot.slane %v1622_v47, 7 }
 0x478   :  { %v1659_v8 = vsel %vm398_vm4, %v1609_v43, %v1656_v51  ;;  %v1662_v12 = vsel %vm404_vm5, %v1609_v43, %v1656_v51 }
 0x47c   :  { %v1635_v57 = vpop.f32.mrf.mxu2  ;;  %v1648_v58 = vpop.f32.mrf.mxu3 }
 0x47d   :  { %v1657_v60 = vrot.slane %v1635_v57, 6  ;;  %v1658_v0 = vrot.slane %v1648_v58, 5  ;;  %v1611_v5 = vpop.f32.mrf.mxu0  ;;  %v1624_v6 = vpop.f32.mrf.mxu1 }
 0x47f   :  { %v1660_v19 = vsel %vm400_vm6, %v1657_v60, %v1658_v0  ;;  %v1663_v20 = vsel %vm406_vm8, %v1657_v60, %v1658_v0 }
 0x480   :  { %v1661_v31 = vsel %vm4383_vm12, %v1659_v8, %v1660_v19  ;;  %v1664_v39 = vsel %vm4384_vm11, %v1662_v12, %v1663_v20 }
 0x481   :  { %v1665_v40 = vrot.slane %v1664_v39, 1  ;;  %v1668_v15 = vadd.f32 %v1661_v31, %v1596_v24 }
 0x483   :  { %v1669_v32 = vadd.f32 %v1665_v40, %v1598_v63  ;;  %v2558_v11 = vmul.f32 -1.442695, %v1668_v15  ;;  %v1710_v44 = vrot.slane %v1668_v15, 1  ;;  %v1758_v41 = vrot.slane %v1668_v15, 3 }
 0x484   :  { %v1637_v22 = vpop.f32.mrf.mxu2  ;;  %v1650_v56 = vpop.f32.mrf.mxu3  ;;  %v1752_v33 = vrot.slane %v1668_v15, 2 }
 0x485   :  { %2780 = vpow2.f32 %v2558_v11  ;;  %v2559_v62 = vmul.f32 -1.442695, %v1669_v32  ;;  %v1711_v45 = vrot.slane %v1669_v32, 1  ;;  %v2560_v48 = vmul.f32 -1.442695, %v1710_v44 }
 0x486   :  { %v1759_v4 = vrot.slane %v1669_v32, 3  ;;  %v2562_v53 = vmul.f32 -1.442695, %v1758_v41  ;;  %v1753_v13 = vrot.slane %v1669_v32, 2 }
 0x487   :  { %2782 = vpow2.f32 %v2559_v62  ;;  %v2561_v9 = vmul.f32 -1.442695, %v1711_v45 }
 0x488   :  { %2784 = vpow2.f32 %v2560_v48  ;;  %v2563_v50 = vmul.f32 -1.442695, %v1759_v4 }
 0x489   :  { %2786 = vpow2.f32 %v2561_v9 }
 0x48a   :  { %2788 = vpow2.f32 %v2562_v53 }
 0x48b   :  { %v2781_v23 = vpop.eup %2780  ;;  %2790 = vpow2.f32 %v2563_v50 }
 0x48c   :  { %v1676_v49 = vadd.f32 1.0, %v2781_v23 }
 0x48d   :  { %v2783_v18 = vpop.eup %2782 }
 0x48e   :  { %v2785_v2 = vpop.eup %2784  ;;  %v4021_v46 = vadd.f32 1.0, %v2783_v18  ;;  %2792 = vrcp.f32 %v1676_v49  ;;  %v1687_v61 = vand.u32 2147483647, %v1676_v49  ;;  %v1689_v10 = vand.u32 2147483648, %v1676_v49 }
 0x48f   :  { %v2787_v54 = vpop.eup %2786  ;;  %v4023_v28 = vadd.f32 1.0, %v2785_v2  ;;  %vm1683_vm3 = vweird.f32 %v1676_v49 }
 0x490   :  { %2794 = vrcp.f32 %v4021_v46  ;;  %v2789_v7 = vpop.eup %2788  ;;  %v4026_v37 = vadd.f32 1.0, %v2787_v54  ;;  %v1702_v38 = vand.u32 2147483647, %v4021_v46  ;;  %vm4042_vm7 = vcmp.eq.f32.partialorder %v1687_v61, 8.507059e+37 }
 0x491   :  { %2796 = vrcp.f32 %v4023_v28  ;;  %v2791_v27 = vpop.eup %2790  ;;  %v4037_v14 = vadd.f32 1.0, %v2789_v7  ;;  %v1704_v3 = vand.u32 2147483648, %v4021_v46  ;;  %v1690_v26 = vor.u32 1.1754944e-38, %v1689_v10 }
 0x492   :  { %2798 = vrcp.f32 %v4026_v37  ;;  %v4040_v17 = vadd.f32 1.0, %v2791_v27  ;;  %vm1698_vm13 = vweird.f32 %v4021_v46  ;;  %vm4050_vm1 = vcmp.eq.f32.partialorder %v1702_v38, 8.507059e+37 }
 0x493   :  { %2800 = vtanh.f32 %v1752_v33  ;;  %vm1727_vm2 = vweird.f32 %v4023_v28  ;;  %v1731_v51 = vand.u32 2147483647, %v4023_v28  ;;  %v1705_v58 = vor.u32 1.1754944e-38, %v1704_v3 }
 0x494   :  { %v2793_v36 = vpop.eup %2792  ;;  %2802 = vtanh.f32 %v1753_v13  ;;  %v1733_v0 = vand.u32 2147483648, %v4023_v28  ;;  %vm1742_vm10 = vweird.f32 %v4026_v37  ;;  %v1748_v39 = vand.u32 2147483648, %v4026_v37 }
 0x495   :  { %v1679_v16 = vmul.f32 %v2793_v36, %v1676_v49  ;;  %2804 = vrcp.f32 %v4037_v14  ;;  %vm1684_vm9 = vweird.f32 %v2793_v36  ;;  %v1746_v63 = vand.u32 2147483647, %v4026_v37 }
 0x496   :  { %v2795_v21 = vpop.eup %2794  ;;  %2806 = vrcp.f32 %v4040_v17  ;;  %vm4062_vm0 = vmor %vm1683_vm3, %vm1684_vm9  ;;  %v1734_v41 = vor.u32 1.1754944e-38, %v1733_v0  ;;  %vm1732_vm9 = vcmp.eq.f32.partialorder %v1731_v51, 8.507059e+37  ;;  %v1749_v53 = vor.u32 1.1754944e-38, %v1748_v39 }
 0x497   :  { %v2797_v52 = vpop.eup %2796  ;;  %v1680_v25 = vsub.f32 1.0, %v1679_v16  ;;  %v1694_v30 = vmul.f32 %v2795_v21, %v4021_v46  ;;  %vm1699_vm15 = vweird.f32 %v2795_v21  ;;  %v1781_v10 = vand.u32 2147483648, %v4037_v14 }
 0x498   :  { %v1723_v35 = vmul.f32 %v2797_v52, %v4023_v28  ;;  %v2799_v42 = vpop.eup %2798  ;;  %vm1728_vm14 = vweird.f32 %v2797_v52  ;;  %vm1700_vm12 = vmor %vm1698_vm13, %vm1699_vm15  ;;  %v1796_v16 = vand.u32 2147483648, %v4040_v17 }
 0x499   :  { %v1681_v43 = vmul.f32 %v2793_v36, %v1680_v25  ;;  %v1695_v47 = vsub.f32 1.0, %v1694_v30  ;;  %v2801_v57 = vpop.eup %2800  ;;  %v1738_v5 = vmul.f32 %v2799_v42, %v4026_v37  ;;  %vm1743_vm11 = vweird.f32 %v2799_v42  ;;  %vm1729_vm3 = vmor %vm1727_vm2, %vm1728_vm14 }
 0x49a   :  { %v1724_v60 = vsub.f32 1.0, %v1723_v35  ;;  %v2803_v6 = vpop.eup %2802  ;;  %vm1744_vm13 = vmor %vm1742_vm10, %vm1743_vm11  ;;  %vm1775_vm2 = vweird.f32 %v4037_v14  ;;  %v1782_v59 = vor.u32 1.1754944e-38, %v1781_v10 }
 0x49b   :  { %v1682_v8 = vadd.f32 %v2793_v36, %v1681_v43  ;;  %v1696_v12 = vmul.f32 %v2795_v21, %v1695_v47  ;;  %v2805_v19 = vpop.eup %2804  ;;  %v1739_v31 = vsub.f32 1.0, %v1738_v5 }
 0x49c   :  { %v1725_v24 = vmul.f32 %v2797_v52, %v1724_v60  ;;  %v1771_v32 = vmul.f32 %v2805_v19, %v4037_v14  ;;  %v2807_v11 = vpop.eup %2806 }
 0x49d   :  { %v1686_v40 = vsel %vm4062_vm0, %v2793_v36, %v1682_v8  ;;  %v1697_v15 = vadd.f32 %v2795_v21, %v1696_v12  ;;  %v1740_v22 = vmul.f32 %v2799_v42, %v1739_v31  ;;  %v1786_v48 = vmul.f32 %v2807_v11, %v4040_v17 }
 0x49e   :  { %v1726_v44 = vadd.f32 %v2797_v52, %v1725_v24  ;;  %v1691_v56 = vsel %vm4042_vm7, %v1690_v26, %v1686_v40  ;;  %v1772_v45 = vsub.f32 1.0, %v1771_v32  ;;  %vm1747_vm7 = vcmp.eq.f32.partialorder %v1746_v63, 8.507059e+37  ;;  %v1847_v63 = vld [vmem:[#allocation2 + $0x6] ss:$8 sm:$0xf] }
 0x49f   :  { %v1701_v62 = vsel %vm1700_vm12, %v2795_v21, %v1697_v15  ;;  %v1741_v9 = vadd.f32 %v2799_v42, %v1740_v22  ;;  %v1787_v18 = vsub.f32 1.0, %v1786_v48  ;;  %v1805_v54 = vmul.f32 %v2801_v57, %v1691_v56  ;;  %v1849_v22 = vld [vmem:[#allocation2 + $0x26] ss:$8 sm:$0xf] }
 0x4a0   :  { %v1730_v4 = vsel %vm1729_vm3, %v2797_v52, %v1726_v44  ;;  %v1706_v50 = vsel %vm4050_vm1, %v1705_v58, %v1701_v62  ;;  %v1773_v49 = vmul.f32 %v2805_v19, %v1772_v45  ;;  %vm1776_vm1 = vweird.f32 %v2805_v19 }
 0x4a1   :  { %v1735_v23 = vsel %vm1732_vm9, %v1734_v41, %v1730_v4  ;;  %v1745_v2 = vsel %vm1744_vm13, %v2799_v42, %v1741_v9  ;;  %v1788_v33 = vmul.f32 %v2807_v11, %v1787_v18  ;;  %v1806_v13 = vmul.f32 %v2803_v6, %v1706_v50  ;;  %vm1777_vm10 = vmor %vm1775_vm2, %vm1776_vm1  ;;  %v4092_v42 = vpop.permute.xlu2 %1816 }
 0x4a2   :  { %v1803_v46 = vmul.f32 %v1735_v23, %v4033_v55  ;;  %v1750_v28 = vsel %vm1747_vm7, %v1749_v53, %v1745_v2  ;;  %v1774_v61 = vadd.f32 %v2805_v19, %v1773_v49  ;;  %v1779_v36 = vand.u32 2147483647, %v4037_v14 }
 0x4a3   :  { %v1804_v7 = vmul.f32 %v1801_v1, %v1750_v28  ;;  %v1789_v38 = vadd.f32 %v2807_v11, %v1788_v33  ;;  %vm1791_vm15 = vweird.f32 %v2807_v11  ;;  %vm1790_vm0 = vweird.f32 %v4040_v17 }
 0x4a4   :  { %v1807_v27 = vadd.f32 %v1805_v54, %v1803_v46  ;;  %v1778_v21 = vsel %vm1777_vm10, %v2805_v19, %v1774_v61  ;;  %v1794_v1 = vand.u32 2147483647, %v4040_v17  ;;  %vm1792_vm14 = vmor %vm1790_vm0, %vm1791_vm15  ;;  %vm1780_vm12 = vcmp.eq.f32.partialorder %v1779_v36, 8.507059e+37 }
 0x4a5   :  { %v1808_v37 = vadd.f32 %v1806_v13, %v1804_v7  ;;  %v1793_v3 = vsel %vm1792_vm14, %v2807_v11, %v1789_v38  ;;  %v1783_v25 = vsel %vm1780_vm12, %v1782_v59, %v1778_v21  ;;  %v1797_v26 = vor.u32 1.1754944e-38, %v1796_v16 }
 0x4a6   :  { %2808 = vtanh.f32 %v1807_v27  ;;  %vm1795_vm11 = vcmp.eq.f32.partialorder %v1794_v1, 8.507059e+37  ;;  %vm1818_vm3 = vcmp.eq.s32.totalorder %v4092_v42, 1  ;;  %vm4391_vm9 = vcmask 1041408  }
 0x4a7   :  { %2810 = vtanh.f32 %v1808_v37  ;;  %v1798_v34 = vsel %vm1795_vm11, %v1797_v26, %v1793_v3  ;;  %vm4392_vm13 = vcmask 1042433  }
 0x4ac   :  { %v2809_v52 = vpop.eup %2808 }
 0x4ad   :  { %v1811_v14 = vmul.f32 %v2809_v52, %v1783_v25  ;;  %v2811_v30 = vpop.eup %2810 }
 0x4ae   :  { %v1812_v35 = vmul.f32 %v2811_v30, %v1798_v34 }
 0x4af   :  { %1821 = vst [vmem:[#allocation1] ss:$9 sm:$0xff] %v1811_v14 }
 0x4b0   :  { %1823 = vst [vmem:[#allocation1 + $0x1] ss:$9 sm:$0xff] %v1812_v35 }
 0x4b7   :  { %v1824_v43 = vld [vmem:[#allocation1] sm:$0xff] }
 0x4b8   :  { %v4098_v17 = vsel %vm1818_vm3, %v1824_v43, %v3975_v29  ;;  %1829 = vst [vmem:[#allocation1] ss:$9 sm:$0xff] %v1807_v27 }
 0x4b9   :  { %v1850_v47 = vpack.c.bf16 %v4098_v17, %v4098_v17  ;;  %1831 = vst [vmem:[#allocation1 + $0x1] ss:$9 sm:$0xff] %v1808_v37 }
 0x4bb   :  { %1859 = vmatmul.bf16.vlgmr.msrb.gmra.mxu0 %v1850_v47  ;;  %1872 = vmatmul.bf16.vlgmr.msrb.gmra.mxu1 %v1850_v47 }
 0x4bc   :  { %1885 = vmatmul.bf16.vlgmr.msrb.gmra.mxu2 %v1850_v47  ;;  %1898 = vmatmul.bf16.vlgmr.msrb.gmra.mxu3 %v1850_v47 }
 0x4c0   :  { %v1832_v51 = vld [vmem:[#allocation1] sm:$0xff] }
 0x4c1   :  { %1835 = vst [vmem:[#allocation1] ss:$9 sm:$0xff] %v1811_v14  ;;  %v4121_v21 = vsel %vm1818_vm3, %v1832_v51, %v4033_v55 }
 0x4c2   :  { %1837 = vst [vmem:[#allocation1 + $0x1] ss:$9 sm:$0xff] %v1812_v35  ;;  %v2052_v30 = vrot.slane %v4121_v21, 1 }
 0x4c9   :  { %v1838_v57 = vld [vmem:[#allocation1] sm:$0xff] }
 0x4ca   :  { %v1840_v58 = vsel %vm1818_vm3, %v1838_v57, 0.0 }
 0x4cb   :  { %v1842_v60 = vrot.slane %v1840_v58, 1  ;;  %1844 = vst [vmem:[#allocation3 + $0x5] sm:$0x1] %v1840_v58 }
 0x4cd   :  { %1845 = vst [vmem:[#allocation3 + $0xd] sm:$0x1] %v1842_v60 }
 0x538   :  { %v1860_v29 = vpop.f32.mrf.mxu0  ;;  %v1873_v0 = vpop.f32.mrf.mxu1 }
 0x539   :  { %v1907_v5 = vrot.slane %v1873_v0, 7 }
 0x53b   :  { %v1910_v31 = vsel %vm398_vm4, %v1860_v29, %v1907_v5  ;;  %v1913_v39 = vsel %vm404_vm5, %v1860_v29, %v1907_v5 }
 0x53f   :  { %v1886_v6 = vpop.f32.mrf.mxu2  ;;  %v1899_v8 = vpop.f32.mrf.mxu3 }
 0x540   :  { %v1908_v12 = vrot.slane %v1886_v6, 6  ;;  %v1909_v19 = vrot.slane %v1899_v8, 5  ;;  %v1862_v20 = vpop.f32.mrf.mxu0  ;;  %v1875_v24 = vpop.f32.mrf.mxu1 }
 0x542   :  { %v1911_v40 = vsel %vm400_vm6, %v1908_v12, %v1909_v19  ;;  %v1914_v15 = vsel %vm406_vm8, %v1908_v12, %v1909_v19 }
 0x543   :  { %v1912_v32 = vsel %vm4391_vm9, %v1910_v31, %v1911_v40  ;;  %v1915_v11 = vsel %vm4392_vm13, %v1913_v39, %v1914_v15 }
 0x544   :  { %v1916_v44 = vrot.slane %v1915_v11, 1  ;;  %v1919_v41 = vadd.f32 %v1912_v32, %v1847_v63 }
 0x546   :  { %v1920_v56 = vadd.f32 %v1916_v44, %v1849_v22  ;;  %v2564_v62 = vmul.f32 -1.442695, %v1919_v41  ;;  %v1961_v45 = vrot.slane %v1919_v41, 1  ;;  %v2009_v48 = vrot.slane %v1919_v41, 3 }
 0x547   :  { %v1888_v4 = vpop.f32.mrf.mxu2  ;;  %v1901_v9 = vpop.f32.mrf.mxu3  ;;  %v2003_v10 = vrot.slane %v1919_v41, 2 }
 0x548   :  { %2812 = vpow2.f32 %v2564_v62  ;;  %v2565_v53 = vmul.f32 -1.442695, %v1920_v56  ;;  %v1962_v50 = vrot.slane %v1920_v56, 1  ;;  %v2566_v23 = vmul.f32 -1.442695, %v1961_v45 }
 0x549   :  { %v2010_v49 = vrot.slane %v1920_v56, 3  ;;  %v2568_v2 = vmul.f32 -1.442695, %v2009_v48  ;;  %v2004_v38 = vrot.slane %v1920_v56, 2 }
 0x54a   :  { %2814 = vpow2.f32 %v2565_v53  ;;  %v2567_v18 = vmul.f32 -1.442695, %v1962_v50 }
 0x54b   :  { %2816 = vpow2.f32 %v2566_v23  ;;  %v2569_v46 = vmul.f32 -1.442695, %v2010_v49 }
 0x54c   :  { %2818 = vpow2.f32 %v2567_v18 }
 0x54d   :  { %2820 = vpow2.f32 %v2568_v2 }
 0x54e   :  { %v2813_v54 = vpop.eup %2812  ;;  %2822 = vpow2.f32 %v2569_v46 }
 0x54f   :  { %v1927_v28 = vadd.f32 1.0, %v2813_v54 }
 0x550   :  { %v2815_v33 = vpop.eup %2814 }
 0x551   :  { %v2817_v7 = vpop.eup %2816  ;;  %v4110_v13 = vadd.f32 1.0, %v2815_v33  ;;  %2824 = vrcp.f32 %v1927_v28  ;;  %v1938_v1 = vand.u32 2147483647, %v1927_v28  ;;  %v1940_v59 = vand.u32 2147483648, %v1927_v28 }
 0x552   :  { %v2819_v27 = vpop.eup %2818  ;;  %v4112_v61 = vadd.f32 1.0, %v2817_v7  ;;  %vm1934_vm7 = vweird.f32 %v1927_v28 }
 0x553   :  { %2826 = vrcp.f32 %v4110_v13  ;;  %v2821_v37 = vpop.eup %2820  ;;  %v4115_v36 = vadd.f32 1.0, %v2819_v27  ;;  %v1953_v52 = vand.u32 2147483647, %v4110_v13  ;;  %vm4130_vm1 = vcmp.eq.f32.partialorder %v1938_v1, 8.507059e+37 }
 0x554   :  { %2828 = vrcp.f32 %v4112_v61  ;;  %v2823_v16 = vpop.eup %2822  ;;  %v4125_v25 = vadd.f32 1.0, %v2821_v37  ;;  %v1955_v35 = vand.u32 2147483648, %v4110_v13  ;;  %v1941_v47 = vor.u32 1.1754944e-38, %v1940_v59 }
 0x555   :  { %2830 = vrcp.f32 %v4115_v36  ;;  %v4127_v14 = vadd.f32 1.0, %v2823_v16  ;;  %vm1949_vm2 = vweird.f32 %v4110_v13  ;;  %vm4138_vm15 = vcmp.eq.f32.partialorder %v1953_v52, 8.507059e+37 }
 0x556   :  { %2832 = vtanh.f32 %v2003_v10  ;;  %vm1978_vm10 = vweird.f32 %v4112_v61  ;;  %v1982_v5 = vand.u32 2147483647, %v4112_v61  ;;  %v1956_v8 = vor.u32 1.1754944e-38, %v1955_v35 }
 0x557   :  { %v2825_v3 = vpop.eup %2824  ;;  %2834 = vtanh.f32 %v2004_v38  ;;  %v1984_v19 = vand.u32 2147483648, %v4112_v61  ;;  %vm1993_vm12 = vweird.f32 %v4115_v36  ;;  %v1999_v11 = vand.u32 2147483648, %v4115_v36 }
 0x558   :  { %v1930_v26 = vmul.f32 %v2825_v3, %v1927_v28  ;;  %2836 = vrcp.f32 %v4125_v25  ;;  %vm1935_vm0 = vweird.f32 %v2825_v3  ;;  %v1997_v22 = vand.u32 2147483647, %v4115_v36 }
 0x559   :  { %v2827_v34 = vpop.eup %2826  ;;  %2838 = vrcp.f32 %v4127_v14  ;;  %vm4150_vm11 = vmor %vm1934_vm7, %vm1935_vm0  ;;  %v1985_v48 = vor.u32 1.1754944e-38, %v1984_v19  ;;  %vm1983_vm0 = vcmp.eq.f32.partialorder %v1982_v5, 8.507059e+37  ;;  %v2000_v2 = vor.u32 1.1754944e-38, %v1999_v11 }
 0x55a   :  { %v2829_v42 = vpop.eup %2828  ;;  %v1931_v43 = vsub.f32 1.0, %v1930_v26  ;;  %v1945_v51 = vmul.f32 %v2827_v34, %v4110_v13  ;;  %vm1950_vm14 = vweird.f32 %v2827_v34  ;;  %v2032_v59 = vand.u32 2147483648, %v4125_v25 }
 0x55b   :  { %v1974_v58 = vmul.f32 %v2829_v42, %v4112_v61  ;;  %v2831_v60 = vpop.eup %2830  ;;  %vm1979_vm3 = vweird.f32 %v2829_v42  ;;  %vm1951_vm9 = vmor %vm1949_vm2, %vm1950_vm14  ;;  %v2047_v26 = vand.u32 2147483648, %v4127_v14 }
 0x55c   :  { %v1932_v29 = vmul.f32 %v2825_v3, %v1931_v43  ;;  %v1946_v0 = vsub.f32 1.0, %v1945_v51  ;;  %v2833_v6 = vpop.eup %2832  ;;  %v1989_v20 = vmul.f32 %v2831_v60, %v4115_v36  ;;  %vm1994_vm13 = vweird.f32 %v2831_v60  ;;  %vm1980_vm7 = vmor %vm1978_vm10, %vm1979_vm3 }
 0x55d   :  { %v1975_v12 = vsub.f32 1.0, %v1974_v58  ;;  %v2835_v24 = vpop.eup %2834  ;;  %vm1995_vm2 = vmor %vm1993_vm12, %vm1994_vm13  ;;  %vm2026_vm10 = vweird.f32 %v4125_v25  ;;  %v2033_v55 = vor.u32 1.1754944e-38, %v2032_v59 }
 0x55e   :  { %v1933_v31 = vadd.f32 %v2825_v3, %v1932_v29  ;;  %v1947_v39 = vmul.f32 %v2827_v34, %v1946_v0  ;;  %v2837_v40 = vpop.eup %2836  ;;  %v1990_v32 = vsub.f32 1.0, %v1989_v20 }
 0x55f   :  { %v1976_v63 = vmul.f32 %v2829_v42, %v1975_v12  ;;  %v2022_v56 = vmul.f32 %v2837_v40, %v4125_v25  ;;  %v2839_v62 = vpop.eup %2838 }
 0x560   :  { %v1937_v44 = vsel %vm4150_vm11, %v2825_v3, %v1933_v31  ;;  %v1948_v41 = vadd.f32 %v2827_v34, %v1947_v39  ;;  %v1991_v4 = vmul.f32 %v2831_v60, %v1990_v32  ;;  %v2037_v23 = vmul.f32 %v2839_v62, %v4127_v14 }
 0x561   :  { %v1977_v45 = vadd.f32 %v2829_v42, %v1976_v63  ;;  %v1942_v9 = vsel %vm4130_vm1, %v1941_v47, %v1937_v44  ;;  %v2023_v50 = vsub.f32 1.0, %v2022_v56  ;;  %vm1998_vm1 = vcmp.eq.f32.partialorder %v1997_v22, 8.507059e+37  ;;  %v2098_v22 = vld [vmem:[#allocation2 + $0x7] ss:$8 sm:$0xf] }
 0x562   :  { %v1952_v53 = vsel %vm1951_vm9, %v2827_v34, %v1948_v41  ;;  %v1992_v18 = vadd.f32 %v2831_v60, %v1991_v4  ;;  %v2038_v33 = vsub.f32 1.0, %v2037_v23  ;;  %v2056_v27 = vmul.f32 %v2833_v6, %v1942_v9  ;;  %v2100_v4 = vld [vmem:[#allocation2 + $0x27] ss:$8 sm:$0xf] }
 0x563   :  { %v1981_v49 = vsel %vm1980_vm7, %v2829_v42, %v1977_v45  ;;  %v1957_v46 = vsel %vm4138_vm15, %v1956_v8, %v1952_v53  ;;  %v2024_v28 = vmul.f32 %v2837_v40, %v2023_v50  ;;  %vm2027_vm15 = vweird.f32 %v2837_v40 }
 0x564   :  { %v1986_v54 = vsel %vm1983_vm0, %v1985_v48, %v1981_v49  ;;  %v1996_v7 = vsel %vm1995_vm2, %v2831_v60, %v1992_v18  ;;  %v2039_v10 = vmul.f32 %v2839_v62, %v2038_v33  ;;  %v2057_v38 = vmul.f32 %v2835_v24, %v1957_v46  ;;  %vm2028_vm12 = vmor %vm2026_vm10, %vm2027_vm15  ;;  %v4180_v60 = vpop.permute.xlu0 %2067 }
 0x565   :  { %v2054_v13 = vmul.f32 %v1986_v54, %v4121_v21  ;;  %v2001_v61 = vsel %vm1998_vm1, %v2000_v2, %v1996_v7  ;;  %v2025_v1 = vadd.f32 %v2837_v40, %v2024_v28  ;;  %v2030_v3 = vand.u32 2147483647, %v4125_v25 }
 0x566   :  { %v2055_v37 = vmul.f32 %v2052_v30, %v2001_v61  ;;  %v2040_v52 = vadd.f32 %v2839_v62, %v2039_v10  ;;  %vm2042_vm14 = vweird.f32 %v2839_v62  ;;  %vm2041_vm11 = vweird.f32 %v4127_v14 }
 0x567   :  { %v2058_v16 = vadd.f32 %v2056_v27, %v2054_v13  ;;  %v2029_v34 = vsel %vm2028_vm12, %v2837_v40, %v2025_v1  ;;  %v2045_v30 = vand.u32 2147483647, %v4127_v14  ;;  %vm2043_vm3 = vmor %vm2041_vm11, %vm2042_vm14  ;;  %vm2031_vm9 = vcmp.eq.f32.partialorder %v2030_v3, 8.507059e+37 }
 0x568   :  { %v2059_v36 = vadd.f32 %v2057_v38, %v2055_v37  ;;  %v2044_v35 = vsel %vm2043_vm3, %v2839_v62, %v2040_v52  ;;  %v2034_v43 = vsel %vm2031_vm9, %v2033_v55, %v2029_v34  ;;  %v2048_v47 = vor.u32 1.1754944e-38, %v2047_v26 }
 0x569   :  { %2840 = vtanh.f32 %v2058_v16  ;;  %vm2046_vm13 = vcmp.eq.f32.partialorder %v2045_v30, 8.507059e+37  ;;  %vm2069_vm7 = vcmp.eq.s32.totalorder %v4180_v60, 1  ;;  %vm4399_vm0 = vcmask 1041408  }
 0x56a   :  { %2842 = vtanh.f32 %v2059_v36  ;;  %v2049_v57 = vsel %vm2046_vm13, %v2048_v47, %v2044_v35  ;;  %vm4400_vm2 = vcmask 1042433  }
 0x56f   :  { %v2841_v42 = vpop.eup %2840 }
 0x570   :  { %v2062_v25 = vmul.f32 %v2841_v42, %v2034_v43  ;;  %v2843_v51 = vpop.eup %2842 }
 0x571   :  { %v2063_v58 = vmul.f32 %v2843_v51, %v2049_v57 }
 0x572   :  { %2072 = vst [vmem:[#allocation1] ss:$9 sm:$0xff] %v2062_v25 }
 0x573   :  { %2074 = vst [vmem:[#allocation1 + $0x1] ss:$9 sm:$0xff] %v2063_v58 }
 0x57a   :  { %v2075_v29 = vld [vmem:[#allocation1] sm:$0xff] }
 0x57b   :  { %v4186_v14 = vsel %vm2069_vm7, %v2075_v29, %v4098_v17  ;;  %2080 = vst [vmem:[#allocation1] ss:$9 sm:$0xff] %v2058_v16 }
 0x57c   :  { %v2101_v0 = vpack.c.bf16 %v4186_v14, %v4186_v14  ;;  %2082 = vst [vmem:[#allocation1 + $0x1] ss:$9 sm:$0xff] %v2059_v36 }
 0x57e   :  { %2110 = vmatmul.bf16.vlgmr.msra.gmra.mxu0 %v2101_v0  ;;  %2123 = vmatmul.bf16.vlgmr.msra.gmra.mxu1 %v2101_v0 }
 0x57f   :  { %2136 = vmatmul.bf16.vlgmr.msra.gmra.mxu2 %v2101_v0  ;;  %2149 = vmatmul.bf16.vlgmr.msra.gmra.mxu3 %v2101_v0 }
 0x583   :  { %v2083_v5 = vld [vmem:[#allocation1] sm:$0xff] }
 0x584   :  { %2086 = vst [vmem:[#allocation1] ss:$9 sm:$0xff] %v2062_v25  ;;  %v4209_v34 = vsel %vm2069_vm7, %v2083_v5, %v4121_v21 }
 0x585   :  { %2088 = vst [vmem:[#allocation1 + $0x1] ss:$9 sm:$0xff] %v2063_v58  ;;  %v2303_v51 = vrot.slane %v4209_v34, 1 }
 0x58c   :  { %v2089_v6 = vld [vmem:[#allocation1] sm:$0xff] }
 0x58d   :  { %v2091_v8 = vsel %vm2069_vm7, %v2089_v6, 0.0 }
 0x58e   :  { %v2093_v12 = vrot.slane %v2091_v8, 1  ;;  %2095 = vst [vmem:[#allocation3 + $0x6] sm:$0x1] %v2091_v8 }
 0x590   :  { %2096 = vst [vmem:[#allocation3 + $0xe] sm:$0x1] %v2093_v12 }
 0x5fb   :  { %v2111_v17 = vpop.f32.mrf.mxu0  ;;  %v2124_v19 = vpop.f32.mrf.mxu1 }
 0x5fc   :  { %v2158_v20 = vrot.slane %v2124_v19, 7 }
 0x5fe   :  { %v2161_v32 = vsel %vm398_vm4, %v2111_v17, %v2158_v20  ;;  %v2164_v11 = vsel %vm404_vm5, %v2111_v17, %v2158_v20 }
 0x602   :  { %v2137_v24 = vpop.f32.mrf.mxu2  ;;  %v2150_v31 = vpop.f32.mrf.mxu3 }
 0x603   :  { %v2159_v39 = vrot.slane %v2137_v24, 6  ;;  %v2160_v40 = vrot.slane %v2150_v31, 5  ;;  %v2113_v15 = vpop.f32.mrf.mxu0  ;;  %v2126_v63 = vpop.f32.mrf.mxu1 }
 0x605   :  { %v2162_v44 = vsel %vm400_vm6, %v2159_v39, %v2160_v40  ;;  %v2165_v41 = vsel %vm406_vm8, %v2159_v39, %v2160_v40 }
 0x606   :  { %v2163_v56 = vsel %vm4399_vm0, %v2161_v32, %v2162_v44  ;;  %v2166_v62 = vsel %vm4400_vm2, %v2164_v11, %v2165_v41 }
 0x607   :  { %v2167_v45 = vrot.slane %v2166_v62, 1  ;;  %v2170_v48 = vadd.f32 %v2163_v56, %v2098_v22 }
 0x609   :  { %v2171_v9 = vadd.f32 %v2167_v45, %v2100_v4  ;;  %v2570_v53 = vmul.f32 -1.442695, %v2170_v48  ;;  %v2212_v50 = vrot.slane %v2170_v48, 1  ;;  %v2260_v23 = vrot.slane %v2170_v48, 3 }
 0x60a   :  { %v2139_v49 = vpop.f32.mrf.mxu2  ;;  %v2152_v18 = vpop.f32.mrf.mxu3  ;;  %v2254_v59 = vrot.slane %v2170_v48, 2 }
 0x60b   :  { %2844 = vpow2.f32 %v2570_v53  ;;  %v2571_v2 = vmul.f32 -1.442695, %v2171_v9  ;;  %v2213_v46 = vrot.slane %v2171_v9, 1  ;;  %v2572_v54 = vmul.f32 -1.442695, %v2212_v50 }
 0x60c   :  { %v2261_v28 = vrot.slane %v2171_v9, 3  ;;  %v2574_v7 = vmul.f32 -1.442695, %v2260_v23  ;;  %v2255_v52 = vrot.slane %v2171_v9, 2 }
 0x60d   :  { %2846 = vpow2.f32 %v2571_v2  ;;  %v2573_v33 = vmul.f32 -1.442695, %v2213_v46 }
 0x60e   :  { %2848 = vpow2.f32 %v2572_v54  ;;  %v2575_v13 = vmul.f32 -1.442695, %v2261_v28 }
 0x60f   :  { %2850 = vpow2.f32 %v2573_v33 }
 0x610   :  { %2852 = vpow2.f32 %v2574_v7 }
 0x611   :  { %v2845_v27 = vpop.eup %2844  ;;  %2854 = vpow2.f32 %v2575_v13 }
 0x612   :  { %v2178_v61 = vadd.f32 1.0, %v2845_v27 }
 0x613   :  { %v2847_v10 = vpop.eup %2846 }
 0x614   :  { %v2849_v37 = vpop.eup %2848  ;;  %v4198_v38 = vadd.f32 1.0, %v2847_v10  ;;  %2856 = vrcp.f32 %v2178_v61  ;;  %v2189_v30 = vand.u32 2147483647, %v2178_v61  ;;  %v2191_v55 = vand.u32 2147483648, %v2178_v61 }
 0x615   :  { %v2851_v16 = vpop.eup %2850  ;;  %v4200_v1 = vadd.f32 1.0, %v2849_v37  ;;  %vm2185_vm4 = vweird.f32 %v2178_v61 }
 0x616   :  { %2858 = vrcp.f32 %v4198_v38  ;;  %v2853_v36 = vpop.eup %2852  ;;  %v4203_v3 = vadd.f32 1.0, %v2851_v16  ;;  %v2204_v42 = vand.u32 2147483647, %v4198_v38  ;;  %vm4218_vm5 = vcmp.eq.f32.partialorder %v2189_v30, 8.507059e+37 }
 0x617   :  { %2860 = vrcp.f32 %v4200_v1  ;;  %v2855_v26 = vpop.eup %2854  ;;  %v4213_v43 = vadd.f32 1.0, %v2853_v36  ;;  %v2206_v58 = vand.u32 2147483648, %v4198_v38  ;;  %v2192_v0 = vor.u32 1.1754944e-38, %v2191_v55 }
 0x618   :  { %2862 = vrcp.f32 %v4203_v3  ;;  %v4215_v25 = vadd.f32 1.0, %v2855_v26  ;;  %vm2200_vm6 = vweird.f32 %v4198_v38  ;;  %vm4226_vm8 = vcmp.eq.f32.partialorder %v2204_v42, 8.507059e+37 }
 0x619   :  { %2864 = vtanh.f32 %v2254_v59  ;;  %vm2229_vm1 = vweird.f32 %v4200_v1  ;;  %v2233_v20 = vand.u32 2147483647, %v4200_v1  ;;  %v2207_v31 = vor.u32 1.1754944e-38, %v2206_v58 }
 0x61a   :  { %v2857_v35 = vpop.eup %2856  ;;  %2866 = vtanh.f32 %v2255_v52  ;;  %v2235_v40 = vand.u32 2147483648, %v4200_v1  ;;  %vm2244_vm14 = vweird.f32 %v4203_v3  ;;  %v2250_v62 = vand.u32 2147483648, %v4203_v3 }
 0x61b   :  { %v2181_v47 = vmul.f32 %v2857_v35, %v2178_v61  ;;  %2868 = vrcp.f32 %v4213_v43  ;;  %vm2186_vm15 = vweird.f32 %v2857_v35  ;;  %v2248_v4 = vand.u32 2147483647, %v4203_v3 }
 0x61c   :  { %v2859_v57 = vpop.eup %2858  ;;  %2870 = vrcp.f32 %v4215_v25  ;;  %vm4238_vm12 = vmor %vm2185_vm4, %vm2186_vm15  ;;  %v2236_v23 = vor.u32 1.1754944e-38, %v2235_v40  ;;  %vm2234_vm7 = vcmp.eq.f32.partialorder %v2233_v20, 8.507059e+37  ;;  %v2251_v7 = vor.u32 1.1754944e-38, %v2250_v62 }
 0x61d   :  { %v2861_v60 = vpop.eup %2860  ;;  %v2182_v29 = vsub.f32 1.0, %v2181_v47  ;;  %v2196_v5 = vmul.f32 %v2859_v57, %v4198_v38  ;;  %vm2201_vm10 = vweird.f32 %v2859_v57  ;;  %vm2249_vm2 = vcmp.eq.f32.partialorder %v2248_v4, 8.507059e+37 }
 0x61e   :  { %v2225_v8 = vmul.f32 %v2861_v60, %v4200_v1  ;;  %v2863_v12 = vpop.eup %2862  ;;  %vm2230_vm11 = vweird.f32 %v2861_v60  ;;  %vm2202_vm3 = vmor %vm2200_vm6, %vm2201_vm10  ;;  %v2283_v55 = vand.u32 2147483648, %v4213_v43  ;;  %v2298_v47 = vand.u32 2147483648, %v4215_v25 }
 0x61f   :  { %v2183_v17 = vmul.f32 %v2857_v35, %v2182_v29  ;;  %v2197_v19 = vsub.f32 1.0, %v2196_v5  ;;  %v2865_v24 = vpop.eup %2864  ;;  %v2240_v15 = vmul.f32 %v2863_v12, %v4203_v3  ;;  %vm2245_vm9 = vweird.f32 %v2863_v12  ;;  %vm2231_vm13 = vmor %vm2229_vm1, %vm2230_vm11 }
 0x620   :  { %v2226_v39 = vsub.f32 1.0, %v2225_v8  ;;  %v2867_v63 = vpop.eup %2866  ;;  %vm2246_vm0 = vmor %vm2244_vm14, %vm2245_vm9  ;;  %vm2292_vm1 = vweird.f32 %v4215_v25  ;;  %v2284_v21 = vor.u32 1.1754944e-38, %v2283_v55 }
 0x621   :  { %v2184_v32 = vadd.f32 %v2857_v35, %v2183_v17  ;;  %v2198_v11 = vmul.f32 %v2859_v57, %v2197_v19  ;;  %v2869_v44 = vpop.eup %2868  ;;  %v2241_v56 = vsub.f32 1.0, %v2240_v15 }
 0x622   :  { %v2227_v22 = vmul.f32 %v2861_v60, %v2226_v39  ;;  %v2273_v9 = vmul.f32 %v2869_v44, %v4213_v43  ;;  %v2871_v53 = vpop.eup %2870  ;;  %vm2278_vm4 = vweird.f32 %v2869_v44 }
 0x623   :  { %v2188_v45 = vsel %vm4238_vm12, %v2857_v35, %v2184_v32  ;;  %v2199_v48 = vadd.f32 %v2859_v57, %v2198_v11  ;;  %v2242_v49 = vmul.f32 %v2863_v12, %v2241_v56  ;;  %v2288_v54 = vmul.f32 %v2871_v53, %v4215_v25 }
 0x624   :  { %v2228_v50 = vadd.f32 %v2861_v60, %v2227_v22  ;;  %v2193_v18 = vsel %vm4218_vm5, %v2192_v0, %v2188_v45  ;;  %v2274_v46 = vsub.f32 1.0, %v2273_v9  ;;  %vm2277_vm5 = vweird.f32 %v4213_v43 }
 0x625   :  { %v2203_v2 = vsel %vm2202_vm3, %v2859_v57, %v2199_v48  ;;  %v2243_v33 = vadd.f32 %v2863_v12, %v2242_v49  ;;  %v2289_v10 = vsub.f32 1.0, %v2288_v54  ;;  %v2307_v16 = vmul.f32 %v2865_v24, %v2193_v18 }
 0x626   :  { %v2232_v28 = vsel %vm2231_vm13, %v2861_v60, %v2228_v50  ;;  %v2208_v13 = vsel %vm4226_vm8, %v2207_v31, %v2203_v2  ;;  %v2275_v61 = vmul.f32 %v2869_v44, %v2274_v46  ;;  %v2281_v35 = vand.u32 2147483647, %v4213_v43  ;;  %vm2279_vm8 = vmor %vm2277_vm5, %vm2278_vm4 }
 0x627   :  { %v2237_v27 = vsel %vm2234_vm7, %v2236_v23, %v2232_v28  ;;  %v2247_v37 = vsel %vm2246_vm0, %v2863_v12, %v2243_v33  ;;  %v2290_v59 = vmul.f32 %v2871_v53, %v2289_v10  ;;  %v2308_v52 = vmul.f32 %v2867_v63, %v2208_v13  ;;  %v2319_v12 = vpop.permute.xlu1 %2318 }
 0x628   :  { %v2305_v38 = vmul.f32 %v2237_v27, %v4209_v34  ;;  %v2252_v1 = vsel %vm2249_vm2, %v2251_v7, %v2247_v37  ;;  %v2276_v30 = vadd.f32 %v2869_v44, %v2275_v61  ;;  %vm2293_vm6 = vweird.f32 %v2871_v53 }
 0x629   :  { %v2306_v36 = vmul.f32 %v2303_v51, %v2252_v1  ;;  %v2291_v42 = vadd.f32 %v2871_v53, %v2290_v59  ;;  %v2296_v51 = vand.u32 2147483647, %v4215_v25  ;;  %vm2294_vm15 = vmor %vm2292_vm1, %vm2293_vm6  ;;  %vm2282_vm10 = vcmp.eq.f32.partialorder %v2281_v35, 8.507059e+37 }
 0x62a   :  { %v2309_v26 = vadd.f32 %v2307_v16, %v2305_v38  ;;  %v2280_v57 = vsel %vm2279_vm8, %v2869_v44, %v2276_v30  ;;  %v2299_v0 = vor.u32 1.1754944e-38, %v2298_v47  ;;  %vm2320_vm12 = vcmp.eq.s32.totalorder %v2319_v12, 1 }
 0x62b   :  { %v2310_v3 = vadd.f32 %v2308_v52, %v2306_v36  ;;  %v2295_v58 = vsel %vm2294_vm15, %v2871_v53, %v2291_v42  ;;  %v2285_v29 = vsel %vm2282_vm10, %v2284_v21, %v2280_v57  ;;  %vm2297_vm14 = vcmp.eq.f32.partialorder %v2296_v51, 8.507059e+37 }
 0x62c   :  { %2872 = vtanh.f32 %v2309_v26  ;;  %v2300_v6 = vsel %vm2297_vm14, %v2299_v0, %v2295_v58 }
 0x62d   :  { %2874 = vtanh.f32 %v2310_v3 }
 0x632   :  { %v2873_v60 = vpop.eup %2872 }
 0x633   :  { %v2313_v43 = vmul.f32 %v2873_v60, %v2285_v29  ;;  %v2875_v5 = vpop.eup %2874 }
 0x634   :  { %v2314_v8 = vmul.f32 %v2875_v5, %v2300_v6 }
 0x635   :  { %2323 = vst [vmem:[#allocation1] ss:$9 sm:$0xff] %v2313_v43 }
 0x636   :  { %2325 = vst [vmem:[#allocation1 + $0x1] ss:$9 sm:$0xff] %v2314_v8 }
 0x63d   :  { %v2326_v17 = vld [vmem:[#allocation1] sm:$0xff] }
 0x63e   :  { %v2328_v19 = vsel %vm2320_vm12, %v2326_v17, %v4186_v14  ;;  %2331 = vst [vmem:[#allocation1] ss:$9 sm:$0xff] %v2309_v26 }
 0x63f   :  { %2333 = vst [vmem:[#allocation1 + $0x1] ss:$9 sm:$0xff] %v2310_v3 }
 0x640   :  { %2348 = vst [vmem:[%s4287_s8] sm:$0x3] %v2328_v19  ;;  %s2905_s8 = smov 128  }
 0x646   :  { %v2334_v25 = vld [vmem:[#allocation1] sm:$0xff] }
 0x647   :  { %v2336_v20 = vsel %vm2320_vm12, %v2334_v25, %v4209_v34  ;;  %2337 = vst [vmem:[#allocation1] ss:$9 sm:$0xff] %v2313_v43 }
 0x648   :  { %2349 = vst [vmem:[%s4288_s9] sm:$0x3] %v2336_v20 }
 0x649   :  { %2339 = vst [vmem:[#allocation1 + $0x1] ss:$9 sm:$0xff] %v2314_v8 }
 0x650   :  { %v2340_v14 = vld [vmem:[#allocation1] sm:$0xff] }
 0x651   :  { %v2342_v24 = vsel %vm2320_vm12, %v2340_v14, 0.0 }
 0x652   :  { %v2344_v31 = vrot.slane %v2342_v24, 1  ;;  %2346 = vst [vmem:[#allocation3 + $0x7] sm:$0x1] %v2342_v24 }
 0x654   :  { %2347 = vst [vmem:[#allocation3 + $0xf] sm:$0x1] %v2344_v31 }
 0x655   :  { %2362 = dma.vmem_to_hbm [thread:$0]  %s2355_s28, 256, %s2357_s10, [#allocation4], %s2905_s8, %s2905_s8, %s2906_s11  }
 0x656   :  { %2901 = dma.done.wait [#allocation4], 256  }
 0x657   :  { %2902 = vsyncadd [#allocation4], 4294967040 }
 0x658   :  { %2375 = vsyncpa [#allocation4], 1 }

</bundles_post_ra>
